<compile_context>
chip_gen: v5e
topology: v5e:2x2
jax: 0.10.0
libtpu: 0.0.40
codegen_flags: <defaults>
</compile_context>

<pallas_src>
import jax
import jax.numpy as jnp
from jax import lax
from jax.experimental import pallas as pl
from jax.experimental.pallas import tpu as pltpu

# ----- configuration: BaseBlock(inp, exp, out, se, stride, heads, dim) -----
INP = 8        # input channels
EXP = 16       # expanded (hidden) channels in Mobile
OUT = 8        # output channels
STRIDE = 1     # -> Mobile branch
HEADS = 2      # bridge heads (Mobile2Former / Former2Mobile)
DIM = 32       # token dimension
M_TOK = 6      # number of former tokens
B = 2
H = W = 16     # spatial (W is a power of two; N is a multiple of 128 -> lane-dense)
N = H * W
KS = 3

# Former internals (reference defaults: depth=1, heads=2, dim_head=32, mlp=2*dim)
F_HEADS = 2
F_DH = 32
F_INNER = F_HEADS * F_DH
F_MLP = 2 * DIM

DYK = 2        # DyReLU k
RED = 4        # DyReLU reduction
BN_EPS = 1e-5
LN_EPS = 1e-5

# Ordered parameter list (kernel unpacks positional refs with this order).
PARAM_NAMES = (
    'm2f_wq', 'm2f_bq', 'm2f_wo', 'm2f_bo',
    'f_ln1g', 'f_ln1b', 'f_wqkv', 'f_wo', 'f_bo',
    'f_ln2g', 'f_ln2b', 'f_w1', 'f_b1', 'f_w2', 'f_b2',
    'mob_wfc1t', 'mob_bfc1', 'mob_wfc2t', 'mob_bfc2',
    'mob_w1t', 'mob_bn1s', 'mob_bn1b',
    'mob_wdw', 'mob_bn2s', 'mob_bn2b',
    'mob_w3t', 'mob_bn3s', 'mob_bn3b',
    'f2m_wk', 'f2m_bk', 'f2m_wv', 'f2m_bv', 'f2m_wpt', 'f2m_bp',
)


def _softmax(x, axis):
    x = x - jnp.max(x, axis=axis, keepdims=True)
    e = jnp.exp(x)
    return e * pl.reciprocal(jnp.sum(e, axis=axis, keepdims=True), approx=True)


# --------------------------- fused BaseBlock kernel ---------------------------
def fused_kernel(x_ref, z_ref, *rest):
    assert len(rest) == len(PARAM_NAMES) + 2
    xo_ref, zo_ref = rest[-2], rest[-1]
    prm = dict(zip(PARAM_NAMES, rest[:-2]))

    x = x_ref[0]          # (INP, N)  channels on sublanes, tokens on lanes
    z = z_ref[0]          # (M_TOK, DIM)

    # ---------------- Mobile2Former: z_hid = z + Attn(q = Wq z, k = v = x tokens) ----------------
    q = jnp.dot(z, prm['m2f_wq'][...], preferred_element_type=jnp.float32) + prm['m2f_bq'][...]
    wo_m2f = prm['m2f_wo'][...]
    acc_z = jnp.zeros((M_TOK, DIM), jnp.float32)
    scale_m2f = 1.0 / (INP ** 0.5)
    for h in range(HEADS):
        qh = q[:, h * INP:(h + 1) * INP]                                        # (M, INP)
        dots = jnp.dot(qh, x, preferred_element_type=jnp.float32) * scale_m2f   # (M, N)
        attn = _softmax(dots, axis=-1)                                          # over pixels (lanes)
        oh = lax.dot_general(attn, x, (((1,), (1,)), ((), ())),
                             preferred_element_type=jnp.float32)                # (M, INP)
        acc_z = acc_z + jnp.dot(oh, wo_m2f[h * INP:(h + 1) * INP, :],
                                preferred_element_type=jnp.float32)
    z_hid = z + acc_z + prm['m2f_bo'][...]

    # ---------------- Former: PreNorm MHSA + PreNorm FeedForward ----------------
    mu = jnp.mean(z_hid, axis=-1, keepdims=True)
    var = jnp.mean(jnp.square(z_hid - mu), axis=-1, keepdims=True)
    zn = (z_hid - mu) * lax.rsqrt(var + LN_EPS) * prm['f_ln1g'][...] + prm['f_ln1b'][...]
    qkv = jnp.dot(zn, prm['f_wqkv'][...], preferred_element_type=jnp.float32)   # (M, 3*F_INNER)
    wo_f = prm['f_wo'][...]
    acc_f = jnp.zeros((M_TOK, DIM), jnp.float32)
    scale_f = 1.0 / (F_DH ** 0.5)
    for h in range(F_HEADS):
        qh = qkv[:, h * F_DH:(h + 1) * F_DH]
        kh = qkv[:, F_INNER + h * F_DH:F_INNER + (h + 1) * F_DH]
        vh = qkv[:, 2 * F_INNER + h * F_DH:2 * F_INNER + (h + 1) * F_DH]
        dots = lax.dot_general(qh, kh, (((1,), (1,)), ((), ())),
                               preferred_element_type=jnp.float32) * scale_f    # (M, M)
        attn = _softmax(dots, axis=-1)
        oh = jnp.dot(attn, vh, preferred_element_type=jnp.float32)              # (M, F_DH)
        acc_f = acc_f + jnp.dot(oh, wo_f[h * F_DH:(h + 1) * F_DH, :],
                                preferred_element_type=jnp.float32)
    z1 = z_hid + acc_f + prm['f_bo'][...]

    mu2 = jnp.mean(z1, axis=-1, keepdims=True)
    var2 = jnp.mean(jnp.square(z1 - mu2), axis=-1, keepdims=True)
    z1n = (z1 - mu2) * lax.rsqrt(var2 + LN_EPS) * prm['f_ln2g'][...] + prm['f_ln2b'][...]
    hdn = jnp.dot(z1n, prm['f_w1'][...], preferred_element_type=jnp.float32) + prm['f_b1'][...]
    # TODO(synk): tanh-approximate GELU (PyTorch default is exact erf).
    hdn = 0.5 * hdn * (1.0 + jnp.tanh(0.7978845608028654 *
                                      (hdn + 0.044715 * hdn * hdn * hdn)))
    ff = jnp.dot(hdn, prm['f_w2'][...], preferred_element_type=jnp.float32) + prm['f_b2'][...]
    z_out = z1 + ff
    zo_ref[0] = z_out

    # ---------------- Mobile: 1x1 conv+BN+DyReLU, 3x3 dw conv+BN+DyReLU, 1x1 conv+BN ----------------
    # DyReLU coefficient generator from the first former token, kept column-oriented so the
    # per-channel coefficients broadcast over the (C, N) activation layout.
    t0 = lax.dot_general(prm['mob_wfc1t'][...], z_out, (((1,), (1,)), ((), ())),
                         preferred_element_type=jnp.float32)                    # (DIM//RED, M)
    t = jnp.maximum(t0[:, 0:1] + prm['mob_bfc1'][...], 0.0)                     # (DIM//RED, 1)
    t = jnp.dot(prm['mob_wfc2t'][...], t, preferred_element_type=jnp.float32) + prm['mob_bfc2'][...]
    theta = 2.0 * pl.reciprocal(1.0 + jnp.exp(-t), approx=True) - 1.0           # (2*k*EXP, 1)
    a1 = theta[0 * EXP:1 * EXP, :] + 1.0          # lambdas=[1,1,.5,.5], init_v=[1,0,0,0]
    a2 = theta[1 * EXP:2 * EXP, :]
    c1 = theta[2 * EXP:3 * EXP, :] * 0.5
    c2 = theta[3 * EXP:4 * EXP, :] * 0.5

    h1 = jnp.dot(prm['mob_w1t'][...], x, preferred_element_type=jnp.float32)    # (EXP, N)
    h1 = h1 * prm['mob_bn1s'][...] + prm['mob_bn1b'][...]
    h1 = jnp.maximum(h1 * a1 + c1, h1 * a2 + c2)

    # 3x3 depthwise conv (stride 1, pad 1): lane rotations along the token axis + boundary masks.
    # pltpu.roll follows jnp.roll semantics: rolled[:, t] == h1[:, (t + s) % N].
    tok = lax.broadcasted_iota(jnp.int32, (1, N), 1)
    col = jnp.bitwise_and(tok, W - 1)            # token column index (W is a power of two)
    wdw = prm['mob_wdw'][...]                    # (EXP, KS*KS)
    acc_dw = jnp.zeros((EXP, N), jnp.float32)
    for di in range(KS):
        for dj in range(KS):
            dy, dx = di - 1, dj - 1
            s = dy * W + dx
            shifted = pltpu.roll(h1, shift=(-s) % N, axis=1) if s != 0 else h1
            cond = None
            if dy == 1:
                cond = tok < (H - 1) * W
            elif dy == -1:
                cond = tok >= W
            if dx == 1:
                c_ok = col < (W - 1)
                cond = c_ok if cond is None else jnp.logical_and(cond, c_ok)
            elif dx == -1:
                c_ok = col > 0
                cond = c_ok if cond is None else jnp.logical_and(cond, c_ok)
            if cond is not None:
                shifted = jnp.where(cond, shifted, 0.0)
            tap = di * KS + dj
            acc_dw = acc_dw + shifted * wdw[:, tap:tap + 1]
    h2 = acc_dw * prm['mob_bn2s'][...] + prm['mob_bn2b'][...]
    h2 = jnp.maximum(h2 * a1 + c1, h2 * a2 + c2)

    h3 = jnp.dot(prm['mob_w3t'][...], h2, preferred_element_type=jnp.float32)   # (OUT, N)
    x_hid = h3 * prm['mob_bn3s'][...] + prm['mob_bn3b'][...]

    # ---------------- Former2Mobile: x_out = x_hid + Attn(q = pixels, k/v = Wk z, Wv z) ----------------
    k = jnp.dot(z_out, prm['f2m_wk'][...], preferred_element_type=jnp.float32) + prm['f2m_bk'][...]
    v = jnp.dot(z_out, prm['f2m_wv'][...], preferred_element_type=jnp.float32) + prm['f2m_bv'][...]
    wpt = prm['f2m_wpt'][...]                                                   # (OUT, HEADS*OUT)
    acc_x = jnp.zeros((OUT, N), jnp.float32)
    scale_f2m = 1.0 / (OUT ** 0.5)
    for h in range(HEADS):
        kh = k[:, h * OUT:(h + 1) * OUT]                                        # (M, OUT)
        vh = v[:, h * OUT:(h + 1) * OUT]
        dots = jnp.dot(kh, x_hid, preferred_element_type=jnp.float32) * scale_f2m   # (M, N)
        attn = _softmax(dots, axis=0)                                           # over former tokens
        # project-then-attend (associativity): (Wp_h @ vh^T) @ attn == Wp_h @ (vh^T @ attn)
        pv = lax.dot_general(wpt[:, h * OUT:(h + 1) * OUT], vh, (((1,), (1,)), ((), ())),
                             preferred_element_type=jnp.float32)                # (OUT, M)
        acc_x = acc_x + jnp.dot(pv, attn, preferred_element_type=jnp.float32)   # (OUT, N)
    xo_ref[0] = x_hid + acc_x + prm['f2m_bp'][...]


# ------------------------------ pallas_call glue ---------------------------
def base_block_forward(x_nchw, z, p):
    # NCHW -> (B, C, N): channels on sublanes, tokens on lanes.  Free reshape, no transpose.
    bx, c, hx, wx = x_nchw.shape
    n = hx * wx
    x_cn = x_nchw.reshape(bx, c, n)

    in_specs = [pl.BlockSpec((1, c, n), lambda b: (b, 0, 0)),
                pl.BlockSpec((1, M_TOK, DIM), lambda b: (b, 0, 0))]
    args = [x_cn, z]
    for name in PARAM_NAMES:
        a = p[name]
        in_specs.append(pl.BlockSpec(a.shape, lambda b, _nd=a.ndim: (0,) * _nd))
        args.append(a)

    x_out_cn, z_out = pl.pallas_call(
        fused_kernel,
        out_shape=(jax.ShapeDtypeStruct((bx, OUT, n), jnp.float32),
                   jax.ShapeDtypeStruct((bx, M_TOK, DIM), jnp.float32)),
        grid=(bx,),
        in_specs=in_specs,
        out_specs=(pl.BlockSpec((1, OUT, n), lambda b: (b, 0, 0)),
                   pl.BlockSpec((1, M_TOK, DIM), lambda b: (b, 0, 0))),
        compiler_params=pltpu.CompilerParams(dimension_semantics=("parallel",)),
    )(*args)

    x_out = x_out_cn.reshape(bx, OUT, hx, wx)     # back to NCHW (free reshape)
    return x_out, z_out


def init_params(key):
    keys = iter(jax.random.split(key, 64))

    def nrm(shape, scale=0.1):
        return scale * jax.random.normal(next(keys), shape, jnp.float32)

    p = {}
    # Mobile2Former
    p['m2f_wq'] = nrm((DIM, HEADS * INP)); p['m2f_bq'] = nrm((1, HEADS * INP))
    p['m2f_wo'] = nrm((HEADS * INP, DIM)); p['m2f_bo'] = nrm((1, DIM))
    # Former
    p['f_ln1g'] = 1.0 + nrm((1, DIM)); p['f_ln1b'] = nrm((1, DIM))
    p['f_wqkv'] = nrm((DIM, 3 * F_INNER))
    p['f_wo'] = nrm((F_INNER, DIM)); p['f_bo'] = nrm((1, DIM))
    p['f_ln2g'] = 1.0 + nrm((1, DIM)); p['f_ln2b'] = nrm((1, DIM))
    p['f_w1'] = nrm((DIM, F_MLP)); p['f_b1'] = nrm((1, F_MLP))
    p['f_w2'] = nrm((F_MLP, DIM)); p['f_b2'] = nrm((1, DIM))
    # Mobile (DyReLU generator + convs + folded inference BN), column-oriented for the (C, N) layout.
    # DyReLU generator output rows are arranged in [a1 | a2 | b1 | b2] channel blocks (a fixed
    # permutation of torch's `c*2k + j` interleaving; weights are random so only the convention matters).
    p['mob_wfc1t'] = nrm((DIM // RED, DIM)); p['mob_bfc1'] = nrm((DIM // RED, 1))
    p['mob_wfc2t'] = nrm((2 * DYK * EXP, DIM // RED)); p['mob_bfc2'] = nrm((2 * DYK * EXP, 1))
    p['mob_w1t'] = nrm((EXP, INP))
    p['mob_wdw'] = nrm((EXP, KS * KS))
    p['mob_w3t'] = nrm((OUT, EXP))
    for name, cch in (('bn1', EXP), ('bn2', EXP), ('bn3', OUT)):
        gamma = 1.0 + nrm((cch, 1)); beta = nrm((cch, 1))
        mean = nrm((cch, 1)); var = 1.0 + jnp.abs(nrm((cch, 1)))
        scale = gamma / jnp.sqrt(var + BN_EPS)
        p[f'mob_{name}s'] = scale
        p[f'mob_{name}b'] = beta - mean * scale
    # Former2Mobile
    p['f2m_wk'] = nrm((DIM, HEADS * OUT)); p['f2m_bk'] = nrm((1, HEADS * OUT))
    p['f2m_wv'] = nrm((DIM, HEADS * OUT)); p['f2m_bv'] = nrm((1, HEADS * OUT))
    p['f2m_wpt'] = nrm((OUT, HEADS * OUT)); p['f2m_bp'] = nrm((OUT, 1))
    assert set(p.keys()) == set(PARAM_NAMES)
    return p


if __name__ == "__main__":
    root = jax.random.PRNGKey(0)
    k_x, k_z, k_p = jax.random.split(root, 3)
    x = jax.random.normal(k_x, (B, INP, H, W), jnp.float32)   # NCHW, like the PyTorch module
    z = jax.random.normal(k_z, (B, M_TOK, DIM), jnp.float32)
    params = init_params(k_p)

    fwd = jax.jit(base_block_forward)
    x_out, z_out = fwd(x, z, params)
    jax.block_until_ready((x_out, z_out))
    assert x_out.shape == (B, OUT, H, W) and z_out.shape == (B, M_TOK, DIM)
    assert bool(jnp.all(jnp.isfinite(x_out))) and bool(jnp.all(jnp.isfinite(z_out)))
    print("KERNEL_OK")
</pallas_src>

<mosaic_0001>
module attributes {stable_mosaic.version = 11 : i64} {
  func.func @fused_kernel(%arg0: i32, %arg1: memref<1x8x256xf32, #tpu.memory_space<vmem>>, %arg2: memref<1x6x32xf32, #tpu.memory_space<vmem>>, %arg3: memref<32x16xf32, #tpu.memory_space<vmem>>, %arg4: memref<1x16xf32, #tpu.memory_space<vmem>>, %arg5: memref<16x32xf32, #tpu.memory_space<vmem>>, %arg6: memref<1x32xf32, #tpu.memory_space<vmem>>, %arg7: memref<1x32xf32, #tpu.memory_space<vmem>>, %arg8: memref<1x32xf32, #tpu.memory_space<vmem>>, %arg9: memref<32x192xf32, #tpu.memory_space<vmem>>, %arg10: memref<64x32xf32, #tpu.memory_space<vmem>>, %arg11: memref<1x32xf32, #tpu.memory_space<vmem>>, %arg12: memref<1x32xf32, #tpu.memory_space<vmem>>, %arg13: memref<1x32xf32, #tpu.memory_space<vmem>>, %arg14: memref<32x64xf32, #tpu.memory_space<vmem>>, %arg15: memref<1x64xf32, #tpu.memory_space<vmem>>, %arg16: memref<64x32xf32, #tpu.memory_space<vmem>>, %arg17: memref<1x32xf32, #tpu.memory_space<vmem>>, %arg18: memref<8x32xf32, #tpu.memory_space<vmem>>, %arg19: memref<8x1xf32, #tpu.memory_space<vmem>>, %arg20: memref<64x8xf32, #tpu.memory_space<vmem>>, %arg21: memref<64x1xf32, #tpu.memory_space<vmem>>, %arg22: memref<16x8xf32, #tpu.memory_space<vmem>>, %arg23: memref<16x1xf32, #tpu.memory_space<vmem>>, %arg24: memref<16x1xf32, #tpu.memory_space<vmem>>, %arg25: memref<16x9xf32, #tpu.memory_space<vmem>>, %arg26: memref<16x1xf32, #tpu.memory_space<vmem>>, %arg27: memref<16x1xf32, #tpu.memory_space<vmem>>, %arg28: memref<8x16xf32, #tpu.memory_space<vmem>>, %arg29: memref<8x1xf32, #tpu.memory_space<vmem>>, %arg30: memref<8x1xf32, #tpu.memory_space<vmem>>, %arg31: memref<32x16xf32, #tpu.memory_space<vmem>>, %arg32: memref<1x16xf32, #tpu.memory_space<vmem>>, %arg33: memref<32x16xf32, #tpu.memory_space<vmem>>, %arg34: memref<1x16xf32, #tpu.memory_space<vmem>>, %arg35: memref<8x16xf32, #tpu.memory_space<vmem>>, %arg36: memref<8x1xf32, #tpu.memory_space<vmem>>, %arg37: memref<1x8x256xf32, #tpu.memory_space<vmem>>, %arg38: memref<1x6x32xf32, #tpu.memory_space<vmem>>) attributes {dimension_semantics = [#tpu.dimension_semantics<parallel>], iteration_bounds = array<i64: 2>, scalar_prefetch = 0 : i64, scratch_operands = 0 : i64, tpu.core_type = #tpu.core_type<tc>, window_params = [{transform_indices = @transform_0, window_bounds = array<i64: 1, 8, 256>}, {transform_indices = @transform_1, window_bounds = array<i64: 1, 6, 32>}, {pipeline_mode = #tpu.pipeline_mode<synchronous>, transform_indices = @transform_2, window_bounds = array<i64: 32, 16>}, {pipeline_mode = #tpu.pipeline_mode<synchronous>, transform_indices = @transform_3, window_bounds = array<i64: 1, 16>}, {pipeline_mode = #tpu.pipeline_mode<synchronous>, transform_indices = @transform_4, window_bounds = array<i64: 16, 32>}, {pipeline_mode = #tpu.pipeline_mode<synchronous>, transform_indices = @transform_5, window_bounds = array<i64: 1, 32>}, {pipeline_mode = #tpu.pipeline_mode<synchronous>, transform_indices = @transform_6, window_bounds = array<i64: 1, 32>}, {pipeline_mode = #tpu.pipeline_mode<synchronous>, transform_indices = @transform_7, window_bounds = array<i64: 1, 32>}, {pipeline_mode = #tpu.pipeline_mode<synchronous>, transform_indices = @transform_8, window_bounds = array<i64: 32, 192>}, {pipeline_mode = #tpu.pipeline_mode<synchronous>, transform_indices = @transform_9, window_bounds = array<i64: 64, 32>}, {pipeline_mode = #tpu.pipeline_mode<synchronous>, transform_indices = @transform_10, window_bounds = array<i64: 1, 32>}, {pipeline_mode = #tpu.pipeline_mode<synchronous>, transform_indices = @transform_11, window_bounds = array<i64: 1, 32>}, {pipeline_mode = #tpu.pipeline_mode<synchronous>, transform_indices = @transform_12, window_bounds = array<i64: 1, 32>}, {pipeline_mode = #tpu.pipeline_mode<synchronous>, transform_indices = @transform_13, window_bounds = array<i64: 32, 64>}, {pipeline_mode = #tpu.pipeline_mode<synchronous>, transform_indices = @transform_14, window_bounds = array<i64: 1, 64>}, {pipeline_mode = #tpu.pipeline_mode<synchronous>, transform_indices = @transform_15, window_bounds = array<i64: 64, 32>}, {pipeline_mode = #tpu.pipeline_mode<synchronous>, transform_indices = @transform_16, window_bounds = array<i64: 1, 32>}, {pipeline_mode = #tpu.pipeline_mode<synchronous>, transform_indices = @transform_17, window_bounds = array<i64: 8, 32>}, {pipeline_mode = #tpu.pipeline_mode<synchronous>, transform_indices = @transform_18, window_bounds = array<i64: 8, 1>}, {pipeline_mode = #tpu.pipeline_mode<synchronous>, transform_indices = @transform_19, window_bounds = array<i64: 64, 8>}, {pipeline_mode = #tpu.pipeline_mode<synchronous>, transform_indices = @transform_20, window_bounds = array<i64: 64, 1>}, {pipeline_mode = #tpu.pipeline_mode<synchronous>, transform_indices = @transform_21, window_bounds = array<i64: 16, 8>}, {pipeline_mode = #tpu.pipeline_mode<synchronous>, transform_indices = @transform_22, window_bounds = array<i64: 16, 1>}, {pipeline_mode = #tpu.pipeline_mode<synchronous>, transform_indices = @transform_23, window_bounds = array<i64: 16, 1>}, {pipeline_mode = #tpu.pipeline_mode<synchronous>, transform_indices = @transform_24, window_bounds = array<i64: 16, 9>}, {pipeline_mode = #tpu.pipeline_mode<synchronous>, transform_indices = @transform_25, window_bounds = array<i64: 16, 1>}, {pipeline_mode = #tpu.pipeline_mode<synchronous>, transform_indices = @transform_26, window_bounds = array<i64: 16, 1>}, {pipeline_mode = #tpu.pipeline_mode<synchronous>, transform_indices = @transform_27, window_bounds = array<i64: 8, 16>}, {pipeline_mode = #tpu.pipeline_mode<synchronous>, transform_indices = @transform_28, window_bounds = array<i64: 8, 1>}, {pipeline_mode = #tpu.pipeline_mode<synchronous>, transform_indices = @transform_29, window_bounds = array<i64: 8, 1>}, {pipeline_mode = #tpu.pipeline_mode<synchronous>, transform_indices = @transform_30, window_bounds = array<i64: 32, 16>}, {pipeline_mode = #tpu.pipeline_mode<synchronous>, transform_indices = @transform_31, window_bounds = array<i64: 1, 16>}, {pipeline_mode = #tpu.pipeline_mode<synchronous>, transform_indices = @transform_32, window_bounds = array<i64: 32, 16>}, {pipeline_mode = #tpu.pipeline_mode<synchronous>, transform_indices = @transform_33, window_bounds = array<i64: 1, 16>}, {pipeline_mode = #tpu.pipeline_mode<synchronous>, transform_indices = @transform_34, window_bounds = array<i64: 8, 16>}, {pipeline_mode = #tpu.pipeline_mode<synchronous>, transform_indices = @transform_35, window_bounds = array<i64: 8, 1>}, {transform_indices = @transform_36, window_bounds = array<i64: 1, 8, 256>}, {transform_indices = @transform_37, window_bounds = array<i64: 1, 6, 32>}]} {
    %c0 = arith.constant 0 : index
    %c0_0 = arith.constant 0 : index
    %c0_1 = arith.constant 0 : index
    %0 = vector.load %arg1[%c0, %c0_0, %c0_1] : memref<1x8x256xf32, #tpu.memory_space<vmem>>, vector<1x8x256xf32>
    %1 = vector.shape_cast %0 : vector<1x8x256xf32> to vector<8x256xf32>
    %c0_2 = arith.constant 0 : index
    %c0_3 = arith.constant 0 : index
    %c0_4 = arith.constant 0 : index
    %2 = vector.load %arg2[%c0_2, %c0_3, %c0_4] : memref<1x6x32xf32, #tpu.memory_space<vmem>>, vector<1x6x32xf32>
    %3 = vector.shape_cast %2 : vector<1x6x32xf32> to vector<6x32xf32>
    %c0_5 = arith.constant 0 : index
    %c0_6 = arith.constant 0 : index
    %4 = vector.load %arg3[%c0_5, %c0_6] : memref<32x16xf32, #tpu.memory_space<vmem>>, vector<32x16xf32>
    %cst = arith.constant dense<0.000000e+00> : vector<6x16xf32>
    %5 = tpu.matmul %3, %4, %cst {dimension_numbers = #tpu.dot_dimension_numbers<[1], [0], [0], [1], [0, 0, 1, 1], [], []>} : vector<6x32xf32>, vector<32x16xf32>, vector<6x16xf32> -> vector<6x16xf32>
    %c0_7 = arith.constant 0 : index
    %c0_8 = arith.constant 0 : index
    %6 = vector.load %arg4[%c0_7, %c0_8] : memref<1x16xf32, #tpu.memory_space<vmem>>, vector<1x16xf32>
    %7 = vector.broadcast %6 : vector<1x16xf32> to vector<6x16xf32>
    %8 = arith.addf %5, %7 : vector<6x16xf32>
    %c0_9 = arith.constant 0 : index
    %c0_10 = arith.constant 0 : index
    %9 = vector.load %arg5[%c0_9, %c0_10] : memref<16x32xf32, #tpu.memory_space<vmem>>, vector<16x32xf32>
    %cst_11 = arith.constant 0.000000e+00 : f32
    %10 = vector.broadcast %cst_11 : f32 to vector<6x32xf32>
    %11 = vector.extract_strided_slice %8 {offsets = [0, 0], sizes = [6, 8], strides = [1, 1]} : vector<6x16xf32> to vector<6x8xf32>
    %cst_12 = arith.constant dense<0.000000e+00> : vector<6x256xf32>
    %12 = tpu.matmul %11, %1, %cst_12 {dimension_numbers = #tpu.dot_dimension_numbers<[1], [0], [0], [1], [0, 0, 1, 1], [], []>} : vector<6x8xf32>, vector<8x256xf32>, vector<6x256xf32> -> vector<6x256xf32>
    %cst_13 = arith.constant 0.353553385 : f32
    %13 = vector.broadcast %cst_13 : f32 to vector<6x256xf32>
    %14 = arith.mulf %12, %13 : vector<6x256xf32>
    %cst_14 = arith.constant dense<0xFF800000> : vector<6xf32>
    %15 = vector.multi_reduction <maximumf>, %14, %cst_14 [1] : vector<6x256xf32> to vector<6xf32>
    %16 = vector.shape_cast %15 : vector<6xf32> to vector<6x1xf32>
    %17 = vector.broadcast %16 : vector<6x1xf32> to vector<6x256xf32>
    %18 = arith.subf %14, %17 : vector<6x256xf32>
    %19 = math.exp %18 : vector<6x256xf32>
    %cst_15 = arith.constant dense<0.000000e+00> : vector<6xf32>
    %20 = vector.multi_reduction <add>, %19, %cst_15 [1] : vector<6x256xf32> to vector<6xf32>
    %21 = vector.shape_cast %20 : vector<6xf32> to vector<6x1xf32>
    %22 = tpu.reciprocal %21 {approx = true} : vector<6x1xf32> -> vector<6x1xf32>
    %23 = vector.broadcast %22 : vector<6x1xf32> to vector<6x256xf32>
    %24 = arith.mulf %19, %23 : vector<6x256xf32>
    %cst_16 = arith.constant dense<0.000000e+00> : vector<6x8xf32>
    %25 = tpu.matmul %24, %1, %cst_16 {dimension_numbers = #tpu.dot_dimension_numbers<[1], [1], [0], [0], [0, 0, 1, 0], [], []>} : vector<6x256xf32>, vector<8x256xf32>, vector<6x8xf32> -> vector<6x8xf32>
    %26 = vector.extract_strided_slice %9 {offsets = [0, 0], sizes = [8, 32], strides = [1, 1]} : vector<16x32xf32> to vector<8x32xf32>
    %cst_17 = arith.constant dense<0.000000e+00> : vector<6x32xf32>
    %27 = tpu.matmul %25, %26, %cst_17 {dimension_numbers = #tpu.dot_dimension_numbers<[1], [0], [0], [1], [0, 0, 1, 1], [], []>} : vector<6x8xf32>, vector<8x32xf32>, vector<6x32xf32> -> vector<6x32xf32>
    %28 = arith.addf %10, %27 : vector<6x32xf32>
    %29 = vector.extract_strided_slice %8 {offsets = [0, 8], sizes = [6, 8], strides = [1, 1]} : vector<6x16xf32> to vector<6x8xf32>
    %cst_18 = arith.constant dense<0.000000e+00> : vector<6x256xf32>
    %30 = tpu.matmul %29, %1, %cst_18 {dimension_numbers = #tpu.dot_dimension_numbers<[1], [0], [0], [1], [0, 0, 1, 1], [], []>} : vector<6x8xf32>, vector<8x256xf32>, vector<6x256xf32> -> vector<6x256xf32>
    %cst_19 = arith.constant 0.353553385 : f32
    %31 = vector.broadcast %cst_19 : f32 to vector<6x256xf32>
    %32 = arith.mulf %30, %31 : vector<6x256xf32>
    %cst_20 = arith.constant dense<0xFF800000> : vector<6xf32>
    %33 = vector.multi_reduction <maximumf>, %32, %cst_20 [1] : vector<6x256xf32> to vector<6xf32>
    %34 = vector.shape_cast %33 : vector<6xf32> to vector<6x1xf32>
    %35 = vector.broadcast %34 : vector<6x1xf32> to vector<6x256xf32>
    %36 = arith.subf %32, %35 : vector<6x256xf32>
    %37 = math.exp %36 : vector<6x256xf32>
    %cst_21 = arith.constant dense<0.000000e+00> : vector<6xf32>
    %38 = vector.multi_reduction <add>, %37, %cst_21 [1] : vector<6x256xf32> to vector<6xf32>
    %39 = vector.shape_cast %38 : vector<6xf32> to vector<6x1xf32>
    %40 = tpu.reciprocal %39 {approx = true} : vector<6x1xf32> -> vector<6x1xf32>
    %41 = vector.broadcast %40 : vector<6x1xf32> to vector<6x256xf32>
    %42 = arith.mulf %37, %41 : vector<6x256xf32>
    %cst_22 = arith.constant dense<0.000000e+00> : vector<6x8xf32>
    %43 = tpu.matmul %42, %1, %cst_22 {dimension_numbers = #tpu.dot_dimension_numbers<[1], [1], [0], [0], [0, 0, 1, 0], [], []>} : vector<6x256xf32>, vector<8x256xf32>, vector<6x8xf32> -> vector<6x8xf32>
    %44 = vector.extract_strided_slice %9 {offsets = [8, 0], sizes = [8, 32], strides = [1, 1]} : vector<16x32xf32> to vector<8x32xf32>
    %cst_23 = arith.constant dense<0.000000e+00> : vector<6x32xf32>
    %45 = tpu.matmul %43, %44, %cst_23 {dimension_numbers = #tpu.dot_dimension_numbers<[1], [0], [0], [1], [0, 0, 1, 1], [], []>} : vector<6x8xf32>, vector<8x32xf32>, vector<6x32xf32> -> vector<6x32xf32>
    %46 = arith.addf %28, %45 : vector<6x32xf32>
    %47 = arith.addf %3, %46 : vector<6x32xf32>
    %c0_24 = arith.constant 0 : index
    %c0_25 = arith.constant 0 : index
    %48 = vector.load %arg6[%c0_24, %c0_25] : memref<1x32xf32, #tpu.memory_space<vmem>>, vector<1x32xf32>
    %49 = vector.broadcast %48 : vector<1x32xf32> to vector<6x32xf32>
    %50 = arith.addf %47, %49 : vector<6x32xf32>
    %cst_26 = arith.constant dense<0.000000e+00> : vector<6xf32>
    %51 = vector.multi_reduction <add>, %50, %cst_26 [1] : vector<6x32xf32> to vector<6xf32>
    %52 = vector.shape_cast %51 : vector<6xf32> to vector<6x1xf32>
    %cst_27 = arith.constant 3.200000e+01 : f32
    %53 = vector.broadcast %cst_27 : f32 to vector<6x1xf32>
    %54 = arith.divf %52, %53 : vector<6x1xf32>
    %55 = vector.broadcast %54 : vector<6x1xf32> to vector<6x32xf32>
    %56 = arith.subf %50, %55 : vector<6x32xf32>
    %57 = arith.mulf %56, %56 : vector<6x32xf32>
    %cst_28 = arith.constant dense<0.000000e+00> : vector<6xf32>
    %58 = vector.multi_reduction <add>, %57, %cst_28 [1] : vector<6x32xf32> to vector<6xf32>
    %59 = vector.shape_cast %58 : vector<6xf32> to vector<6x1xf32>
    %cst_29 = arith.constant 3.200000e+01 : f32
    %60 = vector.broadcast %cst_29 : f32 to vector<6x1xf32>
    %61 = arith.divf %59, %60 : vector<6x1xf32>
    %62 = vector.broadcast %54 : vector<6x1xf32> to vector<6x32xf32>
    %63 = arith.subf %50, %62 : vector<6x32xf32>
    %cst_30 = arith.constant 9.99999974E-6 : f32
    %64 = vector.broadcast %cst_30 : f32 to vector<6x1xf32>
    %65 = arith.addf %61, %64 : vector<6x1xf32>
    %66 = math.rsqrt %65 : vector<6x1xf32>
    %67 = vector.broadcast %66 : vector<6x1xf32> to vector<6x32xf32>
    %68 = arith.mulf %63, %67 : vector<6x32xf32>
    %c0_31 = arith.constant 0 : index
    %c0_32 = arith.constant 0 : index
    %69 = vector.load %arg7[%c0_31, %c0_32] : memref<1x32xf32, #tpu.memory_space<vmem>>, vector<1x32xf32>
    %70 = vector.broadcast %69 : vector<1x32xf32> to vector<6x32xf32>
    %71 = arith.mulf %68, %70 : vector<6x32xf32>
    %c0_33 = arith.constant 0 : index
    %c0_34 = arith.constant 0 : index
    %72 = vector.load %arg8[%c0_33, %c0_34] : memref<1x32xf32, #tpu.memory_space<vmem>>, vector<1x32xf32>
    %73 = vector.broadcast %72 : vector<1x32xf32> to vector<6x32xf32>
    %74 = arith.addf %71, %73 : vector<6x32xf32>
    %c0_35 = arith.constant 0 : index
    %c0_36 = arith.constant 0 : index
    %75 = vector.load %arg9[%c0_35, %c0_36] : memref<32x192xf32, #tpu.memory_space<vmem>>, vector<32x192xf32>
    %cst_37 = arith.constant dense<0.000000e+00> : vector<6x192xf32>
    %76 = tpu.matmul %74, %75, %cst_37 {dimension_numbers = #tpu.dot_dimension_numbers<[1], [0], [0], [1], [0, 0, 1, 1], [], []>} : vector<6x32xf32>, vector<32x192xf32>, vector<6x192xf32> -> vector<6x192xf32>
    %c0_38 = arith.constant 0 : index
    %c0_39 = arith.constant 0 : index
    %77 = vector.load %arg10[%c0_38, %c0_39] : memref<64x32xf32, #tpu.memory_space<vmem>>, vector<64x32xf32>
    %cst_40 = arith.constant 0.000000e+00 : f32
    %78 = vector.broadcast %cst_40 : f32 to vector<6x32xf32>
    %79 = vector.extract_strided_slice %76 {offsets = [0, 0], sizes = [6, 32], strides = [1, 1]} : vector<6x192xf32> to vector<6x32xf32>
    %80 = vector.extract_strided_slice %76 {offsets = [0, 64], sizes = [6, 32], strides = [1, 1]} : vector<6x192xf32> to vector<6x32xf32>
    %81 = vector.extract_strided_slice %76 {offsets = [0, 128], sizes = [6, 32], strides = [1, 1]} : vector<6x192xf32> to vector<6x32xf32>
    %cst_41 = arith.constant dense<0.000000e+00> : vector<6x6xf32>
    %82 = tpu.matmul %79, %80, %cst_41 {dimension_numbers = #tpu.dot_dimension_numbers<[1], [1], [0], [0], [0, 0, 1, 0], [], []>} : vector<6x32xf32>, vector<6x32xf32>, vector<6x6xf32> -> vector<6x6xf32>
    %cst_42 = arith.constant 0.176776692 : f32
    %83 = vector.broadcast %cst_42 : f32 to vector<6x6xf32>
    %84 = arith.mulf %82, %83 : vector<6x6xf32>
    %cst_43 = arith.constant dense<0xFF800000> : vector<6xf32>
    %85 = vector.multi_reduction <maximumf>, %84, %cst_43 [1] : vector<6x6xf32> to vector<6xf32>
    %86 = vector.shape_cast %85 : vector<6xf32> to vector<6x1xf32>
    %87 = vector.broadcast %86 : vector<6x1xf32> to vector<6x6xf32>
    %88 = arith.subf %84, %87 : vector<6x6xf32>
    %89 = math.exp %88 : vector<6x6xf32>
    %cst_44 = arith.constant dense<0.000000e+00> : vector<6xf32>
    %90 = vector.multi_reduction <add>, %89, %cst_44 [1] : vector<6x6xf32> to vector<6xf32>
    %91 = vector.shape_cast %90 : vector<6xf32> to vector<6x1xf32>
    %92 = tpu.reciprocal %91 {approx = true} : vector<6x1xf32> -> vector<6x1xf32>
    %93 = vector.broadcast %92 : vector<6x1xf32> to vector<6x6xf32>
    %94 = arith.mulf %89, %93 : vector<6x6xf32>
    %cst_45 = arith.constant dense<0.000000e+00> : vector<6x32xf32>
    %95 = tpu.matmul %94, %81, %cst_45 {dimension_numbers = #tpu.dot_dimension_numbers<[1], [0], [0], [1], [0, 0, 1, 1], [], []>} : vector<6x6xf32>, vector<6x32xf32>, vector<6x32xf32> -> vector<6x32xf32>
    %96 = vector.extract_strided_slice %77 {offsets = [0, 0], sizes = [32, 32], strides = [1, 1]} : vector<64x32xf32> to vector<32x32xf32>
    %cst_46 = arith.constant dense<0.000000e+00> : vector<6x32xf32>
    %97 = tpu.matmul %95, %96, %cst_46 {dimension_numbers = #tpu.dot_dimension_numbers<[1], [0], [0], [1], [0, 0, 1, 1], [], []>} : vector<6x32xf32>, vector<32x32xf32>, vector<6x32xf32> -> vector<6x32xf32>
    %98 = arith.addf %78, %97 : vector<6x32xf32>
    %99 = vector.extract_strided_slice %76 {offsets = [0, 32], sizes = [6, 32], strides = [1, 1]} : vector<6x192xf32> to vector<6x32xf32>
    %100 = vector.extract_strided_slice %76 {offsets = [0, 96], sizes = [6, 32], strides = [1, 1]} : vector<6x192xf32> to vector<6x32xf32>
    %101 = vector.extract_strided_slice %76 {offsets = [0, 160], sizes = [6, 32], strides = [1, 1]} : vector<6x192xf32> to vector<6x32xf32>
    %cst_47 = arith.constant dense<0.000000e+00> : vector<6x6xf32>
    %102 = tpu.matmul %99, %100, %cst_47 {dimension_numbers = #tpu.dot_dimension_numbers<[1], [1], [0], [0], [0, 0, 1, 0], [], []>} : vector<6x32xf32>, vector<6x32xf32>, vector<6x6xf32> -> vector<6x6xf32>
    %cst_48 = arith.constant 0.176776692 : f32
    %103 = vector.broadcast %cst_48 : f32 to vector<6x6xf32>
    %104 = arith.mulf %102, %103 : vector<6x6xf32>
    %cst_49 = arith.constant dense<0xFF800000> : vector<6xf32>
    %105 = vector.multi_reduction <maximumf>, %104, %cst_49 [1] : vector<6x6xf32> to vector<6xf32>
    %106 = vector.shape_cast %105 : vector<6xf32> to vector<6x1xf32>
    %107 = vector.broadcast %106 : vector<6x1xf32> to vector<6x6xf32>
    %108 = arith.subf %104, %107 : vector<6x6xf32>
    %109 = math.exp %108 : vector<6x6xf32>
    %cst_50 = arith.constant dense<0.000000e+00> : vector<6xf32>
    %110 = vector.multi_reduction <add>, %109, %cst_50 [1] : vector<6x6xf32> to vector<6xf32>
    %111 = vector.shape_cast %110 : vector<6xf32> to vector<6x1xf32>
    %112 = tpu.reciprocal %111 {approx = true} : vector<6x1xf32> -> vector<6x1xf32>
    %113 = vector.broadcast %112 : vector<6x1xf32> to vector<6x6xf32>
    %114 = arith.mulf %109, %113 : vector<6x6xf32>
    %cst_51 = arith.constant dense<0.000000e+00> : vector<6x32xf32>
    %115 = tpu.matmul %114, %101, %cst_51 {dimension_numbers = #tpu.dot_dimension_numbers<[1], [0], [0], [1], [0, 0, 1, 1], [], []>} : vector<6x6xf32>, vector<6x32xf32>, vector<6x32xf32> -> vector<6x32xf32>
    %116 = vector.extract_strided_slice %77 {offsets = [32, 0], sizes = [32, 32], strides = [1, 1]} : vector<64x32xf32> to vector<32x32xf32>
    %cst_52 = arith.constant dense<0.000000e+00> : vector<6x32xf32>
    %117 = tpu.matmul %115, %116, %cst_52 {dimension_numbers = #tpu.dot_dimension_numbers<[1], [0], [0], [1], [0, 0, 1, 1], [], []>} : vector<6x32xf32>, vector<32x32xf32>, vector<6x32xf32> -> vector<6x32xf32>
    %118 = arith.addf %98, %117 : vector<6x32xf32>
    %119 = arith.addf %50, %118 : vector<6x32xf32>
    %c0_53 = arith.constant 0 : index
    %c0_54 = arith.constant 0 : index
    %120 = vector.load %arg11[%c0_53, %c0_54] : memref<1x32xf32, #tpu.memory_space<vmem>>, vector<1x32xf32>
    %121 = vector.broadcast %120 : vector<1x32xf32> to vector<6x32xf32>
    %122 = arith.addf %119, %121 : vector<6x32xf32>
    %cst_55 = arith.constant dense<0.000000e+00> : vector<6xf32>
    %123 = vector.multi_reduction <add>, %122, %cst_55 [1] : vector<6x32xf32> to vector<6xf32>
    %124 = vector.shape_cast %123 : vector<6xf32> to vector<6x1xf32>
    %cst_56 = arith.constant 3.200000e+01 : f32
    %125 = vector.broadcast %cst_56 : f32 to vector<6x1xf32>
    %126 = arith.divf %124, %125 : vector<6x1xf32>
    %127 = vector.broadcast %126 : vector<6x1xf32> to vector<6x32xf32>
    %128 = arith.subf %122, %127 : vector<6x32xf32>
    %129 = arith.mulf %128, %128 : vector<6x32xf32>
    %cst_57 = arith.constant dense<0.000000e+00> : vector<6xf32>
    %130 = vector.multi_reduction <add>, %129, %cst_57 [1] : vector<6x32xf32> to vector<6xf32>
    %131 = vector.shape_cast %130 : vector<6xf32> to vector<6x1xf32>
    %cst_58 = arith.constant 3.200000e+01 : f32
    %132 = vector.broadcast %cst_58 : f32 to vector<6x1xf32>
    %133 = arith.divf %131, %132 : vector<6x1xf32>
    %134 = vector.broadcast %126 : vector<6x1xf32> to vector<6x32xf32>
    %135 = arith.subf %122, %134 : vector<6x32xf32>
    %cst_59 = arith.constant 9.99999974E-6 : f32
    %136 = vector.broadcast %cst_59 : f32 to vector<6x1xf32>
    %137 = arith.addf %133, %136 : vector<6x1xf32>
    %138 = math.rsqrt %137 : vector<6x1xf32>
    %139 = vector.broadcast %138 : vector<6x1xf32> to vector<6x32xf32>
    %140 = arith.mulf %135, %139 : vector<6x32xf32>
    %c0_60 = arith.constant 0 : index
    %c0_61 = arith.constant 0 : index
    %141 = vector.load %arg12[%c0_60, %c0_61] : memref<1x32xf32, #tpu.memory_space<vmem>>, vector<1x32xf32>
    %142 = vector.broadcast %141 : vector<1x32xf32> to vector<6x32xf32>
    %143 = arith.mulf %140, %142 : vector<6x32xf32>
    %c0_62 = arith.constant 0 : index
    %c0_63 = arith.constant 0 : index
    %144 = vector.load %arg13[%c0_62, %c0_63] : memref<1x32xf32, #tpu.memory_space<vmem>>, vector<1x32xf32>
    %145 = vector.broadcast %144 : vector<1x32xf32> to vector<6x32xf32>
    %146 = arith.addf %143, %145 : vector<6x32xf32>
    %c0_64 = arith.constant 0 : index
    %c0_65 = arith.constant 0 : index
    %147 = vector.load %arg14[%c0_64, %c0_65] : memref<32x64xf32, #tpu.memory_space<vmem>>, vector<32x64xf32>
    %cst_66 = arith.constant dense<0.000000e+00> : vector<6x64xf32>
    %148 = tpu.matmul %146, %147, %cst_66 {dimension_numbers = #tpu.dot_dimension_numbers<[1], [0], [0], [1], [0, 0, 1, 1], [], []>} : vector<6x32xf32>, vector<32x64xf32>, vector<6x64xf32> -> vector<6x64xf32>
    %c0_67 = arith.constant 0 : index
    %c0_68 = arith.constant 0 : index
    %149 = vector.load %arg15[%c0_67, %c0_68] : memref<1x64xf32, #tpu.memory_space<vmem>>, vector<1x64xf32>
    %150 = vector.broadcast %149 : vector<1x64xf32> to vector<6x64xf32>
    %151 = arith.addf %148, %150 : vector<6x64xf32>
    %cst_69 = arith.constant 5.000000e-01 : f32
    %152 = vector.broadcast %cst_69 : f32 to vector<6x64xf32>
    %153 = arith.mulf %152, %151 : vector<6x64xf32>
    %cst_70 = arith.constant 4.471500e-02 : f32
    %154 = vector.broadcast %cst_70 : f32 to vector<6x64xf32>
    %155 = arith.mulf %154, %151 : vector<6x64xf32>
    %156 = arith.mulf %155, %151 : vector<6x64xf32>
    %157 = arith.mulf %156, %151 : vector<6x64xf32>
    %158 = arith.addf %151, %157 : vector<6x64xf32>
    %cst_71 = arith.constant 0.797884583 : f32
    %159 = vector.broadcast %cst_71 : f32 to vector<6x64xf32>
    %160 = arith.mulf %159, %158 : vector<6x64xf32>
    %161 = math.tanh %160 : vector<6x64xf32>
    %cst_72 = arith.constant 1.000000e+00 : f32
    %162 = vector.broadcast %cst_72 : f32 to vector<6x64xf32>
    %163 = arith.addf %162, %161 : vector<6x64xf32>
    %164 = arith.mulf %153, %163 : vector<6x64xf32>
    %c0_73 = arith.constant 0 : index
    %c0_74 = arith.constant 0 : index
    %165 = vector.load %arg16[%c0_73, %c0_74] : memref<64x32xf32, #tpu.memory_space<vmem>>, vector<64x32xf32>
    %cst_75 = arith.constant dense<0.000000e+00> : vector<6x32xf32>
    %166 = tpu.matmul %164, %165, %cst_75 {dimension_numbers = #tpu.dot_dimension_numbers<[1], [0], [0], [1], [0, 0, 1, 1], [], []>} : vector<6x64xf32>, vector<64x32xf32>, vector<6x32xf32> -> vector<6x32xf32>
    %c0_76 = arith.constant 0 : index
    %c0_77 = arith.constant 0 : index
    %167 = vector.load %arg17[%c0_76, %c0_77] : memref<1x32xf32, #tpu.memory_space<vmem>>, vector<1x32xf32>
    %168 = vector.broadcast %167 : vector<1x32xf32> to vector<6x32xf32>
    %169 = arith.addf %166, %168 : vector<6x32xf32>
    %170 = arith.addf %122, %169 : vector<6x32xf32>
    %c0_78 = arith.constant 0 : index
    %c0_79 = arith.constant 0 : index
    %c0_80 = arith.constant 0 : index
    %171 = vector.load %arg38[%c0_78, %c0_79, %c0_80] : memref<1x6x32xf32, #tpu.memory_space<vmem>>, vector<1x6x32xf32>
    %172 = vector.shape_cast %171 : vector<1x6x32xf32> to vector<6x32xf32>
    %173 = vector.shape_cast %170 : vector<6x32xf32> to vector<1x6x32xf32>
    tpu.vector_store %arg38[%c0_78, %c0_79, %c0_80], %173 {strides = array<i32>} : memref<1x6x32xf32, #tpu.memory_space<vmem>>, vector<1x6x32xf32>,
    %c0_81 = arith.constant 0 : index
    %c0_82 = arith.constant 0 : index
    %174 = vector.load %arg18[%c0_81, %c0_82] : memref<8x32xf32, #tpu.memory_space<vmem>>, vector<8x32xf32>
    %cst_83 = arith.constant dense<0.000000e+00> : vector<8x6xf32>
    %175 = tpu.matmul %174, %170, %cst_83 {dimension_numbers = #tpu.dot_dimension_numbers<[1], [1], [0], [0], [0, 0, 1, 0], [], []>} : vector<8x32xf32>, vector<6x32xf32>, vector<8x6xf32> -> vector<8x6xf32>
    %176 = vector.extract_strided_slice %175 {offsets = [0, 0], sizes = [8, 1], strides = [1, 1]} : vector<8x6xf32> to vector<8x1xf32>
    %c0_84 = arith.constant 0 : index
    %c0_85 = arith.constant 0 : index
    %177 = vector.load %arg19[%c0_84, %c0_85] : memref<8x1xf32, #tpu.memory_space<vmem>>, vector<8x1xf32>
    %178 = arith.addf %176, %177 : vector<8x1xf32>
    %cst_86 = arith.constant 0.000000e+00 : f32
    %179 = vector.broadcast %cst_86 : f32 to vector<8x1xf32>
    %180 = arith.maximumf %178, %179 : vector<8x1xf32>
    %c0_87 = arith.constant 0 : index
    %c0_88 = arith.constant 0 : index
    %181 = vector.load %arg20[%c0_87, %c0_88] : memref<64x8xf32, #tpu.memory_space<vmem>>, vector<64x8xf32>
    %cst_89 = arith.constant dense<0.000000e+00> : vector<64x1xf32>
    %182 = tpu.matmul %181, %180, %cst_89 {dimension_numbers = #tpu.dot_dimension_numbers<[1], [0], [0], [1], [0, 0, 1, 1], [], []>} : vector<64x8xf32>, vector<8x1xf32>, vector<64x1xf32> -> vector<64x1xf32>
    %c0_90 = arith.constant 0 : index
    %c0_91 = arith.constant 0 : index
    %183 = vector.load %arg21[%c0_90, %c0_91] : memref<64x1xf32, #tpu.memory_space<vmem>>, vector<64x1xf32>
    %184 = arith.addf %182, %183 : vector<64x1xf32>
    %cst_92 = arith.constant 0.000000e+00 : f32
    %185 = vector.broadcast %cst_92 : f32 to vector<64x1xf32>
    %186 = arith.subf %185, %184 : vector<64x1xf32>
    %187 = math.exp %186 : vector<64x1xf32>
    %cst_93 = arith.constant 1.000000e+00 : f32
    %188 = vector.broadcast %cst_93 : f32 to vector<64x1xf32>
    %189 = arith.addf %188, %187 : vector<64x1xf32>
    %190 = tpu.reciprocal %189 {approx = true} : vector<64x1xf32> -> vector<64x1xf32>
    %cst_94 = arith.constant 2.000000e+00 : f32
    %191 = vector.broadcast %cst_94 : f32 to vector<64x1xf32>
    %192 = arith.mulf %191, %190 : vector<64x1xf32>
    %cst_95 = arith.constant 1.000000e+00 : f32
    %193 = vector.broadcast %cst_95 : f32 to vector<64x1xf32>
    %194 = arith.subf %192, %193 : vector<64x1xf32>
    %195 = vector.extract_strided_slice %194 {offsets = [0, 0], sizes = [16, 1], strides = [1, 1]} : vector<64x1xf32> to vector<16x1xf32>
    %cst_96 = arith.constant 1.000000e+00 : f32
    %196 = vector.broadcast %cst_96 : f32 to vector<16x1xf32>
    %197 = arith.addf %195, %196 : vector<16x1xf32>
    %198 = vector.extract_strided_slice %194 {offsets = [16, 0], sizes = [16, 1], strides = [1, 1]} : vector<64x1xf32> to vector<16x1xf32>
    %199 = vector.extract_strided_slice %194 {offsets = [32, 0], sizes = [16, 1], strides = [1, 1]} : vector<64x1xf32> to vector<16x1xf32>
    %cst_97 = arith.constant 5.000000e-01 : f32
    %200 = vector.broadcast %cst_97 : f32 to vector<16x1xf32>
    %201 = arith.mulf %199, %200 : vector<16x1xf32>
    %202 = vector.extract_strided_slice %194 {offsets = [48, 0], sizes = [16, 1], strides = [1, 1]} : vector<64x1xf32> to vector<16x1xf32>
    %cst_98 = arith.constant 5.000000e-01 : f32
    %203 = vector.broadcast %cst_98 : f32 to vector<16x1xf32>
    %204 = arith.mulf %202, %203 : vector<16x1xf32>
    %c0_99 = arith.constant 0 : index
    %c0_100 = arith.constant 0 : index
    %205 = vector.load %arg22[%c0_99, %c0_100] : memref<16x8xf32, #tpu.memory_space<vmem>>, vector<16x8xf32>
    %cst_101 = arith.constant dense<0.000000e+00> : vector<16x256xf32>
    %206 = tpu.matmul %205, %1, %cst_101 {dimension_numbers = #tpu.dot_dimension_numbers<[1], [0], [0], [1], [0, 0, 1, 1], [], []>} : vector<16x8xf32>, vector<8x256xf32>, vector<16x256xf32> -> vector<16x256xf32>
    %c0_102 = arith.constant 0 : index
    %c0_103 = arith.constant 0 : index
    %207 = vector.load %arg23[%c0_102, %c0_103] : memref<16x1xf32, #tpu.memory_space<vmem>>, vector<16x1xf32>
    %208 = vector.broadcast %207 : vector<16x1xf32> to vector<16x256xf32>
    %209 = arith.mulf %206, %208 : vector<16x256xf32>
    %c0_104 = arith.constant 0 : index
    %c0_105 = arith.constant 0 : index
    %210 = vector.load %arg24[%c0_104, %c0_105] : memref<16x1xf32, #tpu.memory_space<vmem>>, vector<16x1xf32>
    %211 = vector.broadcast %210 : vector<16x1xf32> to vector<16x256xf32>
    %212 = arith.addf %209, %211 : vector<16x256xf32>
    %213 = vector.broadcast %197 : vector<16x1xf32> to vector<16x256xf32>
    %214 = arith.mulf %212, %213 : vector<16x256xf32>
    %215 = vector.broadcast %201 : vector<16x1xf32> to vector<16x256xf32>
    %216 = arith.addf %214, %215 : vector<16x256xf32>
    %217 = vector.broadcast %198 : vector<16x1xf32> to vector<16x256xf32>
    %218 = arith.mulf %212, %217 : vector<16x256xf32>
    %219 = vector.broadcast %204 : vector<16x1xf32> to vector<16x256xf32>
    %220 = arith.addf %218, %219 : vector<16x256xf32>
    %221 = arith.maximumf %216, %220 : vector<16x256xf32>
    %222 = tpu.iota {dimensions = array<i32: 1>} : vector<1x256xi32>
    %c15_i32 = arith.constant 15 : i32
    %223 = vector.broadcast %c15_i32 : i32 to vector<1x256xi32>
    %224 = arith.andi %222, %223 : vector<1x256xi32>
    %c0_106 = arith.constant 0 : index
    %c0_107 = arith.constant 0 : index
    %225 = vector.load %arg25[%c0_106, %c0_107] : memref<16x9xf32, #tpu.memory_space<vmem>>, vector<16x9xf32>
    %cst_108 = arith.constant 0.000000e+00 : f32
    %226 = vector.broadcast %cst_108 : f32 to vector<16x256xf32>
    %c17_i32 = arith.constant 17 : i32
    %227 = tpu.dynamic_rotate %221 by %c17_i32 dim 1 : vector<16x256xf32>, i32 -> vector<16x256xf32>
    %c16_i32 = arith.constant 16 : i32
    %228 = vector.broadcast %c16_i32 : i32 to vector<1x256xi32>
    %229 = arith.cmpi sge, %222, %228 : vector<1x256xi32>
    %c0_i32 = arith.constant 0 : i32
    %230 = vector.broadcast %c0_i32 : i32 to vector<1x256xi32>
    %231 = arith.cmpi sgt, %224, %230 : vector<1x256xi32>
    %232 = arith.andi %229, %231 : vector<1x256xi1>
    %cst_109 = arith.constant 0.000000e+00 : f32
    %233 = vector.shape_cast %232 : vector<1x256xi1> to vector<1x256xi1>
    %234 = vector.broadcast %233 : vector<1x256xi1> to vector<16x256xi1>
    %235 = vector.broadcast %cst_109 : f32 to vector<16x256xf32>
    %236 = arith.select %234, %227, %235 : vector<16x256xi1>, vector<16x256xf32>
    %237 = vector.extract_strided_slice %225 {offsets = [0, 0], sizes = [16, 1], strides = [1, 1]} : vector<16x9xf32> to vector<16x1xf32>
    %238 = vector.broadcast %237 : vector<16x1xf32> to vector<16x256xf32>
    %239 = arith.mulf %236, %238 : vector<16x256xf32>
    %240 = arith.addf %226, %239 : vector<16x256xf32>
    %c16_i32_110 = arith.constant 16 : i32
    %241 = tpu.dynamic_rotate %221 by %c16_i32_110 dim 1 : vector<16x256xf32>, i32 -> vector<16x256xf32>
    %c16_i32_111 = arith.constant 16 : i32
    %242 = vector.broadcast %c16_i32_111 : i32 to vector<1x256xi32>
    %243 = arith.cmpi sge, %222, %242 : vector<1x256xi32>
    %cst_112 = arith.constant 0.000000e+00 : f32
    %244 = vector.shape_cast %243 : vector<1x256xi1> to vector<1x256xi1>
    %245 = vector.broadcast %244 : vector<1x256xi1> to vector<16x256xi1>
    %246 = vector.broadcast %cst_112 : f32 to vector<16x256xf32>
    %247 = arith.select %245, %241, %246 : vector<16x256xi1>, vector<16x256xf32>
    %248 = vector.extract_strided_slice %225 {offsets = [0, 1], sizes = [16, 1], strides = [1, 1]} : vector<16x9xf32> to vector<16x1xf32>
    %249 = vector.broadcast %248 : vector<16x1xf32> to vector<16x256xf32>
    %250 = arith.mulf %247, %249 : vector<16x256xf32>
    %251 = arith.addf %240, %250 : vector<16x256xf32>
    %c15_i32_113 = arith.constant 15 : i32
    %252 = tpu.dynamic_rotate %221 by %c15_i32_113 dim 1 : vector<16x256xf32>, i32 -> vector<16x256xf32>
    %c16_i32_114 = arith.constant 16 : i32
    %253 = vector.broadcast %c16_i32_114 : i32 to vector<1x256xi32>
    %254 = arith.cmpi sge, %222, %253 : vector<1x256xi32>
    %c15_i32_115 = arith.constant 15 : i32
    %255 = vector.broadcast %c15_i32_115 : i32 to vector<1x256xi32>
    %256 = arith.cmpi slt, %224, %255 : vector<1x256xi32>
    %257 = arith.andi %254, %256 : vector<1x256xi1>
    %cst_116 = arith.constant 0.000000e+00 : f32
    %258 = vector.shape_cast %257 : vector<1x256xi1> to vector<1x256xi1>
    %259 = vector.broadcast %258 : vector<1x256xi1> to vector<16x256xi1>
    %260 = vector.broadcast %cst_116 : f32 to vector<16x256xf32>
    %261 = arith.select %259, %252, %260 : vector<16x256xi1>, vector<16x256xf32>
    %262 = vector.extract_strided_slice %225 {offsets = [0, 2], sizes = [16, 1], strides = [1, 1]} : vector<16x9xf32> to vector<16x1xf32>
    %263 = vector.broadcast %262 : vector<16x1xf32> to vector<16x256xf32>
    %264 = arith.mulf %261, %263 : vector<16x256xf32>
    %265 = arith.addf %251, %264 : vector<16x256xf32>
    %c1_i32 = arith.constant 1 : i32
    %266 = tpu.dynamic_rotate %221 by %c1_i32 dim 1 : vector<16x256xf32>, i32 -> vector<16x256xf32>
    %c0_i32_117 = arith.constant 0 : i32
    %267 = vector.broadcast %c0_i32_117 : i32 to vector<1x256xi32>
    %268 = arith.cmpi sgt, %224, %267 : vector<1x256xi32>
    %cst_118 = arith.constant 0.000000e+00 : f32
    %269 = vector.shape_cast %268 : vector<1x256xi1> to vector<1x256xi1>
    %270 = vector.broadcast %269 : vector<1x256xi1> to vector<16x256xi1>
    %271 = vector.broadcast %cst_118 : f32 to vector<16x256xf32>
    %272 = arith.select %270, %266, %271 : vector<16x256xi1>, vector<16x256xf32>
    %273 = vector.extract_strided_slice %225 {offsets = [0, 3], sizes = [16, 1], strides = [1, 1]} : vector<16x9xf32> to vector<16x1xf32>
    %274 = vector.broadcast %273 : vector<16x1xf32> to vector<16x256xf32>
    %275 = arith.mulf %272, %274 : vector<16x256xf32>
    %276 = arith.addf %265, %275 : vector<16x256xf32>
    %277 = vector.extract_strided_slice %225 {offsets = [0, 4], sizes = [16, 1], strides = [1, 1]} : vector<16x9xf32> to vector<16x1xf32>
    %278 = vector.broadcast %277 : vector<16x1xf32> to vector<16x256xf32>
    %279 = arith.mulf %221, %278 : vector<16x256xf32>
    %280 = arith.addf %276, %279 : vector<16x256xf32>
    %c255_i32 = arith.constant 255 : i32
    %281 = tpu.dynamic_rotate %221 by %c255_i32 dim 1 : vector<16x256xf32>, i32 -> vector<16x256xf32>
    %c15_i32_119 = arith.constant 15 : i32
    %282 = vector.broadcast %c15_i32_119 : i32 to vector<1x256xi32>
    %283 = arith.cmpi slt, %224, %282 : vector<1x256xi32>
    %cst_120 = arith.constant 0.000000e+00 : f32
    %284 = vector.shape_cast %283 : vector<1x256xi1> to vector<1x256xi1>
    %285 = vector.broadcast %284 : vector<1x256xi1> to vector<16x256xi1>
    %286 = vector.broadcast %cst_120 : f32 to vector<16x256xf32>
    %287 = arith.select %285, %281, %286 : vector<16x256xi1>, vector<16x256xf32>
    %288 = vector.extract_strided_slice %225 {offsets = [0, 5], sizes = [16, 1], strides = [1, 1]} : vector<16x9xf32> to vector<16x1xf32>
    %289 = vector.broadcast %288 : vector<16x1xf32> to vector<16x256xf32>
    %290 = arith.mulf %287, %289 : vector<16x256xf32>
    %291 = arith.addf %280, %290 : vector<16x256xf32>
    %c241_i32 = arith.constant 241 : i32
    %292 = tpu.dynamic_rotate %221 by %c241_i32 dim 1 : vector<16x256xf32>, i32 -> vector<16x256xf32>
    %c240_i32 = arith.constant 240 : i32
    %293 = vector.broadcast %c240_i32 : i32 to vector<1x256xi32>
    %294 = arith.cmpi slt, %222, %293 : vector<1x256xi32>
    %c0_i32_121 = arith.constant 0 : i32
    %295 = vector.broadcast %c0_i32_121 : i32 to vector<1x256xi32>
    %296 = arith.cmpi sgt, %224, %295 : vector<1x256xi32>
    %297 = arith.andi %294, %296 : vector<1x256xi1>
    %cst_122 = arith.constant 0.000000e+00 : f32
    %298 = vector.shape_cast %297 : vector<1x256xi1> to vector<1x256xi1>
    %299 = vector.broadcast %298 : vector<1x256xi1> to vector<16x256xi1>
    %300 = vector.broadcast %cst_122 : f32 to vector<16x256xf32>
    %301 = arith.select %299, %292, %300 : vector<16x256xi1>, vector<16x256xf32>
    %302 = vector.extract_strided_slice %225 {offsets = [0, 6], sizes = [16, 1], strides = [1, 1]} : vector<16x9xf32> to vector<16x1xf32>
    %303 = vector.broadcast %302 : vector<16x1xf32> to vector<16x256xf32>
    %304 = arith.mulf %301, %303 : vector<16x256xf32>
    %305 = arith.addf %291, %304 : vector<16x256xf32>
    %c240_i32_123 = arith.constant 240 : i32
    %306 = tpu.dynamic_rotate %221 by %c240_i32_123 dim 1 : vector<16x256xf32>, i32 -> vector<16x256xf32>
    %c240_i32_124 = arith.constant 240 : i32
    %307 = vector.broadcast %c240_i32_124 : i32 to vector<1x256xi32>
    %308 = arith.cmpi slt, %222, %307 : vector<1x256xi32>
    %cst_125 = arith.constant 0.000000e+00 : f32
    %309 = vector.shape_cast %308 : vector<1x256xi1> to vector<1x256xi1>
    %310 = vector.broadcast %309 : vector<1x256xi1> to vector<16x256xi1>
    %311 = vector.broadcast %cst_125 : f32 to vector<16x256xf32>
    %312 = arith.select %310, %306, %311 : vector<16x256xi1>, vector<16x256xf32>
    %313 = vector.extract_strided_slice %225 {offsets = [0, 7], sizes = [16, 1], strides = [1, 1]} : vector<16x9xf32> to vector<16x1xf32>
    %314 = vector.broadcast %313 : vector<16x1xf32> to vector<16x256xf32>
    %315 = arith.mulf %312, %314 : vector<16x256xf32>
    %316 = arith.addf %305, %315 : vector<16x256xf32>
    %c239_i32 = arith.constant 239 : i32
    %317 = tpu.dynamic_rotate %221 by %c239_i32 dim 1 : vector<16x256xf32>, i32 -> vector<16x256xf32>
    %c240_i32_126 = arith.constant 240 : i32
    %318 = vector.broadcast %c240_i32_126 : i32 to vector<1x256xi32>
    %319 = arith.cmpi slt, %222, %318 : vector<1x256xi32>
    %c15_i32_127 = arith.constant 15 : i32
    %320 = vector.broadcast %c15_i32_127 : i32 to vector<1x256xi32>
    %321 = arith.cmpi slt, %224, %320 : vector<1x256xi32>
    %322 = arith.andi %319, %321 : vector<1x256xi1>
    %cst_128 = arith.constant 0.000000e+00 : f32
    %323 = vector.shape_cast %322 : vector<1x256xi1> to vector<1x256xi1>
    %324 = vector.broadcast %323 : vector<1x256xi1> to vector<16x256xi1>
    %325 = vector.broadcast %cst_128 : f32 to vector<16x256xf32>
    %326 = arith.select %324, %317, %325 : vector<16x256xi1>, vector<16x256xf32>
    %327 = vector.extract_strided_slice %225 {offsets = [0, 8], sizes = [16, 1], strides = [1, 1]} : vector<16x9xf32> to vector<16x1xf32>
    %328 = vector.broadcast %327 : vector<16x1xf32> to vector<16x256xf32>
    %329 = arith.mulf %326, %328 : vector<16x256xf32>
    %330 = arith.addf %316, %329 : vector<16x256xf32>
    %c0_129 = arith.constant 0 : index
    %c0_130 = arith.constant 0 : index
    %331 = vector.load %arg26[%c0_129, %c0_130] : memref<16x1xf32, #tpu.memory_space<vmem>>, vector<16x1xf32>
    %332 = vector.broadcast %331 : vector<16x1xf32> to vector<16x256xf32>
    %333 = arith.mulf %330, %332 : vector<16x256xf32>
    %c0_131 = arith.constant 0 : index
    %c0_132 = arith.constant 0 : index
    %334 = vector.load %arg27[%c0_131, %c0_132] : memref<16x1xf32, #tpu.memory_space<vmem>>, vector<16x1xf32>
    %335 = vector.broadcast %334 : vector<16x1xf32> to vector<16x256xf32>
    %336 = arith.addf %333, %335 : vector<16x256xf32>
    %337 = vector.broadcast %197 : vector<16x1xf32> to vector<16x256xf32>
    %338 = arith.mulf %336, %337 : vector<16x256xf32>
    %339 = vector.broadcast %201 : vector<16x1xf32> to vector<16x256xf32>
    %340 = arith.addf %338, %339 : vector<16x256xf32>
    %341 = vector.broadcast %198 : vector<16x1xf32> to vector<16x256xf32>
    %342 = arith.mulf %336, %341 : vector<16x256xf32>
    %343 = vector.broadcast %204 : vector<16x1xf32> to vector<16x256xf32>
    %344 = arith.addf %342, %343 : vector<16x256xf32>
    %345 = arith.maximumf %340, %344 : vector<16x256xf32>
    %c0_133 = arith.constant 0 : index
    %c0_134 = arith.constant 0 : index
    %346 = vector.load %arg28[%c0_133, %c0_134] : memref<8x16xf32, #tpu.memory_space<vmem>>, vector<8x16xf32>
    %cst_135 = arith.constant dense<0.000000e+00> : vector<8x256xf32>
    %347 = tpu.matmul %346, %345, %cst_135 {dimension_numbers = #tpu.dot_dimension_numbers<[1], [0], [0], [1], [0, 0, 1, 1], [], []>} : vector<8x16xf32>, vector<16x256xf32>, vector<8x256xf32> -> vector<8x256xf32>
    %c0_136 = arith.constant 0 : index
    %c0_137 = arith.constant 0 : index
    %348 = vector.load %arg29[%c0_136, %c0_137] : memref<8x1xf32, #tpu.memory_space<vmem>>, vector<8x1xf32>
    %349 = vector.broadcast %348 : vector<8x1xf32> to vector<8x256xf32>
    %350 = arith.mulf %347, %349 : vector<8x256xf32>
    %c0_138 = arith.constant 0 : index
    %c0_139 = arith.constant 0 : index
    %351 = vector.load %arg30[%c0_138, %c0_139] : memref<8x1xf32, #tpu.memory_space<vmem>>, vector<8x1xf32>
    %352 = vector.broadcast %351 : vector<8x1xf32> to vector<8x256xf32>
    %353 = arith.addf %350, %352 : vector<8x256xf32>
    %c0_140 = arith.constant 0 : index
    %c0_141 = arith.constant 0 : index
    %354 = vector.load %arg31[%c0_140, %c0_141] : memref<32x16xf32, #tpu.memory_space<vmem>>, vector<32x16xf32>
    %cst_142 = arith.constant dense<0.000000e+00> : vector<6x16xf32>
    %355 = tpu.matmul %170, %354, %cst_142 {dimension_numbers = #tpu.dot_dimension_numbers<[1], [0], [0], [1], [0, 0, 1, 1], [], []>} : vector<6x32xf32>, vector<32x16xf32>, vector<6x16xf32> -> vector<6x16xf32>
    %c0_143 = arith.constant 0 : index
    %c0_144 = arith.constant 0 : index
    %356 = vector.load %arg32[%c0_143, %c0_144] : memref<1x16xf32, #tpu.memory_space<vmem>>, vector<1x16xf32>
    %357 = vector.broadcast %356 : vector<1x16xf32> to vector<6x16xf32>
    %358 = arith.addf %355, %357 : vector<6x16xf32>
    %c0_145 = arith.constant 0 : index
    %c0_146 = arith.constant 0 : index
    %359 = vector.load %arg33[%c0_145, %c0_146] : memref<32x16xf32, #tpu.memory_space<vmem>>, vector<32x16xf32>
    %cst_147 = arith.constant dense<0.000000e+00> : vector<6x16xf32>
    %360 = tpu.matmul %170, %359, %cst_147 {dimension_numbers = #tpu.dot_dimension_numbers<[1], [0], [0], [1], [0, 0, 1, 1], [], []>} : vector<6x32xf32>, vector<32x16xf32>, vector<6x16xf32> -> vector<6x16xf32>
    %c0_148 = arith.constant 0 : index
    %c0_149 = arith.constant 0 : index
    %361 = vector.load %arg34[%c0_148, %c0_149] : memref<1x16xf32, #tpu.memory_space<vmem>>, vector<1x16xf32>
    %362 = vector.broadcast %361 : vector<1x16xf32> to vector<6x16xf32>
    %363 = arith.addf %360, %362 : vector<6x16xf32>
    %c0_150 = arith.constant 0 : index
    %c0_151 = arith.constant 0 : index
    %364 = vector.load %arg35[%c0_150, %c0_151] : memref<8x16xf32, #tpu.memory_space<vmem>>, vector<8x16xf32>
    %cst_152 = arith.constant 0.000000e+00 : f32
    %365 = vector.broadcast %cst_152 : f32 to vector<8x256xf32>
    %366 = vector.extract_strided_slice %358 {offsets = [0, 0], sizes = [6, 8], strides = [1, 1]} : vector<6x16xf32> to vector<6x8xf32>
    %367 = vector.extract_strided_slice %363 {offsets = [0, 0], sizes = [6, 8], strides = [1, 1]} : vector<6x16xf32> to vector<6x8xf32>
    %cst_153 = arith.constant dense<0.000000e+00> : vector<6x256xf32>
    %368 = tpu.matmul %366, %353, %cst_153 {dimension_numbers = #tpu.dot_dimension_numbers<[1], [0], [0], [1], [0, 0, 1, 1], [], []>} : vector<6x8xf32>, vector<8x256xf32>, vector<6x256xf32> -> vector<6x256xf32>
    %cst_154 = arith.constant 0.353553385 : f32
    %369 = vector.broadcast %cst_154 : f32 to vector<6x256xf32>
    %370 = arith.mulf %368, %369 : vector<6x256xf32>
    %cst_155 = arith.constant dense<0xFF800000> : vector<256xf32>
    %371 = vector.multi_reduction <maximumf>, %370, %cst_155 [0] : vector<6x256xf32> to vector<256xf32>
    %372 = vector.shape_cast %371 : vector<256xf32> to vector<1x256xf32>
    %373 = vector.broadcast %372 : vector<1x256xf32> to vector<6x256xf32>
    %374 = arith.subf %370, %373 : vector<6x256xf32>
    %375 = math.exp %374 : vector<6x256xf32>
    %cst_156 = arith.constant dense<0.000000e+00> : vector<256xf32>
    %376 = vector.multi_reduction <add>, %375, %cst_156 [0] : vector<6x256xf32> to vector<256xf32>
    %377 = vector.shape_cast %376 : vector<256xf32> to vector<1x256xf32>
    %378 = tpu.reciprocal %377 {approx = true} : vector<1x256xf32> -> vector<1x256xf32>
    %379 = vector.broadcast %378 : vector<1x256xf32> to vector<6x256xf32>
    %380 = arith.mulf %375, %379 : vector<6x256xf32>
    %381 = vector.extract_strided_slice %364 {offsets = [0, 0], sizes = [8, 8], strides = [1, 1]} : vector<8x16xf32> to vector<8x8xf32>
    %cst_157 = arith.constant dense<0.000000e+00> : vector<8x6xf32>
    %382 = tpu.matmul %381, %367, %cst_157 {dimension_numbers = #tpu.dot_dimension_numbers<[1], [1], [0], [0], [0, 0, 1, 0], [], []>} : vector<8x8xf32>, vector<6x8xf32>, vector<8x6xf32> -> vector<8x6xf32>
    %cst_158 = arith.constant dense<0.000000e+00> : vector<8x256xf32>
    %383 = tpu.matmul %382, %380, %cst_158 {dimension_numbers = #tpu.dot_dimension_numbers<[1], [0], [0], [1], [0, 0, 1, 1], [], []>} : vector<8x6xf32>, vector<6x256xf32>, vector<8x256xf32> -> vector<8x256xf32>
    %384 = arith.addf %365, %383 : vector<8x256xf32>
    %385 = vector.extract_strided_slice %358 {offsets = [0, 8], sizes = [6, 8], strides = [1, 1]} : vector<6x16xf32> to vector<6x8xf32>
    %386 = vector.extract_strided_slice %363 {offsets = [0, 8], sizes = [6, 8], strides = [1, 1]} : vector<6x16xf32> to vector<6x8xf32>
    %cst_159 = arith.constant dense<0.000000e+00> : vector<6x256xf32>
    %387 = tpu.matmul %385, %353, %cst_159 {dimension_numbers = #tpu.dot_dimension_numbers<[1], [0], [0], [1], [0, 0, 1, 1], [], []>} : vector<6x8xf32>, vector<8x256xf32>, vector<6x256xf32> -> vector<6x256xf32>
    %cst_160 = arith.constant 0.353553385 : f32
    %388 = vector.broadcast %cst_160 : f32 to vector<6x256xf32>
    %389 = arith.mulf %387, %388 : vector<6x256xf32>
    %cst_161 = arith.constant dense<0xFF800000> : vector<256xf32>
    %390 = vector.multi_reduction <maximumf>, %389, %cst_161 [0] : vector<6x256xf32> to vector<256xf32>
    %391 = vector.shape_cast %390 : vector<256xf32> to vector<1x256xf32>
    %392 = vector.broadcast %391 : vector<1x256xf32> to vector<6x256xf32>
    %393 = arith.subf %389, %392 : vector<6x256xf32>
    %394 = math.exp %393 : vector<6x256xf32>
    %cst_162 = arith.constant dense<0.000000e+00> : vector<256xf32>
    %395 = vector.multi_reduction <add>, %394, %cst_162 [0] : vector<6x256xf32> to vector<256xf32>
    %396 = vector.shape_cast %395 : vector<256xf32> to vector<1x256xf32>
    %397 = tpu.reciprocal %396 {approx = true} : vector<1x256xf32> -> vector<1x256xf32>
    %398 = vector.broadcast %397 : vector<1x256xf32> to vector<6x256xf32>
    %399 = arith.mulf %394, %398 : vector<6x256xf32>
    %400 = vector.extract_strided_slice %364 {offsets = [0, 8], sizes = [8, 8], strides = [1, 1]} : vector<8x16xf32> to vector<8x8xf32>
    %cst_163 = arith.constant dense<0.000000e+00> : vector<8x6xf32>
    %401 = tpu.matmul %400, %386, %cst_163 {dimension_numbers = #tpu.dot_dimension_numbers<[1], [1], [0], [0], [0, 0, 1, 0], [], []>} : vector<8x8xf32>, vector<6x8xf32>, vector<8x6xf32> -> vector<8x6xf32>
    %cst_164 = arith.constant dense<0.000000e+00> : vector<8x256xf32>
    %402 = tpu.matmul %401, %399, %cst_164 {dimension_numbers = #tpu.dot_dimension_numbers<[1], [0], [0], [1], [0, 0, 1, 1], [], []>} : vector<8x6xf32>, vector<6x256xf32>, vector<8x256xf32> -> vector<8x256xf32>
    %403 = arith.addf %384, %402 : vector<8x256xf32>
    %404 = arith.addf %353, %403 : vector<8x256xf32>
    %c0_165 = arith.constant 0 : index
    %c0_166 = arith.constant 0 : index
    %405 = vector.load %arg36[%c0_165, %c0_166] : memref<8x1xf32, #tpu.memory_space<vmem>>, vector<8x1xf32>
    %406 = vector.broadcast %405 : vector<8x1xf32> to vector<8x256xf32>
    %407 = arith.addf %404, %406 : vector<8x256xf32>
    %c0_167 = arith.constant 0 : index
    %c0_168 = arith.constant 0 : index
    %c0_169 = arith.constant 0 : index
    %408 = vector.load %arg37[%c0_167, %c0_168, %c0_169] : memref<1x8x256xf32, #tpu.memory_space<vmem>>, vector<1x8x256xf32>
    %409 = vector.shape_cast %408 : vector<1x8x256xf32> to vector<8x256xf32>
    %410 = vector.shape_cast %407 : vector<8x256xf32> to vector<1x8x256xf32>
    tpu.vector_store %arg37[%c0_167, %c0_168, %c0_169], %410 {strides = array<i32>} : memref<1x8x256xf32, #tpu.memory_space<vmem>>, vector<1x8x256xf32>,
    return
  }
  func.func @transform_0(%arg0: i32) -> (i32, i32, i32) {
    %c0_i32 = arith.constant 0 : i32
    %c0_i32_0 = arith.constant 0 : i32
    %c0_i32_1 = arith.constant 0 : i32
    return %arg0, %c0_i32, %c0_i32_0 : i32, i32, i32
  }
  func.func @transform_1(%arg0: i32) -> (i32, i32, i32) {
    %c0_i32 = arith.constant 0 : i32
    %c0_i32_0 = arith.constant 0 : i32
    %c0_i32_1 = arith.constant 0 : i32
    return %arg0, %c0_i32, %c0_i32_0 : i32, i32, i32
  }
  func.func @transform_2(%arg0: i32) -> (i32, i32) {
    %c0_i32 = arith.constant 0 : i32
    %c0_i32_0 = arith.constant 0 : i32
    %c0_i32_1 = arith.constant 0 : i32
    return %c0_i32, %c0_i32_0 : i32, i32
  }
  func.func @transform_3(%arg0: i32) -> (i32, i32) {
    %c0_i32 = arith.constant 0 : i32
    %c0_i32_0 = arith.constant 0 : i32
    %c0_i32_1 = arith.constant 0 : i32
    return %c0_i32, %c0_i32_0 : i32, i32
  }
  func.func @transform_4(%arg0: i32) -> (i32, i32) {
    %c0_i32 = arith.constant 0 : i32
    %c0_i32_0 = arith.constant 0 : i32
    %c0_i32_1 = arith.constant 0 : i32
    return %c0_i32, %c0_i32_0 : i32, i32
  }
  func.func @transform_5(%arg0: i32) -> (i32, i32) {
    %c0_i32 = arith.constant 0 : i32
    %c0_i32_0 = arith.constant 0 : i32
    %c0_i32_1 = arith.constant 0 : i32
    return %c0_i32, %c0_i32_0 : i32, i32
  }
  func.func @transform_6(%arg0: i32) -> (i32, i32) {
    %c0_i32 = arith.constant 0 : i32
    %c0_i32_0 = arith.constant 0 : i32
    %c0_i32_1 = arith.constant 0 : i32
    return %c0_i32, %c0_i32_0 : i32, i32
  }
  func.func @transform_7(%arg0: i32) -> (i32, i32) {
    %c0_i32 = arith.constant 0 : i32
    %c0_i32_0 = arith.constant 0 : i32
    %c0_i32_1 = arith.constant 0 : i32
    return %c0_i32, %c0_i32_0 : i32, i32
  }
  func.func @transform_8(%arg0: i32) -> (i32, i32) {
    %c0_i32 = arith.constant 0 : i32
    %c0_i32_0 = arith.constant 0 : i32
    %c0_i32_1 = arith.constant 0 : i32
    return %c0_i32, %c0_i32_0 : i32, i32
  }
  func.func @transform_9(%arg0: i32) -> (i32, i32) {
    %c0_i32 = arith.constant 0 : i32
    %c0_i32_0 = arith.constant 0 : i32
    %c0_i32_1 = arith.constant 0 : i32
    return %c0_i32, %c0_i32_0 : i32, i32
  }
  func.func @transform_10(%arg0: i32) -> (i32, i32) {
    %c0_i32 = arith.constant 0 : i32
    %c0_i32_0 = arith.constant 0 : i32
    %c0_i32_1 = arith.constant 0 : i32
    return %c0_i32, %c0_i32_0 : i32, i32
  }
  func.func @transform_11(%arg0: i32) -> (i32, i32) {
    %c0_i32 = arith.constant 0 : i32
    %c0_i32_0 = arith.constant 0 : i32
    %c0_i32_1 = arith.constant 0 : i32
    return %c0_i32, %c0_i32_0 : i32, i32
  }
  func.func @transform_12(%arg0: i32) -> (i32, i32) {
    %c0_i32 = arith.constant 0 : i32
    %c0_i32_0 = arith.constant 0 : i32
    %c0_i32_1 = arith.constant 0 : i32
    return %c0_i32, %c0_i32_0 : i32, i32
  }
  func.func @transform_13(%arg0: i32) -> (i32, i32) {
    %c0_i32 = arith.constant 0 : i32
    %c0_i32_0 = arith.constant 0 : i32
    %c0_i32_1 = arith.constant 0 : i32
    return %c0_i32, %c0_i32_0 : i32, i32
  }
  func.func @transform_14(%arg0: i32) -> (i32, i32) {
    %c0_i32 = arith.constant 0 : i32
    %c0_i32_0 = arith.constant 0 : i32
    %c0_i32_1 = arith.constant 0 : i32
    return %c0_i32, %c0_i32_0 : i32, i32
  }
  func.func @transform_15(%arg0: i32) -> (i32, i32) {
    %c0_i32 = arith.constant 0 : i32
    %c0_i32_0 = arith.constant 0 : i32
    %c0_i32_1 = arith.constant 0 : i32
    return %c0_i32, %c0_i32_0 : i32, i32
  }
  func.func @transform_16(%arg0: i32) -> (i32, i32) {
    %c0_i32 = arith.constant 0 : i32
    %c0_i32_0 = arith.constant 0 : i32
    %c0_i32_1 = arith.constant 0 : i32
    return %c0_i32, %c0_i32_0 : i32, i32
  }
  func.func @transform_17(%arg0: i32) -> (i32, i32) {
    %c0_i32 = arith.constant 0 : i32
    %c0_i32_0 = arith.constant 0 : i32
    %c0_i32_1 = arith.constant 0 : i32
    return %c0_i32, %c0_i32_0 : i32, i32
  }
  func.func @transform_18(%arg0: i32) -> (i32, i32) {
    %c0_i32 = arith.constant 0 : i32
    %c0_i32_0 = arith.constant 0 : i32
    %c0_i32_1 = arith.constant 0 : i32
    return %c0_i32, %c0_i32_0 : i32, i32
  }
  func.func @transform_19(%arg0: i32) -> (i32, i32) {
    %c0_i32 = arith.constant 0 : i32
    %c0_i32_0 = arith.constant 0 : i32
    %c0_i32_1 = arith.constant 0 : i32
    return %c0_i32, %c0_i32_0 : i32, i32
  }
  func.func @transform_20(%arg0: i32) -> (i32, i32) {
    %c0_i32 = arith.constant 0 : i32
    %c0_i32_0 = arith.constant 0 : i32
    %c0_i32_1 = arith.constant 0 : i32
    return %c0_i32, %c0_i32_0 : i32, i32
  }
  func.func @transform_21(%arg0: i32) -> (i32, i32) {
    %c0_i32 = arith.constant 0 : i32
    %c0_i32_0 = arith.constant 0 : i32
    %c0_i32_1 = arith.constant 0 : i32
    return %c0_i32, %c0_i32_0 : i32, i32
  }
  func.func @transform_22(%arg0: i32) -> (i32, i32) {
    %c0_i32 = arith.constant 0 : i32
    %c0_i32_0 = arith.constant 0 : i32
    %c0_i32_1 = arith.constant 0 : i32
    return %c0_i32, %c0_i32_0 : i32, i32
  }
  func.func @transform_23(%arg0: i32) -> (i32, i32) {
    %c0_i32 = arith.constant 0 : i32
    %c0_i32_0 = arith.constant 0 : i32
    %c0_i32_1 = arith.constant 0 : i32
    return %c0_i32, %c0_i32_0 : i32, i32
  }
  func.func @transform_24(%arg0: i32) -> (i32, i32) {
    %c0_i32 = arith.constant 0 : i32
    %c0_i32_0 = arith.constant 0 : i32
    %c0_i32_1 = arith.constant 0 : i32
    return %c0_i32, %c0_i32_0 : i32, i32
  }
  func.func @transform_25(%arg0: i32) -> (i32, i32) {
    %c0_i32 = arith.constant 0 : i32
    %c0_i32_0 = arith.constant 0 : i32
    %c0_i32_1 = arith.constant 0 : i32
    return %c0_i32, %c0_i32_0 : i32, i32
  }
  func.func @transform_26(%arg0: i32) -> (i32, i32) {
    %c0_i32 = arith.constant 0 : i32
    %c0_i32_0 = arith.constant 0 : i32
    %c0_i32_1 = arith.constant 0 : i32
    return %c0_i32, %c0_i32_0 : i32, i32
  }
  func.func @transform_27(%arg0: i32) -> (i32, i32) {
    %c0_i32 = arith.constant 0 : i32
    %c0_i32_0 = arith.constant 0 : i32
    %c0_i32_1 = arith.constant 0 : i32
    return %c0_i32, %c0_i32_0 : i32, i32
  }
  func.func @transform_28(%arg0: i32) -> (i32, i32) {
    %c0_i32 = arith.constant 0 : i32
    %c0_i32_0 = arith.constant 0 : i32
    %c0_i32_1 = arith.constant 0 : i32
    return %c0_i32, %c0_i32_0 : i32, i32
  }
  func.func @transform_29(%arg0: i32) -> (i32, i32) {
    %c0_i32 = arith.constant 0 : i32
    %c0_i32_0 = arith.constant 0 : i32
    %c0_i32_1 = arith.constant 0 : i32
    return %c0_i32, %c0_i32_0 : i32, i32
  }
  func.func @transform_30(%arg0: i32) -> (i32, i32) {
    %c0_i32 = arith.constant 0 : i32
    %c0_i32_0 = arith.constant 0 : i32
    %c0_i32_1 = arith.constant 0 : i32
    return %c0_i32, %c0_i32_0 : i32, i32
  }
  func.func @transform_31(%arg0: i32) -> (i32, i32) {
    %c0_i32 = arith.constant 0 : i32
    %c0_i32_0 = arith.constant 0 : i32
    %c0_i32_1 = arith.constant 0 : i32
    return %c0_i32, %c0_i32_0 : i32, i32
  }
  func.func @transform_32(%arg0: i32) -> (i32, i32) {
    %c0_i32 = arith.constant 0 : i32
    %c0_i32_0 = arith.constant 0 : i32
    %c0_i32_1 = arith.constant 0 : i32
    return %c0_i32, %c0_i32_0 : i32, i32
  }
  func.func @transform_33(%arg0: i32) -> (i32, i32) {
    %c0_i32 = arith.constant 0 : i32
    %c0_i32_0 = arith.constant 0 : i32
    %c0_i32_1 = arith.constant 0 : i32
    return %c0_i32, %c0_i32_0 : i32, i32
  }
  func.func @transform_34(%arg0: i32) -> (i32, i32) {
    %c0_i32 = arith.constant 0 : i32
    %c0_i32_0 = arith.constant 0 : i32
    %c0_i32_1 = arith.constant 0 : i32
    return %c0_i32, %c0_i32_0 : i32, i32
  }
  func.func @transform_35(%arg0: i32) -> (i32, i32) {
    %c0_i32 = arith.constant 0 : i32
    %c0_i32_0 = arith.constant 0 : i32
    %c0_i32_1 = arith.constant 0 : i32
    return %c0_i32, %c0_i32_0 : i32, i32
  }
  func.func @transform_36(%arg0: i32) -> (i32, i32, i32) {
    %c0_i32 = arith.constant 0 : i32
    %c0_i32_0 = arith.constant 0 : i32
    %c0_i32_1 = arith.constant 0 : i32
    return %arg0, %c0_i32, %c0_i32_0 : i32, i32, i32
  }
  func.func @transform_37(%arg0: i32) -> (i32, i32, i32) {
    %c0_i32 = arith.constant 0 : i32
    %c0_i32_0 = arith.constant 0 : i32
    %c0_i32_1 = arith.constant 0 : i32
    return %arg0, %c0_i32, %c0_i32_0 : i32, i32, i32
  }
}

</mosaic_0001>

<bundles_post_ra>
// kernel: base_block_forward.1
= control target key start
LH: loop header
LB: loop body
LE: loop exit
PB: predicated region body
PF: predicated region fallthrough
CT: control target
= control target key end

     0   :  { %s3402_s6 = smov 1   ;;  %s3403_s10 = smov 2   ;;  %s4325_s0 = inlined_call_operand.smem [shape: u32[38], index: -1, kind: input, shape index: {}] }
   0x1   :  { %s3469_s5 = sld [smem:[%s4325_s0]]   ;;  %s3404_s14 = smov 3  }
   0x2   :  { %s3474_s9 = sld [smem:[%s4325_s0 + %s3402_s6]]   ;;  %s3405_s18 = smov 4  }
   0x3   :  { %s3479_s13 = sld [smem:[%s4325_s0 + %s3403_s10]]   ;;  %s3406_s22 = smov 5  }
   0x4   :  { %s3484_s17 = sld [smem:[%s4325_s0 + %s3404_s14]]   ;;  %s3407_s26 = smov 6  }
   0x5   :  { %s3489_s21 = sld [smem:[%s4325_s0 + %s3405_s18]]   ;;  %s3408_s30 = smov 7  }
   0x6   :  { %s3494_s25 = sld [smem:[%s4325_s0 + %s3406_s22]]   ;;  %s3409_s4 = smov 8  }
   0x7   :  { %4360 = sst [smem:[#allocation2_spill]] %s3469_s5  ;;  %s3410_s10 = smov 9  }
   0x8   :  { %s3499_s29 = sld [smem:[%s4325_s0 + %s3407_s26]]   ;;  %s3411_s15 = smov 10  }
   0x9   :  { %s3504_s3 = sld [smem:[%s4325_s0 + %s3408_s30]]   ;;  %s3412_s20 = smov 11  }
   0xa   :  { %s3509_s8 = sld [smem:[%s4325_s0 + %s3409_s4]]   ;;  %s3413_s26 = smov 12  }
   0xb   :  { %s3514_s14 = sld [smem:[%s4325_s0 + %s3410_s10]]   ;;  %s3414_s1 = smov 13  }
   0xc   :  { %s3519_s19 = sld [smem:[%s4325_s0 + %s3411_s15]]   ;;  %s3415_s7 = smov 14  }
   0xd   :  { %s3524_s24 = sld [smem:[%s4325_s0 + %s3412_s20]]   ;;  %s3416_s15 = smov 15  }
   0xe   :  { %s3529_s30 = sld [smem:[%s4325_s0 + %s3413_s26]]   ;;  %s3417_s22 = smov 16  }
   0xf   :  { %4361 = sst [smem:[#allocation3_spill]] %s3504_s3  ;;  %s3418_s28 = smov 17  }
  0x10   :  { %4362 = sst [smem:[#allocation4_spill]] %s3509_s8 }
  0x11   :  { %s3534_s6 = sld [smem:[%s4325_s0 + %s3414_s1]]  }
  0x12   :  { %s3539_s12 = sld [smem:[%s4325_s0 + %s3415_s7]]   ;;  %s3419_s7 = smov 18  }
  0x13   :  { %s3544_s20 = sld [smem:[%s4325_s0 + %s3416_s15]]   ;;  %s3420_s15 = smov 19  }
  0x14   :  { %s3549_s27 = sld [smem:[%s4325_s0 + %s3417_s22]]   ;;  %s3421_s22 = smov 20  }
  0x15   :  { %s3554_s4 = sld [smem:[%s4325_s0 + %s3418_s28]]   ;;  %s3422_s28 = smov 21  }
  0x17   :  { %4363 = sst [smem:[#allocation5_spill]] %s3534_s6 }
  0x18   :  { %4364 = sst [smem:[#allocation6_spill]] %s3539_s12 }
  0x19   :  { %4365 = sst [smem:[#allocation7_spill]] %s3544_s20 }
  0x1a   :  { %4366 = sst [smem:[#allocation8_spill]] %s3549_s27 }
  0x1b   :  { %4367 = sst [smem:[#allocation9_spill]] %s3554_s4 }
  0x1c   :  { %s3559_s12 = sld [smem:[%s4325_s0 + %s3419_s7]]   ;;  %s3423_s7 = smov 22  }
  0x1d   :  { %s3564_s20 = sld [smem:[%s4325_s0 + %s3420_s15]]   ;;  %s3424_s15 = smov 23  }
  0x1e   :  { %s3569_s27 = sld [smem:[%s4325_s0 + %s3421_s22]]   ;;  %s3425_s22 = smov 24  }
  0x1f   :  { %s3574_s4 = sld [smem:[%s4325_s0 + %s3422_s28]]   ;;  %s3426_s28 = smov 25  }
  0x22   :  { %4368 = sst [smem:[#allocation10_spill]] %s3559_s12 }
  0x23   :  { %4369 = sst [smem:[#allocation11_spill]] %s3564_s20 }
  0x24   :  { %4370 = sst [smem:[#allocation12_spill]] %s3569_s27 }
  0x25   :  { %4371 = sst [smem:[#allocation13_spill]] %s3574_s4 }
  0x26   :  { %s3579_s12 = sld [smem:[%s4325_s0 + %s3423_s7]]   ;;  %s3427_s7 = smov 26  }
  0x27   :  { %s3584_s20 = sld [smem:[%s4325_s0 + %s3424_s15]]   ;;  %s3428_s15 = smov 27  }
  0x28   :  { %s3589_s27 = sld [smem:[%s4325_s0 + %s3425_s22]]   ;;  %s3429_s22 = smov 28  }
  0x29   :  { %s3594_s4 = sld [smem:[%s4325_s0 + %s3426_s28]]   ;;  %s3430_s28 = smov 29  }
  0x2c   :  { %4372 = sst [smem:[#allocation14_spill]] %s3579_s12 }
  0x2d   :  { %4373 = sst [smem:[#allocation15_spill]] %s3584_s20 }
  0x2e   :  { %4374 = sst [smem:[#allocation16_spill]] %s3589_s27 }
  0x2f   :  { %4375 = sst [smem:[#allocation17_spill]] %s3594_s4 }
  0x30   :  { %s3599_s12 = sld [smem:[%s4325_s0 + %s3427_s7]]   ;;  %s3431_s7 = smov 30  }
  0x31   :  { %s3604_s20 = sld [smem:[%s4325_s0 + %s3428_s15]]   ;;  %s3432_s15 = smov 31  }
  0x32   :  { %s3609_s27 = sld [smem:[%s4325_s0 + %s3429_s22]]   ;;  %s3433_s22 = smov 32  }
  0x33   :  { %s3614_s4 = sld [smem:[%s4325_s0 + %s3430_s28]]   ;;  %s3434_s28 = smov 33  }
  0x36   :  { %4376 = sst [smem:[#allocation18_spill]] %s3599_s12 }
  0x37   :  { %4377 = sst [smem:[#allocation19_spill]] %s3604_s20 }
  0x38   :  { %4378 = sst [smem:[#allocation20_spill]] %s3609_s27 }
  0x39   :  { %4379 = sst [smem:[#allocation21_spill]] %s3614_s4 }
  0x3a   :  { %s3619_s12 = sld [smem:[%s4325_s0 + %s3431_s7]]   ;;  %s3435_s7 = smov 34  }
  0x3b   :  { %s3624_s20 = sld [smem:[%s4325_s0 + %s3432_s15]]   ;;  %s3436_s15 = smov 35  }
  0x3c   :  { %s3629_s27 = sld [smem:[%s4325_s0 + %s3433_s22]]   ;;  %s3437_s22 = smov 36  }
  0x3d   :  { %s3634_s4 = sld [smem:[%s4325_s0 + %s3434_s28]]   ;;  %s3438_s28 = smov 37  }
  0x40   :  { %4380 = sst [smem:[#allocation22_spill]] %s3619_s12 }
  0x41   :  { %4381 = sst [smem:[#allocation23_spill]] %s3624_s20 }
  0x42   :  { %4382 = sst [smem:[#allocation24_spill]] %s3629_s27 }
  0x43   :  { %4383 = sst [smem:[#allocation25_spill]] %s3634_s4 }
  0x44   :  { %s3639_s12 = sld [smem:[%s4325_s0 + %s3435_s7]]   ;;  %s3656_s7 = smov 0  }
  0x45   :  { %s3644_s20 = sld [smem:[%s4325_s0 + %s3436_s15]]  }
  0x46   :  { %s3649_s27 = sld [smem:[%s4325_s0 + %s3437_s22]]  }
  0x47   :  { %s3654_s4 = sld [smem:[%s4325_s0 + %s3438_s28]]  }
  0x4d   :  { %4384 = sst [smem:[#allocation26_spill]] %s3654_s4 }
  0x4e LB: > { %s4385_s8 = sld [smem:[#allocation4_spill]]  ;;  %s3142_s10 = sadd.s32 4294967295, %s3400_s7   ;;  %s3400_s7 = sphi %s3656_s7, %s86_s7  }
  0x4f   : > { %s4386_s6 = sld [smem:[#allocation5_spill]]  ;;  %p3146_p0 = scmp.ge.s32.totalorder %s3400_s7, 1 }
  0x50   : > { %p1037_p1 = scmp.lt.s32.totalorder %s3400_s7, 3 }
  0x52   : > { %p1038_p2 = pnand %p3146_p0, %p1037_p1 }
  0x53   : > { %s4387_s5 = sld [smem:[#allocation2_spill]] (!%p1038_p2)  ;;  %p1137_p3 = scmp.lt.s32.totalorder (!%p1038_p2), %s3142_s10, 1 }
  0x54   : > { %1041 = sbr.rel (%p1038_p2) target bundleno = 3964 (0xf7c), region = 164  ;;  %s4338_s18 = smov (!%p1038_p2), 120  }
  0x55   : > { %s4388_s3 = sld [smem:[#allocation3_spill]] (!%p1038_p2)  ;;  %s3441_s22 = smov (!%p1038_p2), 32  }
  0x56   : > { %s3442_s23 = smov (!%p1038_p2), 64   ;;  %s3443_s26 = smov (!%p1038_p2), 96  }
  0x57   : > { %s4389_s28 = sld [smem:[#allocation7_spill]] (!%p1038_p2) }
  0x58   : > { %s4390_s1 = sld [smem:[#allocation6_spill]] (!%p1038_p2) }
  0x59   : > { %v1161_v0 = vld [vmem:[%s3479_s13 + $0x18] sm:$0xff]  ;;  %v1160_v1 = vld [vmem:[%s3479_s13 + $0x10] sm:$0xff]  ;;  %v1159_v2 = vld [vmem:[%s3479_s13 + $0x8] sm:$0xff]  ;;  %s4457_s10 = smov (!%p1137_p3, %s3142_s10), 1  ;;  %vm4358_vm0 = vcmask 261120   ;;  %vm4359_vm1 = vcmask 64512  }
  0x5a   : > { %1182 = vmatpush.msra.mxu0 %v1161_v0  ;;  %v1158_v3 = vld [vmem:[%s3479_s13] sm:$0xff]  ;;  %s3149_s0 = sshll.u32 %s4457_s10, 3  ;;  %s4337_s15 = sshll.u32 %s4457_s10, 4  ;;  %vm4357_vm2 = vcmask 1045504   ;;  %v1191_v57 = vld [vmem:[%s3489_s21 + $0x8] sm:$0xff]  ;;  %vm1455_vm3 = vcmask 259072  }
  0x5b   : > { %s1145_s11 = scalar_lea.vmem %s3474_s9, %s3149_s0  ;;  %s1141_s16 = scalar_lea.vmem %s4387_s5, %s4337_s15  ;;  %v3307_v7 = vld [vmem:[%s3484_s17] ss:$0 sm:$0xff]  ;;  %vm1582_vm8 = vcmask 46080   ;;  %vm4356_vm9 = vcmask 48128   ;;  %vm1824_vm13 = vcmask 523264  }
  0x5c   : > { %1183 = vmatpush.msra.mxu0 %v1160_v1  ;;  %v3674_v4 = vld [vmem:[%s1145_s11] sm:$0x3f]  ;;  %v3684_v6 = vld [vmem:[%s1141_s16 + $0x8] sm:$0xff]  ;;  %s4391_s2 = sld [smem:[#allocation13_spill]]  ;;  %s4341_s15 = smov 17  }
  0x5d   : > { %v3682_v5 = vld [vmem:[%s1141_s16] sm:$0xff]  ;;  %1231 = vmatpush.msra.mxu2 %v3684_v6  ;;  %1337 = vmatpush.msra.mxu3 %v3684_v6  ;;  %s4392_s11 = sld [smem:[#allocation8_spill]]  ;;  %s3460_s5 = smov 111  }
  0x5e   : > { %1184 = vmatpush.msra.mxu0 %v1159_v2  ;;  %1211 = vmatpush.msra.mxu1 %v3682_v5  ;;  %v1190_v49 = vld [vmem:[%s3489_s21] sm:$0xff]  ;;  %s4393_s4 = sld [smem:[#allocation26_spill]] }
  0x5f   : > { %1317 = vmatpush.msrb.mxu2 %v3682_v5  ;;  %1444 = vmatpush.msrb.mxu3 %v1190_v49  ;;  %v3308_v0 = vld [vmem:[%s3494_s25] ss:$0 sm:$0xff]  ;;  %s4394_s16 = sld [smem:[#allocation9_spill]] }
  0x60   : > { %1185 = vmatpush.msra.mxu0 %v1158_v3  ;;  %1273 = vmatpush.xpose.msrb.mxu1 %v3682_v5 }
  0x61   : > { %3153 = vmatmul.msk.f32.vlgmr.msra.gmra.mxu0 %vm4358_vm0, %v3674_v4 }
  0x62   : > { %1378 = vmatpush.xpose.msrb.mxu0 %v3682_v5 }
  0xde   : > { %v1187_v8 = vpop.f32.mrf.mxu0 }
  0xdf   : > { %v1188_v9 = vadd.f32 %v3307_v7, %v1187_v8  ;;  %v3440_v7 = vmov 32.0  }
  0xe1   : > { %1298 = vrot.lane.b32.xlu0 %v1188_v9, %s4338_s18  ;;  %3154 = vmatmul.msk.f32.vlgmr.msra.gmra.mxu1 %vm4359_vm1, %v1188_v9  ;;  %s4343_s18 = smov 16  }
  0xe2   : > { %3155 = vmatmul.msk.f32.vlgmr.msra.gmra.mxu2 %vm4359_vm1, %v1188_v9  ;;  %1293 = vmatpush.xpose.msra.mxu1 %v3684_v6 }
  0xe3   : > { %1421 = vmatpush.msra.mxu2 %v1191_v57 }
 0x153   : > { %v1299_v10 = vpop.permute.xlu0 %1298 }
 0x154   : > { %3156 = vmatmul.msk.f32.vlgmr.msrb.gmra.mxu2 %vm4359_vm1, %v1299_v10  ;;  %3157 = vmatmul.msk.f32.vlgmr.msra.gmra.mxu3 %vm4359_vm1, %v1299_v10 }
 0x15e   : > { %v1213_v11 = vpop.f32.mrf.mxu1 }
 0x15f   : > { %v1236_v12 = vmul.f32 0.35355338, %v1213_v11 }
 0x161   : > { %v1239_v15 = vsel %vm4357_vm2, %v1236_v12, -inf }
 0x165   : > { %v1233_v13 = vpop.f32.mrf.mxu2 }
 0x166   : > { %v1237_v14 = vmul.f32 0.35355338, %v1233_v13 }
 0x168   : > { %v1240_v16 = vsel %vm4357_vm2, %v1237_v14, -inf }
 0x169   : > { %v1241_v17 = vmax.f32 %v1239_v15, %v1240_v16 }
 0x16b   : > { %1242 = vmax.xlane.f32.xlu0 %v1241_v17 }
 0x1d7   : > { %v1319_v18 = vpop.f32.mrf.mxu2  ;;  %v1339_v19 = vpop.f32.mrf.mxu3 }
 0x1d8   : > { %v1342_v20 = vmul.f32 0.35355338, %v1319_v18  ;;  %v1343_v21 = vmul.f32 0.35355338, %v1339_v19  ;;  %v1501_v18 = vld [vmem:[%s4385_s8 + $0x30] sm:$0xff]  ;;  %v1502_v19 = vld [vmem:[%s4385_s8 + $0x38] sm:$0xff] }
 0x1d9   : > { %1518 = vmatpush.msra.mxu0 %v1501_v18 }
 0x1da   : > { %v1344_v22 = vsel %vm4357_vm2, %v1342_v20, -inf  ;;  %v1345_v23 = vsel %vm4357_vm2, %v1343_v21, -inf }
 0x1db   : > { %v1346_v24 = vmax.f32 %v1344_v22, %v1345_v23  ;;  %v1497_v22 = vld [vmem:[%s4385_s8 + $0x10] sm:$0xff]  ;;  %v1498_v23 = vld [vmem:[%s4385_s8 + $0x18] sm:$0xff] }
 0x1dd   : > { %1347 = vmax.xlane.f32.xlu1 %v1346_v24  ;;  %v1495_v24 = vld [vmem:[%s4385_s8] sm:$0xff] }
 0x1de   : > { %v1243_v25 = vpop.xlane.xlu0 %1242 }
 0x1df   : > { %v1244_v26 = vsub.f32 %v1236_v12, %v1243_v25  ;;  %v1245_v27 = vsub.f32 %v1237_v14, %v1243_v25  ;;  %v1496_v25 = vld [vmem:[%s4385_s8 + $0x8] sm:$0xff] }
 0x1e1   : > { %v1246_v28 = vmul.f32 1.442695, %v1244_v26  ;;  %v1248_v29 = vmul.f32 1.442695, %v1245_v27 }
 0x1e3   : > { %3318 = vpow2.f32 %v1246_v28 }
 0x1e4   : > { %3320 = vpow2.f32 %v1248_v29 }
 0x1e9   : > { %v3319_v30 = vpop.eup %3318 }
 0x1ea   : > { %v3321_v31 = vpop.eup %3320  ;;  %v1250_v32 = vsel %vm4357_vm2, %v3319_v30, 0.0 }
 0x1eb   : > { %v1251_v33 = vsel %vm4357_vm2, %v3321_v31, 0.0 }
 0x1ec   : > { %v1252_v34 = vadd.f32 %v1251_v33, %v1250_v32 }
 0x1ee   : > { %1253 = vadd.xlane.f32.xlu1 %v1252_v34 }
 0x250   : > { %v1348_v35 = vpop.xlane.xlu1 %1347 }
 0x251   : > { %v1349_v36 = vsub.f32 %v1342_v20, %v1348_v35  ;;  %v1350_v37 = vsub.f32 %v1343_v21, %v1348_v35  ;;  %v1499_v20 = vld [vmem:[%s4385_s8 + $0x20] sm:$0xff]  ;;  %v1500_v21 = vld [vmem:[%s4385_s8 + $0x28] sm:$0xff]  ;;  %s4410_s8 = sld [smem:[#allocation21_spill]] }
 0x252   : > { %1519 = vmatpush.msra.mxu0 %v1499_v20  ;;  %v3309_v35 = vld [vmem:[%s3499_s29] ss:$0 sm:$0xff] }
 0x253   : > { %v1351_v38 = vmul.f32 1.442695, %v1349_v36  ;;  %v1353_v39 = vmul.f32 1.442695, %v1350_v37 }
 0x254   : > { %1520 = vmatpush.msra.mxu0 %v1497_v22  ;;  %v3311_v22 = vld [vmem:[%s3519_s19] ss:$0 sm:$0xff] }
 0x255   : > { %3322 = vpow2.f32 %v1351_v38  ;;  %v3310_v38 = vld [vmem:[%s4388_s3] ss:$0 sm:$0xff]  ;;  %s4406_s3 = sld [smem:[#allocation17_spill]] }
 0x256   : > { %3324 = vpow2.f32 %v1353_v39  ;;  %1521 = vmatpush.msra.mxu0 %v1495_v24 }
 0x25b   : > { %v3323_v40 = vpop.eup %3322 }
 0x25c   : > { %v3325_v41 = vpop.eup %3324  ;;  %v1355_v42 = vsel %vm4357_vm2, %v3323_v40, 0.0 }
 0x25d   : > { %v1356_v43 = vsel %vm4357_vm2, %v3325_v41, 0.0 }
 0x25e   : > { %v1357_v44 = vadd.f32 %v1356_v43, %v1355_v42 }
 0x260   : > { %1358 = vadd.xlane.f32.xlu2 %v1357_v44 }
 0x261   : > { %v1254_v45 = vpop.xlane.xlu1 %1253 }
 0x262   : > { %3326 = vrcp.f32 %v1254_v45 }
 0x268   : > { %v3327_v46 = vpop.eup %3326 }
 0x269   : > { %v1256_v47 = vmul.f32 %v3327_v46, %v3319_v30  ;;  %v1257_v48 = vmul.f32 %v3327_v46, %v3321_v31 }
 0x26b   : > { %1274 = vmatmul.f32.vlgmr.msrb.gmra.mxu1 %v1256_v47 }
 0x26c   : > { %1398 = vmatpush.xpose.msrb.mxu1 %v3684_v6 }
 0x273   : > { %1294 = vmatmul.f32.vlgmr.msra.gmra.mxu1 %v1257_v48 }
 0x274   : > { %1538 = vmatpush.msra.mxu1 %v1502_v19 }
 0x276   : > { %1539 = vmatpush.msra.mxu1 %v1500_v21 }
 0x278   : > { %1540 = vmatpush.msra.mxu1 %v1498_v23 }
 0x27a   : > { %1541 = vmatpush.msra.mxu1 %v1496_v25 }
 0x2d3   : > { %v1359_v50 = vpop.xlane.xlu2 %1358 }
 0x2d4   : > { %3328 = vrcp.f32 %v1359_v50 }
 0x2d5   : > { %3330 = vrcp.f32 %v3440_v7 }
 0x2da   : > { %v3329_v51 = vpop.eup %3328 }
 0x2db   : > { %v1361_v52 = vmul.f32 %v3329_v51, %v3323_v40  ;;  %v1362_v53 = vmul.f32 %v3329_v51, %v3325_v41  ;;  %v3331_v8 = vpop.eup %3330 }
 0x2dc   : > { %v1460_v9 = vmul.f32 32.0, %v3331_v8  ;;  %vm1464_vm4 = vweird.f32 %v3331_v8 }
 0x2dd   : > { %1379 = vmatmul.f32.vlgmr.msrb.gmra.mxu0 %v1361_v52  ;;  %1399 = vmatmul.f32.vlgmr.msrb.gmra.mxu1 %v1362_v53 }
 0x2de   : > { %v1461_v10 = vsub.f32 1.0, %v1460_v9 }
 0x2e0   : > { %v1462_v11 = vmul.f32 %v3331_v8, %v1461_v10 }
 0x2e2   : > { %v1463_v12 = vadd.f32 %v3331_v8, %v1462_v11 }
 0x2e8   : > { %v1275_v54 = vpop.f32.mrf.mxu1 }
 0x2f0   : > { %v1295_v55 = vpop.f32.mrf.mxu1 }
 0x2f1   : > { %v1296_v56 = vadd.f32 %v1295_v55, %v1275_v54 }
 0x2f3   : > { %3159 = vmatmul.msk.f32.vlgmr.msrb.gmra.mxu3 %vm4359_vm1, %v1296_v56 }
 0x35a   : > { %v1380_v58 = vpop.f32.mrf.mxu0  ;;  %v1400_v59 = vpop.f32.mrf.mxu1 }
 0x35b   : > { %v1401_v60 = vadd.f32 %v1400_v59, %v1380_v58 }
 0x35d   : > { %3158 = vmatmul.msk.f32.vlgmr.msra.gmra.mxu2 %vm4359_vm1, %v1401_v60 }
 0x376   : > { %v1446_v61 = vpop.f32.mrf.mxu3 }
 0x3e0   : > { %v1423_v62 = vpop.f32.mrf.mxu2 }
 0x3e1   : > { %v1447_v63 = vadd.f32 %v1446_v61, %v1423_v62  ;;  %v1549_v62 = vld [vmem:[%s3514_s14 + $0x18] sm:$0xff] }
 0x3e3   : > { %v1449_v1 = vadd.f32 %v1447_v63, %v3674_v4  ;;  %v3718_v4 = vsel %vm1464_vm4, %v3331_v8, %v1463_v12  ;;  %v1548_v63 = vld [vmem:[%s3514_s14 + $0x10] sm:$0xff] }
 0x3e5   : > { %v3714_v2 = vadd.f32 %v3308_v0, %v1449_v1  ;;  %v1553_v0 = vld [vmem:[%s3514_s14 + $0x38] sm:$0xff]  ;;  %v1547_v1 = vld [vmem:[%s3514_s14 + $0x8] sm:$0xff] }
 0x3e7   : > { %v1456_v3 = vsel %vm1455_vm3, %v3714_v2, 0.0 }
 0x3e8   : > { %1457 = vadd.xlane.f32.xlu2 %v1456_v3 }
 0x45b   : > { %v1458_v13 = vpop.xlane.xlu2 %1457 }
 0x45c   : > { %v1466_v14 = vmul.f32 %v3718_v4, %v1458_v13  ;;  %v1546_v13 = vld [vmem:[%s3514_s14] sm:$0xff] }
 0x45e   : > { %v1467_v15 = vsub.f32 %v3714_v2, %v1466_v14  ;;  %v1552_v14 = vld [vmem:[%s3514_s14 + $0x30] sm:$0xff] }
 0x460   : > { %v1468_v16 = vmul.f32 %v1467_v15, %v1467_v15 }
 0x462   : > { %v1469_v17 = vsel %vm1455_vm3, %v1468_v16, 0.0  ;;  %v1550_v16 = vld [vmem:[%s3514_s14 + $0x20] sm:$0xff] }
 0x463   : > { %1470 = vadd.xlane.f32.xlu1 %v1469_v17 }
 0x4d6   : > { %v1471_v26 = vpop.xlane.xlu1 %1470 }
 0x4d7   : > { %v1472_v27 = vmul.f32 %v1471_v26, %v3718_v4 }
 0x4d9   : > { %v1473_v28 = vadd.f32 1e-05, %v1472_v27 }
 0x4db   : > { %3332 = vrsqrt.f32 %v1473_v28  ;;  %vm1480_vm6 = vweird.f32 %v1473_v28 }
 0x4e1   : > { %v3333_v29 = vpop.eup %3332 }
 0x4e2   : > { %v1475_v30 = vmul.f32 %v3333_v29, %v1473_v28  ;;  %vm1481_vm5 = vweird.f32 %v3333_v29 }
 0x4e3   : > { %vm1482_vm7 = vmor %vm1480_vm6, %vm1481_vm5 }
 0x4e4   : > { %v1476_v31 = vmul.f32 %v3333_v29, %v1475_v30 }
 0x4e6   : > { %v1477_v32 = vmul.f32 0.5, %v1476_v31  ;;  %v1775_v31 = vld [vmem:[%s4386_s6 + $0x18] sm:$0xff] }
 0x4e8   : > { %v1478_v33 = vsub.f32 1.5, %v1477_v32  ;;  %v1774_v32 = vld [vmem:[%s4386_s6 + $0x10] sm:$0xff] }
 0x4ea   : > { %v1479_v34 = vmul.f32 %v3333_v29, %v1478_v33  ;;  %v1772_v33 = vld [vmem:[%s4386_s6] sm:$0xff] }
 0x4ec   : > { %v1483_v36 = vsel %vm1482_vm7, %v3333_v29, %v1479_v34 }
 0x4ed   : > { %v1484_v37 = vmul.f32 %v1483_v36, %v1467_v15  ;;  %v1551_v15 = vld [vmem:[%s3514_s14 + $0x28] sm:$0xff] }
 0x4ef   : > { %v1489_v39 = vmul.f32 %v3309_v35, %v1484_v37 }
 0x4f1   : > { %v1494_v40 = vadd.f32 %v3310_v38, %v1489_v39 }
 0x4f3   : > { %3160 = vmatmul.msk.f32.vlgmr.msra.gmra.mxu0 %vm4358_vm0, %v1494_v40  ;;  %3161 = vmatmul.msk.f32.vlgmr.msra.gmra.mxu1 %vm4358_vm0, %v1494_v40 }
 0x570   : > { %v1523_v41 = vpop.f32.mrf.mxu0  ;;  %v1543_v42 = vpop.f32.mrf.mxu1 }
 0x571   : > { %3164 = vmatpush.msk.msra.mxu3 %vm4357_vm2, %v1543_v42  ;;  %1623 = vrot.lane.b32.xlu1 %v1523_v41, %s3441_s22  ;;  %s4395_s22 = sld [smem:[#allocation24_spill]] }
 0x572   : > { %1555 = vrot.lane.b32.xlu2 %v1523_v41, %s3442_s23  ;;  %s1154_s23 = scalar_lea.vmem %s4393_s4, %s3149_s0  ;;  %s4398_s0 = sld [smem:[#allocation25_spill]] }
 0x573   : > { %1726 = vmatpush.msrb.mxu3 %v1549_v62  ;;  %s4407_s4 = sld [smem:[#allocation18_spill]] }
 0x575   : > { %1727 = vmatpush.msrb.mxu3 %v1548_v63 }
 0x577   : > { %1728 = vmatpush.msrb.mxu3 %v1547_v1 }
 0x579   : > { %1729 = vmatpush.msrb.mxu3 %v1546_v13  ;;  %v1850_v13 = vld [vmem:[%s4394_s16] sm:$0xff]  ;;  %s4400_s16 = sld [smem:[#allocation15_spill]] }
 0x57a   : > { %1621 = vrot.lane.b32.xlu2 %v1523_v41, %s3443_s26 }
 0x5cc   : > { %v1556_v43 = vpop.permute.xlu2 %1555 }
 0x5cd   : > { %3162 = vmatpush.xpose.msk.msrb.mxu2 %vm4358_vm0, %v1556_v43 }
 0x5d0   : > { %3163 = vmatmul.msk.f32.vlgmr.msrb.gmra.mxu2 %vm4358_vm0, %v1523_v41 }
 0x5d1   : > { %1703 = vmatpush.msra.mxu2 %v1553_v0 }
 0x5d3   : > { %1704 = vmatpush.msra.mxu2 %v1552_v14  ;;  %v2650_v14 = vld [vmem:[%s4395_s22 + $0x18] sm:$0xff] }
 0x5d4   : > { %v1622_v45 = vpop.permute.xlu2 %1621 }
 0x5d5   : > { %1705 = vmatpush.msra.mxu2 %v1551_v15  ;;  %v2649_v15 = vld [vmem:[%s4395_s22 + $0x10] sm:$0xff] }
 0x5d7   : > { %1706 = vmatpush.msra.mxu2 %v1550_v16  ;;  %v2648_v16 = vld [vmem:[%s4395_s22 + $0x8] sm:$0xff] }
 0x5e3   : > { %v1624_v44 = vpop.permute.xlu1 %1623 }
 0x5e4   : > { %3166 = vmatpush.xpose.msk.msrb.mxu0 %vm4358_vm0, %v1624_v44  ;;  %v3313_v44 = vld [vmem:[%s3529_s30] ss:$0 sm:$0xff] }
 0x5e7   : > { %3167 = vmatmul.msk.f32.vlgmr.msrb.gmra.mxu0 %vm4358_vm0, %v1622_v45 }
 0x5e8   : > { %1795 = vmatpush.msra.mxu0 %v1775_v31 }
 0x5ea   : > { %1796 = vmatpush.msra.mxu0 %v1774_v32  ;;  %v2093_v32 = vld [vmem:[%s4400_s16] sm:$0xff] }
 0x653   : > { %v1578_v46 = vpop.f32.mrf.mxu2 }
 0x654   : > { %v1581_v47 = vmul.f32 0.17677669, %v1578_v46 }
 0x656   : > { %v1583_v48 = vsel %vm1582_vm8, %v1581_v47, -inf }
 0x657   : > { %1584 = vmax.xlane.f32.xlu2 %v1583_v48  ;;  %v1818_v48 = vld [vmem:[%s4389_s28 + $0x30] sm:$0xff] }
 0x664   : > { %v1646_v49 = vpop.f32.mrf.mxu0 }
 0x665   : > { %v1649_v50 = vmul.f32 0.17677669, %v1646_v49  ;;  %v1817_v49 = vld [vmem:[%s4389_s28 + $0x28] sm:$0xff] }
 0x667   : > { %v1650_v51 = vsel %vm1582_vm8, %v1649_v50, -inf }
 0x668   : > { %1651 = vmax.xlane.f32.xlu1 %v1650_v51  ;;  %v1815_v51 = vld [vmem:[%s4389_s28 + $0x18] sm:$0xff] }
 0x6ca   : > { %v1585_v52 = vpop.xlane.xlu2 %1584 }
 0x6cb   : > { %v1586_v55 = vsub.f32 %v1581_v47, %v1585_v52  ;;  %v1819_v47 = vld [vmem:[%s4389_s28 + $0x38] sm:$0xff]  ;;  %v1814_v52 = vld [vmem:[%s4389_s28 + $0x10] sm:$0xff] }
 0x6cd   : > { %v1587_v57 = vmul.f32 1.442695, %v1586_v55  ;;  %v3314_v55 = vld [vmem:[%s4390_s1] ss:$0 sm:$0xff]  ;;  %s4397_s1 = sld [smem:[#allocation11_spill]] }
 0x6d3   : > { %v1883_v31 = vld [vmem:[%s4397_s1 + $0x18] sm:$0xff] }
 0x6db   : > { %v1652_v53 = vpop.xlane.xlu1 %1651 }
 0x6dc   : > { %v1653_v54 = vsub.f32 %v1649_v50, %v1652_v53  ;;  %v1816_v50 = vld [vmem:[%s4389_s28 + $0x20] sm:$0xff]  ;;  %v1813_v53 = vld [vmem:[%s4389_s28 + $0x8] sm:$0xff] }
 0x6de   : > { %v1654_v56 = vmul.f32 1.442695, %v1653_v54  ;;  %v1812_v54 = vld [vmem:[%s4389_s28] sm:$0xff] }
 0x6e0   : > { %3334 = vpow2.f32 %v1654_v56 }
 0x6e1   : > { %3336 = vpow2.f32 %v1587_v57 }
 0x6e6   : > { %v3335_v58 = vpop.eup %3334 }
 0x6e7   : > { %v1656_v59 = vsel %vm1582_vm8, %v3335_v58, 0.0  ;;  %v3337_v60 = vpop.eup %3336 }
 0x6e8   : > { %1657 = vadd.xlane.f32.xlu0 %v1656_v59  ;;  %v1589_v61 = vsel %vm1582_vm8, %v3337_v60, 0.0 }
 0x6f0   : > { %1590 = vadd.xlane.f32.xlu0 %v1589_v61 }
 0x704   : > { %1661 = vrot.lane.b32.xlu0 %v1543_v42, %s3443_s26  ;;  %s4396_s26 = sld [smem:[#allocation10_spill]] }
 0x75b   : > { %v1658_v3 = vpop.xlane.xlu0 %1657 }
 0x763   : > { %v1591_v7 = vpop.xlane.xlu0 %1590 }
 0x764   : > { %3338 = vrcp.f32 %v1591_v7  ;;  %v2023_v7 = vld [vmem:[%s4391_s2] sm:$0xff] }
 0x765   : > { %3340 = vrcp.f32 %v1658_v3 }
 0x76a   : > { %v3339_v8 = vpop.eup %3338 }
 0x76b   : > { %v1593_v9 = vmul.f32 %v3339_v8, %v3337_v60  ;;  %v3341_v10 = vpop.eup %3340  ;;  %v2024_v8 = vld [vmem:[%s4391_s2 + $0x8] sm:$0xff]  ;;  %s4405_s2 = smov 16  }
 0x76c   : > { %v1660_v11 = vmul.f32 %v3341_v10, %v3335_v58 }
 0x76d   : > { %3165 = vmatmul.msk.f32.vlgmr.msra.gmra.mxu3 %vm4356_vm9, %v1593_v9  ;;  %v3315_v9 = vld [vmem:[%s4392_s11] ss:$0 sm:$0xff]  ;;  %s4399_s11 = sld [smem:[#allocation14_spill]] }
 0x776   : > { %v1662_v12 = vpop.permute.xlu0 %1661 }
 0x777   : > { %3168 = vmatpush.msk.msrb.mxu1 %vm4357_vm2, %v1662_v12 }
 0x778   : > { %3169 = vmatmul.msk.f32.vlgmr.msrb.gmra.mxu1 %vm4356_vm9, %v1660_v11 }
 0x779   : > { %1836 = vmatpush.msra.mxu1 %v1819_v47 }
 0x77b   : > { %1837 = vmatpush.msra.mxu1 %v1818_v48 }
 0x77d   : > { %1838 = vmatpush.msra.mxu1 %v1817_v49 }
 0x77f   : > { %1839 = vmatpush.msra.mxu1 %v1816_v50 }
 0x781   : > { %1840 = vmatpush.msra.mxu1 %v1815_v51 }
 0x783   : > { %1841 = vmatpush.msra.mxu1 %v1814_v52 }
 0x785   : > { %1842 = vmatpush.msra.mxu1 %v1813_v53 }
 0x787   : > { %1843 = vmatpush.msra.mxu1 %v1812_v54 }
 0x7f0   : > { %v1618_v17 = vpop.f32.mrf.mxu3 }
 0x7f1   : > { %3171 = vmatmul.msk.f32.vlgmr.msrb.gmra.mxu3 %vm4358_vm0, %v1618_v17  ;;  %v2647_v17 = vld [vmem:[%s4395_s22] sm:$0xff] }
 0x7f5   : > { %v1685_v18 = vpop.f32.mrf.mxu1 }
 0x7f6   : > { %3170 = vmatmul.msk.f32.vlgmr.msra.gmra.mxu2 %vm4358_vm0, %v1685_v18 }
 0x874   : > { %v1731_v19 = vpop.f32.mrf.mxu3 }
 0x879   : > { %v1708_v20 = vpop.f32.mrf.mxu2 }
 0x87a   : > { %v1732_v21 = vadd.f32 %v1731_v19, %v1708_v20 }
 0x87c   : > { %v1734_v23 = vadd.f32 %v1732_v21, %v3714_v2  ;;  %v1773_v2 = vld [vmem:[%s4386_s6 + $0x8] sm:$0xff]  ;;  %v1880_v21 = vld [vmem:[%s4397_s1] sm:$0xff]  ;;  %s4408_s6 = smov 15  }
 0x87d   : > { %1797 = vmatpush.msra.mxu0 %v1773_v2  ;;  %v1884_v2 = vld [vmem:[%s4397_s1 + $0x20] sm:$0xff] }
 0x87e   : > { %v3762_v24 = vadd.f32 %v3311_v22, %v1734_v23  ;;  %v1881_v23 = vld [vmem:[%s4397_s1 + $0x8] sm:$0xff] }
 0x87f   : > { %1798 = vmatpush.msra.mxu0 %v1772_v33  ;;  %v2078_v33 = vld [vmem:[%s4399_s11 + $0x8] sm:$0xff] }
 0x880   : > { %v1740_v25 = vsel %vm1455_vm3, %v3762_v24, 0.0 }
 0x881   : > { %1741 = vadd.xlane.f32.xlu0 %v1740_v25  ;;  %2046 = vmatpush.msrb.mxu0 %v3682_v5  ;;  %v3312_v5 = vld [vmem:[%s3524_s24] ss:$0 sm:$0xff]  ;;  %v1882_v25 = vld [vmem:[%s4397_s1 + $0x10] sm:$0xff] }
 0x8f4   : > { %v1742_v26 = vpop.xlane.xlu0 %1741 }
 0x8f5   : > { %v1743_v27 = vmul.f32 %v1742_v26, %v3718_v4  ;;  %v3316_v26 = vld [vmem:[%s4398_s0] ss:$0 sm:$0xff]  ;;  %s4347_s0 = smov 15  }
 0x8f7   : > { %v1744_v28 = vsub.f32 %v3762_v24, %v1743_v27  ;;  %v2077_v27 = vld [vmem:[%s4399_s11] sm:$0xff] }
 0x8f9   : > { %v1745_v29 = vmul.f32 %v1744_v28, %v1744_v28 }
 0x8fb   : > { %v1746_v30 = vsel %vm1455_vm3, %v1745_v29, 0.0 }
 0x8fc   : > { %1747 = vadd.xlane.f32.xlu2 %v1746_v30 }
 0x96f   : > { %v1748_v34 = vpop.xlane.xlu2 %1747 }
 0x970   : > { %v1749_v35 = vmul.f32 %v1748_v34, %v3718_v4 }
 0x972   : > { %v1750_v36 = vadd.f32 1e-05, %v1749_v35  ;;  %v3445_v35 = vmov 2  }
 0x974   : > { %3342 = vrsqrt.f32 %v1750_v36  ;;  %vm1757_vm11 = vweird.f32 %v1750_v36 }
 0x97a   : > { %v3343_v37 = vpop.eup %3342 }
 0x97b   : > { %v1752_v38 = vmul.f32 %v3343_v37, %v1750_v36  ;;  %vm1758_vm10 = vweird.f32 %v3343_v37  ;;  %v1885_v36 = vld [vmem:[%s4397_s1 + $0x28] sm:$0xff] }
 0x97c   : > { %vm1759_vm12 = vmor %vm1757_vm11, %vm1758_vm10 }
 0x97d   : > { %v1753_v39 = vmul.f32 %v3343_v37, %v1752_v38 }
 0x97f   : > { %v1754_v40 = vmul.f32 0.5, %v1753_v39  ;;  %v1886_v39 = vld [vmem:[%s4397_s1 + $0x30] sm:$0xff] }
 0x981   : > { %v1755_v41 = vsub.f32 1.5, %v1754_v40  ;;  %v3446_v40 = vmov 3  }
 0x983   : > { %v1756_v42 = vmul.f32 %v3343_v37, %v1755_v41  ;;  %v1887_v41 = vld [vmem:[%s4397_s1 + $0x38] sm:$0xff]  ;;  %s4349_s1 = smov 1  }
 0x985   : > { %v1760_v43 = vsel %vm1759_vm12, %v3343_v37, %v1756_v42  ;;  %v2094_v37 = vld [vmem:[%s4400_s16 + $0x8] sm:$0xff]  ;;  %v3447_v42 = vmov 1  }
 0x986   : > { %v1761_v4 = vmul.f32 %v1760_v43, %v1744_v28  ;;  %v3444_v28 = vmov 0   ;;  %3291 = vset.pattern.permute.xlu0 %v3447_v42  ;;  %v3449_v43 = vmov 5  }
 0x987   : > { %3288 = vset.pattern.permute.xlu2 %v3444_v28  ;;  %3287 = vset.pattern.permute.xlu1 %v3444_v28 }
 0x988   : > { %v1766_v45 = vmul.f32 %v3312_v5, %v1761_v4  ;;  %2081 = vperm.xlu2 %3288, %v2077_v27   ;;  %2086 = vperm.xlu1 %3287, %v2078_v33   ;;  %v3448_v5 = vmov 4   ;;  %v3450_v4 = vmov 6  }
 0x98a   : > { %v1771_v46 = vadd.f32 %v3313_v44, %v1766_v45  ;;  %v3451_v44 = vmov 7   ;;  %v3452_v45 = vmov 8  }
 0x98c   : > { %3172 = vmatmul.msk.f32.vlgmr.msra.gmra.mxu0 %vm4358_vm0, %v1771_v46 }
 0x990   : > { %2097 = vperm.xlu2 %3288, %v2093_v32   ;;  %2102 = vperm.xlu1 %3287, %v2094_v37  }
 0x994   : > { %3192 = vmatmul.msk.f32.vlgmr.msrb.gmra.mxu0 %vm4359_vm1, %v2023_v7 }
 0x998   : > { %3292 = vset.pattern.permute.xlu2 %v3445_v35 }
 0x99c   : > { %3193 = vmatmul.msk.f32.gmra.mxu0 %vm4359_vm1, %v2024_v8 }
 0x9e2   : > { %v2082_v46 = vpop.permute.xlu2 %2081 }
 0x9ea   : > { %v2098_v54 = vpop.permute.xlu2 %2097 }
 0xa09   : > { %v1800_v56 = vpop.f32.mrf.mxu0 }
 0xa0a   : > { %v1801_v57 = vadd.f32 %v3314_v55, %v1800_v56 }
 0xa0c   : > { %v1804_v58 = vmul.f32 0.044715, %v1801_v57  ;;  %v1803_v0 = vmul.f32 0.5, %v1801_v57 }
 0xa0e   : > { %v1805_v59 = vmul.f32 %v1804_v58, %v1801_v57 }
 0xa10   : > { %v1806_v60 = vmul.f32 %v1805_v59, %v1801_v57 }
 0xa11   : > { %v2048_v35 = vpop.f32.mrf.mxu0 }
 0xa12   : > { %v1807_v61 = vadd.f32 %v1806_v60, %v1801_v57  ;;  %v2089_v37 = vmul.f32 %v2082_v46, %v2048_v35 }
 0xa14   : > { %v1808_v62 = vmul.f32 0.7978846, %v1807_v61 }
 0xa16   : > { %3344 = vtanh.f32 %v1808_v62 }
 0xa1c   : > { %v3345_v63 = vpop.eup %3344 }
 0xa1d   : > { %v1810_v1 = vadd.f32 1.0, %v3345_v63 }
 0xa1f   : > { %v1811_v3 = vmul.f32 %v1810_v1, %v1803_v0 }
 0xa21   : > { %3173 = vmatmul.msk.f32.vlgmr.msra.gmra.mxu1 %vm1824_vm13, %v1811_v3 }
 0xa9e   : > { %v1845_v10 = vpop.f32.mrf.mxu1 }
 0xa9f   : > { %v1846_v11 = vadd.f32 %v3315_v9, %v1845_v10 }
 0xaa1   : > { %v3796_v12 = vadd.f32 %v1846_v11, %v3762_v24 }
 0xaa3   : > { %1849 = vst.msk [vmem:[%s1154_s23] sm:$0x3f] %vm1455_vm3, %v3796_v12  ;;  %3174 = vmatpush.xpose.msk.msrb.mxu2 %vm4358_vm0, %v3796_v12  ;;  %s4401_s23 = sld [smem:[#allocation16_spill]] }
 0xaa6   : > { %3175 = vmatmul.msk.f32.vlgmr.msrb.gmra.mxu2 %vm4358_vm0, %v1850_v13 }
 0xaa7   : > { %2069 = vmatpush.msra.mxu2 %v3684_v6  ;;  %v1877_v6 = vld [vmem:[%s4396_s26] sm:$0xff]  ;;  %s4402_s26 = sld [smem:[#allocation12_spill]] }
 0xaa9   : > { %2667 = vmatpush.msrb.mxu2 %v2650_v14  ;;  %v2175_v34 = vld [vmem:[%s4401_s23 + $0x8] sm:$0xff]  ;;  %v3843_v38 = vld [vmem:[%s4401_s23] sm:$0xff] }
 0xaaa   : > { %2288 = vperm.xlu2 %3292, %v2175_v34   ;;  %2210 = vperm.xlu1 %3287, %v2175_v34  }
 0xaab   : > { %2668 = vmatpush.msrb.mxu2 %v2649_v15  ;;  %2243 = vperm.xlu0 %3291, %v3843_v38  }
 0xaad   : > { %2669 = vmatpush.msrb.mxu2 %v2648_v16  ;;  %v1888_v47 = vld [vmem:[%s4402_s26] sm:$0xff]  ;;  %v1889_v53 = vld [vmem:[%s4402_s26 + $0x8] sm:$0xff]  ;;  %v1890_v62 = vld [vmem:[%s4402_s26 + $0x10] sm:$0xff] }
 0xaae   : > { %3194 = vmatmul.msk.f32.vlgmr.msra.gmra.mxu2 %vm4359_vm1, %v2023_v7  ;;  %v1891_v10 = vld [vmem:[%s4402_s26 + $0x18] sm:$0xff] }
 0xaaf   : > { %2670 = vmatpush.msrb.mxu2 %v2647_v17 }
 0xab2   : > { %2284 = vperm.xlu2 %3292, %v3843_v38   ;;  %3289 = vset.pattern.permute.xlu1 %v3447_v42  ;;  %v3871_v42 = vadd.f32 %v2098_v54, %v2089_v37 }
 0xab3   : > { %2247 = vperm.xlu1 %3289, %v2175_v34   ;;  %3295 = vset.pattern.permute.xlu0 %v3448_v5 }
 0xab4   : > { %2341 = vperm.xlu0 %3295, %v2175_v34  }
 0xab6   : > { %3195 = vmatmul.msk.f32.gmra.mxu2 %vm4359_vm1, %v2024_v8 }
 0xaba   : > { %3293 = vset.pattern.permute.xlu2 %v3446_v40 }
 0xabb   : > { %2325 = vperm.xlu2 %3293, %v2175_v34   ;;  %3290 = vset.pattern.permute.xlu1 %v3444_v28 }
 0xabc   : > { %2205 = vperm.xlu1 %3290, %v3843_v38   ;;  %3304 = vset.pattern.permute.xlu0 %v3444_v28 }
 0xabe   : > { %3199 = vmatmul.msk.f32.vlgmr.msrb.gmra.mxu2 %vm4358_vm0, %v3796_v12 }
 0xac3   : > { %3296 = vset.pattern.permute.xlu2 %v3448_v5 }
 0xac4   : > { %2337 = vperm.xlu2 %3296, %v3843_v38   ;;  %3294 = vset.pattern.permute.xlu1 %v3446_v40 }
 0xac5   : > { %2321 = vperm.xlu1 %3294, %v3843_v38  }
 0xacc   : > { %3297 = vset.pattern.permute.xlu2 %v3449_v43 }
 0xacd   : > { %2378 = vperm.xlu2 %3297, %v2175_v34   ;;  %3299 = vset.pattern.permute.xlu1 %v3451_v44 }
 0xace   : > { %2456 = vperm.xlu1 %3299, %v2175_v34  }
 0xad5   : > { %2374 = vperm.xlu2 %3297, %v3843_v38  }
 0xad6   : > { %3303 = vset.pattern.permute.xlu1 %v3444_v28 }
 0xadd   : > { %3298 = vset.pattern.permute.xlu2 %v3450_v4 }
 0xade   : > { %2419 = vperm.xlu2 %3298, %v2175_v34  }
 0xae6   : > { %2415 = vperm.xlu2 %3298, %v3843_v38  }
 0xaee   : > { %3300 = vset.pattern.permute.xlu2 %v3451_v44 }
 0xaef   : > { %2452 = vperm.xlu2 %3300, %v3843_v38  }
 0xaf7   : > { %3301 = vset.pattern.permute.xlu2 %v3452_v45 }
 0xaf8   : > { %2495 = vperm.xlu2 %3301, %v2175_v34   ;;  %v1893_v34 = vld [vmem:[%s4402_s26 + $0x28] sm:$0xff] }
 0xb00   : > { %3302 = vset.pattern.permute.xlu2 %v3444_v28 }
 0xb29   : > { %v1874_v18 = vpop.f32.mrf.mxu2 }
 0xb2a   : > { %v1878_v19 = vadd.f32 %v1877_v6, %v1874_v18 }
 0xb2c   : > { %v1879_v20 = vmax.f32 %v1878_v19, 0.0 }
 0xb2e   : > { %1935 = vmatpush.msra.mxu3 %v1879_v20 }
 0xb2f   : > { %3176 = vmatmul.msk.f32.vlgmr.msra.gmra.mxu3 %vm4359_vm1, %v1880_v21  ;;  %v1892_v21 = vld [vmem:[%s4402_s26 + $0x20] sm:$0xff] }
 0xb31   : > { %v3816_v22 = vpop.f32.mrf.mxu2 }
 0xb32   : > { %v2090_v51 = vmul.f32 %v2082_v46, %v3816_v22 }
 0xb34   : > { %v3865_v56 = vadd.f32 %v2098_v54, %v2090_v51  ;;  %v2087_v54 = vpop.permute.xlu1 %2086 }
 0xb37   : > { %3177 = vmatmul.msk.f32.gmra.mxu3 %vm4359_vm1, %v1881_v23 }
 0xb39   : > { %v3820_v24 = vpop.f32.mrf.mxu2 }
 0xb3f   : > { %3178 = vmatmul.msk.f32.gmra.mxu3 %vm4359_vm1, %v1882_v25 }
 0xb41   : > { %v2672_v29 = vpop.f32.mrf.mxu2 }
 0xb42   : > { %v3828_v30 = vadd.f32 %v3316_v26, %v2672_v29 }
 0xb44   : > { %3202 = vmatpush.xpose.msk.msra.mxu2 %vm4359_vm1, %v3828_v30 }
 0xb47   : > { %3179 = vmatmul.msk.f32.gmra.mxu3 %vm4359_vm1, %v1883_v31 }
 0xb4f   : > { %3180 = vmatmul.msk.f32.gmra.mxu3 %vm4359_vm1, %v1884_v2 }
 0xb57   : > { %3181 = vmatmul.msk.f32.gmra.mxu3 %vm4359_vm1, %v1885_v36 }
 0xb5f   : > { %3182 = vmatmul.msk.f32.gmra.mxu3 %vm4359_vm1, %v1886_v39 }
 0xb67   : > { %3183 = vmatmul.msk.f32.gmra.mxu3 %vm4359_vm1, %v1887_v41 }
 0xbb2   : > { %v1937_v48 = vpop.f32.mrf.mxu3 }
 0xbb3   : > { %v1938_v49 = vadd.f32 %v1937_v48, %v1888_v47  ;;  %v1894_v48 = vld [vmem:[%s4402_s26 + $0x30] sm:$0xff] }
 0xbb5   : > { %v1961_v50 = vsub.f32 0.0, %v1938_v49 }
 0xbb7   : > { %v1969_v52 = vmul.f32 1.442695, %v1961_v50 }
 0xbb9   : > { %3346 = vpow2.f32 %v1969_v52 }
 0xbba   : > { %v1940_v55 = vpop.f32.mrf.mxu3 }
 0xbbb   : > { %v1941_v57 = vadd.f32 %v1940_v55, %v1889_v53 }
 0xbbd   : > { %v1962_v58 = vsub.f32 0.0, %v1941_v57 }
 0xbbf   : > { %v3347_v59 = vpop.eup %3346  ;;  %v1971_v60 = vmul.f32 1.442695, %v1962_v58 }
 0xbc0   : > { %v1985_v61 = vadd.f32 1.0, %v3347_v59  ;;  %v1895_v59 = vld [vmem:[%s4402_s26 + $0x38] sm:$0xff] }
 0xbc1   : > { %3348 = vpow2.f32 %v1971_v60 }
 0xbc2   : > { %3350 = vrcp.f32 %v1985_v61  ;;  %v1943_v63 = vpop.f32.mrf.mxu3  ;;  %v2051_v61 = vpop.f32.mrf.mxu0 }
 0xbc3   : > { %v1944_v0 = vadd.f32 %v1943_v63, %v1890_v62 }
 0xbc5   : > { %v1963_v1 = vsub.f32 0.0, %v1944_v0 }
 0xbc7   : > { %v3349_v3 = vpop.eup %3348  ;;  %v1973_v7 = vmul.f32 1.442695, %v1963_v1  ;;  %v2092_v1 = vmul.f32 %v2087_v54, %v3820_v24 }
 0xbc8   : > { %v3351_v8 = vpop.eup %3350  ;;  %v1986_v9 = vadd.f32 1.0, %v3349_v3  ;;  %v2091_v3 = vmul.f32 %v2087_v54, %v2051_v61 }
 0xbc9   : > { %3352 = vpow2.f32 %v1973_v7  ;;  %v2001_v11 = vmul.f32 2.0, %v3351_v8 }
 0xbca   : > { %3354 = vrcp.f32 %v1986_v9  ;;  %v1946_v13 = vpop.f32.mrf.mxu3 }
 0xbcb   : > { %v1947_v14 = vadd.f32 %v1946_v13, %v1891_v10  ;;  %v3184_v15 = vadd.f32 -1.0, %v2001_v11  ;;  %v2103_v11 = vpop.permute.xlu1 %2102 }
 0xbcd   : > { %v1964_v16 = vsub.f32 0.0, %v1947_v14  ;;  %v2017_v17 = vadd.f32 1.0, %v3184_v15  ;;  %v3876_v15 = vadd.f32 %v2103_v11, %v2092_v1 }
 0xbcf   : > { %v3353_v6 = vpop.eup %3352  ;;  %v1975_v18 = vmul.f32 1.442695, %v1964_v16  ;;  %2111 = vperm.xlu2 %3302, %v2017_v17   ;;  %v3878_v16 = vadd.f32 %v2103_v11, %v2091_v3 }
 0xbd0   : > { %v3355_v19 = vpop.eup %3354  ;;  %v1987_v20 = vadd.f32 1.0, %v3353_v6 }
 0xbd1   : > { %3356 = vpow2.f32 %v1975_v18  ;;  %v2002_v22 = vmul.f32 2.0, %v3355_v19 }
 0xbd2   : > { %3358 = vrcp.f32 %v1987_v20  ;;  %v1949_v23 = vpop.f32.mrf.mxu3 }
 0xbd3   : > { %v1950_v25 = vadd.f32 %v1949_v23, %v1892_v21  ;;  %v3185_v26 = vadd.f32 -1.0, %v2002_v22  ;;  %v3880_v22 = vpop.permute.xlu2 %2288 }
 0xbd5   : > { %v1965_v27 = vsub.f32 0.0, %v1950_v25  ;;  %v2018_v29 = vadd.f32 1.0, %v3185_v26 }
 0xbd7   : > { %v3357_v31 = vpop.eup %3356  ;;  %v1977_v32 = vmul.f32 1.442695, %v1965_v27  ;;  %2116 = vperm.xlu1 %3303, %v2018_v29  }
 0xbd8   : > { %v3359_v2 = vpop.eup %3358  ;;  %v1988_v33 = vadd.f32 1.0, %v3357_v31 }
 0xbd9   : > { %3360 = vpow2.f32 %v1977_v32  ;;  %v2003_v36 = vmul.f32 2.0, %v3359_v2 }
 0xbda   : > { %3362 = vrcp.f32 %v1988_v33  ;;  %v1952_v39 = vpop.f32.mrf.mxu3 }
 0xbdb   : > { %v1953_v40 = vadd.f32 %v1952_v39, %v1893_v34  ;;  %v3186_v41 = vadd.f32 -1.0, %v2003_v36  ;;  %v3882_v31 = vpop.permute.xlu2 %2284  ;;  %v3893_v36 = vpop.permute.xlu1 %2210 }
 0xbdd   : > { %v1966_v5 = vsub.f32 0.0, %v1953_v40  ;;  %2139 = vperm.xlu2 %3302, %v3186_v41  }
 0xbdf   : > { %v3361_v43 = vpop.eup %3360  ;;  %v1979_v4 = vmul.f32 1.442695, %v1966_v5 }
 0xbe0   : > { %v3363_v44 = vpop.eup %3362  ;;  %v1989_v47 = vadd.f32 1.0, %v3361_v43 }
 0xbe1   : > { %3364 = vpow2.f32 %v1979_v4  ;;  %v2004_v49 = vmul.f32 2.0, %v3363_v44 }
 0xbe2   : > { %3366 = vrcp.f32 %v1989_v47  ;;  %v1955_v50 = vpop.f32.mrf.mxu3 }
 0xbe3   : > { %v1956_v51 = vadd.f32 %v1955_v50, %v1894_v48  ;;  %v3187_v46 = vadd.f32 -1.0, %v2004_v49  ;;  %v3884_v2 = vpop.permute.xlu2 %2325  ;;  %v3897_v39 = vpop.permute.xlu1 %2247 }
 0xbe4   : > { %v3919_v50 = vpop.permute.xlu0 %2243 }
 0xbe5   : > { %v1967_v52 = vsub.f32 0.0, %v1956_v51  ;;  %2144 = vperm.xlu0 %3304, %v3187_v46  }
 0xbe7   : > { %v3365_v53 = vpop.eup %3364  ;;  %v1981_v55 = vmul.f32 1.442695, %v1967_v52 }
 0xbe8   : > { %v3367_v57 = vpop.eup %3366  ;;  %v1990_v58 = vadd.f32 1.0, %v3365_v53 }
 0xbe9   : > { %3368 = vpow2.f32 %v1981_v55  ;;  %v2005_v60 = vmul.f32 2.0, %v3367_v57 }
 0xbea   : > { %3370 = vrcp.f32 %v1990_v58  ;;  %v1958_v62 = vpop.f32.mrf.mxu3 }
 0xbeb   : > { %v1959_v63 = vadd.f32 %v1958_v62, %v1895_v59  ;;  %v3188_v0 = vadd.f32 -1.0, %v2005_v60  ;;  %v3887_v33 = vpop.permute.xlu2 %2337  ;;  %v3901_v41 = vpop.permute.xlu1 %2205 }
 0xbed   : > { %v1968_v7 = vsub.f32 0.0, %v1959_v63  ;;  %v2019_v8 = vmul.f32 0.5, %v3188_v0 }
 0xbef   : > { %v3369_v9 = vpop.eup %3368  ;;  %v1983_v10 = vmul.f32 1.442695, %v1968_v7  ;;  %2125 = vperm.xlu2 %3302, %v2019_v8  }
 0xbf0   : > { %v3371_v13 = vpop.eup %3370  ;;  %v1991_v14 = vadd.f32 1.0, %v3369_v9 }
 0xbf1   : > { %3372 = vpow2.f32 %v1983_v10  ;;  %v2006_v17 = vmul.f32 2.0, %v3371_v13 }
 0xbf2   : > { %3374 = vrcp.f32 %v1991_v14 }
 0xbf3   : > { %v3189_v6 = vadd.f32 -1.0, %v2006_v17  ;;  %v3889_v34 = vpop.permute.xlu2 %2378  ;;  %v3905_v43 = vpop.permute.xlu1 %2321  ;;  %v2507_v17 = vld [vmem:[%s4406_s3 + $0x8] sm:$0xff] }
 0xbf5   : > { %v2020_v18 = vmul.f32 0.5, %v3189_v6 }
 0xbf7   : > { %v3373_v19 = vpop.eup %3372  ;;  %2130 = vperm.xlu1 %3303, %v2020_v18   ;;  %v2611_v18 = vld [vmem:[%s4410_s8] sm:$0xff]  ;;  %s4428_s8 = sld [smem:[#allocation19_spill]] }
 0xbf8   : > { %v3375_v24 = vpop.eup %3374  ;;  %v1992_v20 = vadd.f32 1.0, %v3373_v19  ;;  %v2523_v19 = vld [vmem:[%s4407_s4 + $0x8] sm:$0xff] }
 0xbf9   : > { %v2007_v21 = vmul.f32 2.0, %v3375_v24  ;;  %v2169_v24 = vlaneseq }
 0xbfa   : > { %3376 = vrcp.f32 %v1992_v20 }
 0xbfb   : > { %v3190_v23 = vadd.f32 -1.0, %v2007_v21  ;;  %v3891_v35 = vpop.permute.xlu2 %2374  ;;  %v3909_v4 = vpop.permute.xlu1 %2456  ;;  %v4026_v20 = vand.u32 127, %v2169_v24 }
 0xbfd   : > { %v2021_v25 = vmul.f32 0.5, %v3190_v23  ;;  %vm2184_vm14 = vcmp.lt.s32.totalorder %v4026_v20, 17  ;;  %vm2189_vm15 = vcmp.ge.s32.totalorder %v4026_v20, 16  ;;  %vm2266_vm4 = vcmp.lt.s32.totalorder %v4026_v20, 15 }
 0xbfe   : > { %vm2229_vm10 = vcmp.lt.s32.totalorder %v4026_v20, 16  ;;  %vm2307_vm12 = vcmp.lt.s32.totalorder %v4026_v20, 1  ;;  %vm2360_vm13 = vcmp.lt.s32.totalorder %v4026_v20, 127  ;;  %vm2397_vm2 = vcmp.lt.s32.totalorder %v4026_v20, 113 }
 0xbff   : > { %2153 = vperm.xlu1 %3303, %v2021_v25   ;;  %v4030_v25 = vadd.s32 128, %v4026_v20  ;;  %vm2438_vm1 = vcmp.lt.s32.totalorder %v4026_v20, 112 }
 0xc00   : > { %v3377_v26 = vpop.eup %3376 }
 0xc01   : > { %v2008_v27 = vmul.f32 2.0, %v3377_v26  ;;  %v2172_v26 = vand.u32 15, %v4026_v20  ;;  %vm2403_vm9 = vcmp.lt.s32.totalorder %v4030_v25, 240 }
 0xc03   : > { %v3191_v29 = vadd.f32 -1.0, %v2008_v27  ;;  %v3895_v37 = vpop.permute.xlu2 %2419  ;;  %v2173_v27 = vand.u32 15, %v4030_v25  ;;  %vm4036_vm3 = vcmp.gt.s32.totalorder %v2172_v26, 0  ;;  %vm4041_vm5 = vcmp.lt.s32.totalorder %v2172_v26, 15 }
 0xc04   : > { %vm4055_vm7 = vmand %vm2189_vm15, %vm4036_vm3 }
 0xc05   : > { %v2022_v32 = vmul.f32 0.5, %v3191_v29  ;;  %vm4045_vm6 = vcmp.gt.s32.totalorder %v2173_v27, 0  ;;  %vm4061_vm8 = vcmp.lt.s32.totalorder %v2173_v27, 15  ;;  %vm4074_vm11 = vmand %vm2189_vm15, %vm4041_vm5 }
 0xc06   : > { %vm4132_vm0 = vmand %vm2403_vm9, %vm4045_vm6 }
 0xc07   : > { %2158 = vperm.xlu1 %3303, %v2022_v32  }
 0xc0b   : > { %v3899_v40 = vpop.permute.xlu2 %2415 }
 0xc0f   : > { %3305 = vset.pattern.permute.xlu1 %v3452_v45 }
 0xc13   : > { %v3903_v5 = vpop.permute.xlu2 %2452 }
 0xc1b   : > { %v3907_v45 = vpop.permute.xlu2 %2495 }
 0xc29   : > { %v3911_v44 = vpop.permute.xlu2 %2111 }
 0xc2a   : > { %v2119_v46 = vmul.f32 %v3911_v44, %v3871_v42  ;;  %v2120_v52 = vmul.f32 %v3911_v44, %v3865_v56 }
 0xc37   : > { %v3915_v48 = vpop.permute.xlu2 %2139 }
 0xc38   : > { %v2147_v53 = vmul.f32 %v3915_v48, %v3871_v42  ;;  %v2148_v55 = vmul.f32 %v3915_v48, %v3865_v56  ;;  %v3947_v56 = vpop.permute.xlu0 %2341 }
 0xc49   : > { %v3913_v47 = vpop.permute.xlu1 %2116  ;;  %v3921_v51 = vpop.permute.xlu2 %2125 }
 0xc4a   : > { %v2133_v57 = vadd.f32 %v3921_v51, %v2119_v46  ;;  %v2134_v58 = vadd.f32 %v3921_v51, %v2120_v52  ;;  %v2121_v1 = vmul.f32 %v3913_v47, %v3878_v16  ;;  %v2122_v10 = vmul.f32 %v3913_v47, %v3876_v15 }
 0xc57   : > { %v3955_v42 = vpop.permute.xlu0 %2144 }
 0xc58   : > { %v2149_v0 = vmul.f32 %v3955_v42, %v3878_v16  ;;  %v2150_v9 = vmul.f32 %v3955_v42, %v3876_v15  ;;  %v2506_v15 = vld [vmem:[%s4406_s3] sm:$0xff] }
 0xc59   : > { %v2522_v16 = vld [vmem:[%s4407_s4] sm:$0xff] }
 0xc69   : > { %v3917_v49 = vpop.permute.xlu1 %2130 }
 0xc6a   : > { %v2135_v7 = vadd.f32 %v3917_v49, %v2121_v1  ;;  %v2136_v13 = vadd.f32 %v3917_v49, %v2122_v10 }
 0xc71   : > { %v3931_v54 = vpop.permute.xlu1 %2153 }
 0xc72   : > { %v2161_v59 = vadd.f32 %v3931_v54, %v2147_v53  ;;  %v2162_v60 = vadd.f32 %v3931_v54, %v2148_v55 }
 0xc74   : > { %v3937_v61 = vmax.f32 %v2133_v57, %v2161_v59  ;;  %v3939_v62 = vmax.f32 %v2134_v58, %v2162_v60 }
 0xc76   : > { %2262 = vrot.lane.b32.xlu1 %v3939_v62, %s4347_s0  ;;  %2180 = vrot.lane.b32.xlu2 %v3939_v62, %s4341_s15 }
 0xc77   : > { %2176 = vrot.lane.b32.xlu0 %v3937_v61, %s4341_s15  ;;  %s4345_s15 = smov 127  }
 0xc79   : > { %v3957_v63 = vpop.permute.xlu1 %2158 }
 0xc7a   : > { %v2163_v3 = vadd.f32 %v3957_v63, %v2149_v0  ;;  %v2164_v11 = vadd.f32 %v3957_v63, %v2150_v9 }
 0xc7c   : > { %v3971_v8 = vmax.f32 %v2135_v7, %v2163_v3  ;;  %v3990_v14 = vmax.f32 %v2136_v13, %v2164_v11 }
 0xc7e   : > { %2225 = vrot.lane.b32.xlu2 %v3939_v62, %s4343_s18  ;;  %2299 = vrot.lane.b32.xlu1 %v3937_v61, %s4349_s1 }
 0xc7f   : > { %2221 = vrot.lane.b32.xlu0 %v3937_v61, %s4343_s18  ;;  %s4353_s18 = smov 113  }
 0xc86   : > { %2352 = vrot.lane.b32.xlu1 %v3937_v61, %s4345_s15  ;;  %2258 = vrot.lane.b32.xlu2 %v3937_v61, %s4347_s0  ;;  %s4403_s15 = smov 17   ;;  %s4404_s0 = smov 127  }
 0xc87   : > { %2303 = vrot.lane.b32.xlu0 %v3939_v62, %s4349_s1  ;;  %s3459_s1 = smov 112  }
 0xc8e   : > { %2389 = vrot.lane.b32.xlu1 %v3937_v61, %s4353_s18  ;;  %2178 = vrot.lane.b32.xlu2 %v3971_v8, %s4403_s15 }
 0xc8f   : > { %2356 = vrot.lane.b32.xlu0 %v3939_v62, %s4404_s0 }
 0xc96   : > { %2430 = vrot.lane.b32.xlu1 %v3937_v61, %s3459_s1  ;;  %2223 = vrot.lane.b32.xlu2 %v3971_v8, %s4405_s2 }
 0xc97   : > { %2393 = vrot.lane.b32.xlu0 %v3939_v62, %s4353_s18  ;;  %s4409_s18 = smov 1  }
 0xc9e   : > { %2467 = vrot.lane.b32.xlu1 %v3937_v61, %s3460_s5  ;;  %2264 = vrot.lane.b32.xlu2 %v3990_v14, %s4408_s6 }
 0xc9f   : > { %2434 = vrot.lane.b32.xlu0 %v3939_v62, %s3459_s1 }
 0xca6   : > { %2182 = vrot.lane.b32.xlu1 %v3990_v14, %s4403_s15  ;;  %2354 = vrot.lane.b32.xlu2 %v3971_v8, %s4404_s0  ;;  %s4411_s15 = smov 113  }
 0xca7   : > { %2471 = vrot.lane.b32.xlu0 %v3939_v62, %s3460_s5 }
 0xcae   : > { %2227 = vrot.lane.b32.xlu1 %v3990_v14, %s4405_s2  ;;  %2473 = vrot.lane.b32.xlu2 %v3990_v14, %s3460_s5  ;;  %s4431_s2 = sld [smem:[#allocation23_spill]] }
 0xcaf   : > { %2260 = vrot.lane.b32.xlu0 %v3971_v8, %s4408_s6  ;;  %s4412_s6 = sld [smem:[#allocation20_spill]] }
 0xcb5   : > { %v2603_v23 = vld [vmem:[%s4412_s6] sm:$0xff] }
 0xcb6   : > { %2301 = vrot.lane.b32.xlu1 %v3971_v8, %s4409_s18  ;;  %2510 = vperm.xlu2 %3302, %v2506_v15  }
 0xcb7   : > { %2305 = vrot.lane.b32.xlu0 %v3990_v14, %s4409_s18  ;;  %s4429_s18 = sld [smem:[#allocation22_spill]] }
 0xcbe   : > { %2358 = vrot.lane.b32.xlu1 %v3990_v14, %s4404_s0  ;;  %2526 = vperm.xlu2 %3302, %v2522_v16  }
 0xcbf   : > { %2395 = vrot.lane.b32.xlu0 %v3990_v14, %s4411_s15 }
 0xcc6   : > { %2391 = vrot.lane.b32.xlu1 %v3971_v8, %s4411_s15 }
 0xcc7   : > { %2436 = vrot.lane.b32.xlu0 %v3990_v14, %s3459_s1 }
 0xcce   : > { %2432 = vrot.lane.b32.xlu1 %v3971_v8, %s3459_s1  ;;  %s4455_s1 = sshll.u32 %s4457_s10, 4 }
 0xccf   : > { %2469 = vrot.lane.b32.xlu0 %v3971_v8, %s3460_s5  ;;  %s4423_s5 = smov 120   ;;  %s1150_s0 = scalar_lea.vmem %s3649_s27, %s4455_s1 }
 0xcd0   : > { %v2181_v6 = vpop.permute.xlu2 %2180 }
 0xcd6   : > { %2491 = vperm.xlu1 %3305, %v3843_v38  }
 0xcd7   : > { %2515 = vperm.xlu0 %3304, %v2507_v17  }
 0xcd8   : > { %v2226_v21 = vpop.permute.xlu2 %2225 }
 0xcde   : > { %3306 = vset.pattern.permute.xlu1 %v3444_v28 }
 0xcdf   : > { %2614 = vperm.xlu0 %3304, %v2611_v18   ;;  %2531 = vperm.xlu1 %3306, %v2523_v19  }
 0xce0   : > { %v2259_v53 = vpop.permute.xlu2 %2258 }
 0xce7   : > { %2606 = vperm.xlu1 %3306, %v2603_v23  }
 0xce8   : > { %v2263_v38 = vpop.permute.xlu1 %2262 }
 0xce9   : > { %v2177_v29 = vpop.permute.xlu0 %2176  ;;  %v2267_v59 = vsel %vm2266_vm4, %v2259_v53, %v2263_v38  ;;  %v2269_v0 = vsel %vm2266_vm4, %v2263_v38, %v2259_v53 }
 0xcea   : > { %v2185_v52 = vsel %vm2184_vm14, %v2177_v29, %v2181_v6  ;;  %v2187_v57 = vsel %vm2184_vm14, %v2181_v6, %v2177_v29  ;;  %v2280_v9 = vsel %vm4061_vm8, %v2267_v59, 0.0  ;;  %v2279_v13 = vsel %vm4074_vm11, %v2269_v0, 0.0 }
 0xceb   : > { %v2200_v1 = vsel %vm4045_vm6, %v2185_v52, 0.0  ;;  %v2292_v19 = vmul.f32 %v3882_v31, %v2280_v9  ;;  %v2291_v23 = vmul.f32 %v3882_v31, %v2279_v13 }
 0xcec   : > { %v2214_v15 = vmul.f32 %v3901_v41, %v2200_v1  ;;  %v2344_v1 = vmul.f32 %v3887_v33, %v3937_v61 }
 0xcef   : > { %2871 = vrot.lane.b32.xlu1 %v3828_v30, %s4423_s5  ;;  %v2199_v30 = vsel %vm4055_vm7, %v2187_v57, 0.0 }
 0xcf0   : > { %v2300_v3 = vpop.permute.xlu1 %2299  ;;  %v2213_v6 = vmul.f32 %v3901_v41, %v2199_v30  ;;  %v2345_v30 = vmul.f32 %v3887_v33, %v3939_v62 }
 0xcf1   : > { %v2222_v7 = vpop.permute.xlu0 %2221 }
 0xcf2   : > { %v2230_v10 = vsel %vm2229_vm10, %v2222_v7, %v2226_v21  ;;  %v2232_v11 = vsel %vm2229_vm10, %v2226_v21, %v2222_v7 }
 0xcf3   : > { %v2238_v16 = vsel %vm2189_vm15, %v2232_v11, 0.0  ;;  %v2251_v17 = vmul.f32 %v3919_v50, %v2230_v10 }
 0xcf4   : > { %v2250_v18 = vmul.f32 %v3919_v50, %v2238_v16 }
 0xcf5   : > { %v2255_v24 = vadd.f32 %v2251_v17, %v2214_v15 }
 0xcf6   : > { %v2254_v21 = vadd.f32 %v2250_v18, %v2213_v6 }
 0xcf7   : > { %v2296_v26 = vadd.f32 %v2292_v19, %v2255_v24 }
 0xcf8   : > { %v2353_v38 = vpop.permute.xlu1 %2352  ;;  %v2295_v27 = vadd.f32 %v2291_v23, %v2254_v21 }
 0xcf9   : > { %v2304_v29 = vpop.permute.xlu0 %2303 }
 0xcfa   : > { %v2308_v52 = vsel %vm2307_vm12, %v2300_v3, %v2304_v29  ;;  %v2310_v41 = vsel %vm2307_vm12, %v2304_v29, %v2300_v3 }
 0xcfb   : > { %v2316_v50 = vsel %vm4036_vm3, %v2310_v41, 0.0  ;;  %v2317_v53 = vsel %vm4045_vm6, %v2308_v52, 0.0  ;;  %v2179_v41 = vpop.permute.xlu2 %2178 }
 0xcfc   : > { %v2328_v31 = vmul.f32 %v3905_v43, %v2316_v50  ;;  %v2329_v57 = vmul.f32 %v3905_v43, %v2317_v53 }
 0xcfe   : > { %v2332_v59 = vadd.f32 %v2328_v31, %v2295_v27  ;;  %v2333_v0 = vadd.f32 %v2329_v57, %v2296_v26 }
 0xd00   : > { %v2390_v3 = vpop.permute.xlu1 %2389  ;;  %v2348_v7 = vadd.f32 %v2344_v1, %v2332_v59  ;;  %v2349_v9 = vadd.f32 %v2345_v30, %v2333_v0 }
 0xd01   : > { %v2357_v10 = vpop.permute.xlu0 %2356 }
 0xd02   : > { %v2361_v11 = vsel %vm2360_vm13, %v2353_v38, %v2357_v10  ;;  %v2363_v43 = vsel %vm2360_vm13, %v2357_v10, %v2353_v38 }
 0xd03   : > { %v2369_v13 = vsel %vm4041_vm5, %v2361_v11, 0.0  ;;  %v2370_v61 = vsel %vm4061_vm8, %v2363_v43, 0.0 }
 0xd04   : > { %v2381_v33 = vmul.f32 %v3891_v35, %v2369_v13  ;;  %v2382_v62 = vmul.f32 %v3891_v35, %v2370_v61 }
 0xd06   : > { %v2385_v15 = vadd.f32 %v2381_v33, %v2348_v7  ;;  %v2386_v16 = vadd.f32 %v2382_v62, %v2349_v9 }
 0xd08   : > { %v2431_v17 = vpop.permute.xlu1 %2430 }
 0xd09   : > { %v2394_v18 = vpop.permute.xlu0 %2393 }
 0xd0a   : > { %v2398_v19 = vsel %vm2397_vm2, %v2390_v3, %v2394_v18  ;;  %v2400_v35 = vsel %vm2397_vm2, %v2394_v18, %v2390_v3  ;;  %v2224_v3 = vpop.permute.xlu2 %2223 }
 0xd0b   : > { %v2410_v24 = vsel %vm4036_vm3, %v2398_v19, 0.0  ;;  %v2411_v23 = vsel %vm4132_vm0, %v2400_v35, 0.0 }
 0xd0c   : > { %v2422_v21 = vmul.f32 %v3899_v40, %v2410_v24  ;;  %v2423_v26 = vmul.f32 %v3899_v40, %v2411_v23 }
 0xd0e   : > { %v2426_v38 = vadd.f32 %v2422_v21, %v2385_v15  ;;  %v2427_v27 = vadd.f32 %v2423_v26, %v2386_v16 }
 0xd10   : > { %v4147_v29 = vpop.permute.xlu1 %2467 }
 0xd11   : > { %v2435_v52 = vpop.permute.xlu0 %2434 }
 0xd12   : > { %v2439_v50 = vsel %vm2438_vm1, %v2431_v17, %v2435_v52  ;;  %v2441_v53 = vsel %vm2438_vm1, %v2435_v52, %v2431_v17  ;;  %v2265_v10 = vpop.permute.xlu2 %2264 }
 0xd13   : > { %v2448_v31 = vsel %vm2403_vm9, %v2441_v53, 0.0  ;;  %v2459_v57 = vmul.f32 %v3903_v5, %v2439_v50 }
 0xd14   : > { %v2460_v40 = vmul.f32 %v3903_v5, %v2448_v31 }
 0xd15   : > { %v4157_v59 = vadd.f32 %v2459_v57, %v2426_v38 }
 0xd16   : > { %v4159_v0 = vadd.f32 %v2460_v40, %v2427_v27 }
 0xd18   : > { %v2183_v1 = vpop.permute.xlu1 %2182 }
 0xd19   : > { %v4161_v30 = vpop.permute.xlu0 %2471  ;;  %v2186_v61 = vsel %vm2184_vm14, %v2179_v41, %v2183_v1  ;;  %v2188_v5 = vsel %vm2184_vm14, %v2183_v1, %v2179_v41  ;;  %vm4432_vm14 = vcmask 261120  }
 0xd1a   : > { %v2355_v62 = vpop.permute.xlu2 %2354  ;;  %v2201_v19 = vsel %vm4055_vm7, %v2188_v5, 0.0  ;;  %v2202_v35 = vsel %vm4045_vm6, %v2186_v61, 0.0 }
 0xd1b   : > { %v2215_v27 = vmul.f32 %v3893_v36, %v2201_v19  ;;  %v2216_v52 = vmul.f32 %v3893_v36, %v2202_v35 }
 0xd20   : > { %v2228_v7 = vpop.permute.xlu1 %2227 }
 0xd21   : > { %v2261_v9 = vpop.permute.xlu0 %2260  ;;  %v2233_v13 = vsel %vm2229_vm10, %v2228_v7, %v2224_v3  ;;  %v2231_v33 = vsel %vm2229_vm10, %v2224_v3, %v2228_v7 }
 0xd22   : > { %v2240_v15 = vsel %vm2189_vm15, %v2233_v13, 0.0  ;;  %v2268_v17 = vsel %vm2266_vm4, %v2261_v9, %v2265_v10  ;;  %v2253_v24 = vmul.f32 %v3897_v39, %v2231_v33  ;;  %v2270_v21 = vsel %vm2266_vm4, %v2265_v10, %v2261_v9  ;;  %v2474_v9 = vpop.permute.xlu2 %2473 }
 0xd23   : > { %v2252_v23 = vmul.f32 %v3897_v39, %v2240_v15  ;;  %v2282_v55 = vsel %vm4061_vm8, %v2268_v17, 0.0  ;;  %v2281_v41 = vsel %vm4074_vm11, %v2270_v21, 0.0  ;;  %v2347_v33 = vmul.f32 %v3947_v56, %v3990_v14 }
 0xd24   : > { %v2257_v31 = vadd.f32 %v2253_v24, %v2216_v52  ;;  %v2294_v57 = vmul.f32 %v3880_v22, %v2282_v55  ;;  %v2293_v1 = vmul.f32 %v3880_v22, %v2281_v41 }
 0xd25   : > { %v2256_v53 = vadd.f32 %v2252_v23, %v2215_v27 }
 0xd27   : > { %v2297_v10 = vadd.f32 %v2293_v1, %v2256_v53 }
 0xd28   : > { %v2302_v11 = vpop.permute.xlu1 %2301 }
 0xd29   : > { %v2306_v43 = vpop.permute.xlu0 %2305 }
 0xd2a   : > { %v2309_v26 = vsel %vm2307_vm12, %v2302_v11, %v2306_v43  ;;  %v2311_v38 = vsel %vm2307_vm12, %v2306_v43, %v2302_v11  ;;  %v2298_v11 = vadd.f32 %v2294_v57, %v2257_v31 }
 0xd2b   : > { %v2318_v39 = vsel %vm4036_vm3, %v2311_v38, 0.0  ;;  %v2319_v50 = vsel %vm4045_vm6, %v2309_v26, 0.0  ;;  %v2511_v38 = vpop.permute.xlu2 %2510 }
 0xd2c   : > { %v2330_v3 = vmul.f32 %v3884_v2, %v2318_v39  ;;  %v2331_v36 = vmul.f32 %v3884_v2, %v2319_v50 }
 0xd2e   : > { %v2334_v2 = vadd.f32 %v2330_v3, %v2297_v10  ;;  %v2335_v61 = vadd.f32 %v2331_v36, %v2298_v11 }
 0xd30   : > { %v2359_v16 = vpop.permute.xlu1 %2358  ;;  %v2351_v24 = vadd.f32 %v2347_v33, %v2335_v61 }
 0xd31   : > { %v2396_v18 = vpop.permute.xlu0 %2395  ;;  %v2362_v60 = vsel %vm2360_vm13, %v2355_v62, %v2359_v16  ;;  %v2364_v46 = vsel %vm2360_vm13, %v2359_v16, %v2355_v62  ;;  %v2346_v62 = vmul.f32 %v3947_v56, %v3971_v8 }
 0xd32   : > { %v2371_v43 = vsel %vm4041_vm5, %v2362_v60, 0.0  ;;  %v2372_v5 = vsel %vm4061_vm8, %v2364_v46, 0.0 }
 0xd33   : > { %v2383_v15 = vmul.f32 %v3889_v34, %v2371_v43  ;;  %v2350_v35 = vadd.f32 %v2346_v62, %v2334_v2  ;;  %v2527_v10 = vpop.permute.xlu2 %2526 }
 0xd35   : > { %v2387_v26 = vadd.f32 %v2383_v15, %v2350_v35 }
 0xd38   : > { %v2392_v40 = vpop.permute.xlu1 %2391 }
 0xd39   : > { %v2437_v7 = vpop.permute.xlu0 %2436  ;;  %v2399_v22 = vsel %vm2397_vm2, %v2392_v40, %v2396_v18  ;;  %v2401_v13 = vsel %vm2397_vm2, %v2396_v18, %v2392_v40  ;;  %vm2475_vm2 = vcmp.lt.s32.totalorder %v4026_v20, 111  ;;  %v2384_v18 = vmul.f32 %v3889_v34, %v2372_v5 }
 0xd3a   : > { %v2412_v16 = vsel %vm4036_vm3, %v2399_v22, 0.0  ;;  %v2413_v17 = vsel %vm4132_vm0, %v2401_v13, 0.0  ;;  %v2476_v21 = vsel %vm2475_vm2, %v4147_v29, %v4161_v30  ;;  %v2478_v41 = vsel %vm2475_vm2, %v4161_v30, %v4147_v29  ;;  %vm2481_vm0 = vmand %vm2403_vm9, %vm4061_vm8 }
 0xd3b   : > { %v2424_v28 = vmul.f32 %v3895_v37, %v2412_v16  ;;  %v2425_v23 = vmul.f32 %v3895_v37, %v2413_v17  ;;  %v2388_v55 = vadd.f32 %v2384_v18, %v2351_v24  ;;  %v2487_v20 = vsel %vm2481_vm0, %v2478_v41, 0.0 }
 0xd3c   : > { %vm4439_vm8 = vcmask 1045504  }
 0xd3d   : > { %v2428_v50 = vadd.f32 %v2424_v28, %v2387_v26  ;;  %v2429_v53 = vadd.f32 %v2425_v23, %v2388_v55  ;;  %v2558_v23 = vld [vmem:[%s4428_s8] sm:$0xff]  ;;  %vm4440_vm10 = vmmov %vm4439_vm8 }
 0xd3e   : > { %vm4441_vm11 = vmmov %vm4439_vm8 }
 0xd3f   : > { %vm4442_vm12 = vmmov %vm4439_vm8 }
 0xd40   : > { %v2433_v19 = vpop.permute.xlu1 %2432  ;;  %vm4443_vm13 = vmmov %vm4439_vm8 }
 0xd41   : > { %v2440_v14 = vsel %vm2438_vm1, %v2433_v19, %v2437_v7  ;;  %v2442_v56 = vsel %vm2438_vm1, %v2437_v7, %v2433_v19  ;;  %v2470_v8 = vpop.permute.xlu0 %2469  ;;  %vm2559_vm1 = vcmask 130048  }
 0xd42   : > { %v2450_v6 = vsel %vm2403_vm9, %v2442_v56, 0.0  ;;  %v2477_v34 = vsel %vm2475_vm2, %v2470_v8, %v2474_v9  ;;  %v2461_v27 = vmul.f32 %v3909_v4, %v2440_v14  ;;  %v2479_v37 = vsel %vm2475_vm2, %v2474_v9, %v2470_v8  ;;  %vm4444_vm2 = vmmov %vm4439_vm8 }
 0xd43   : > { %v2462_v52 = vmul.f32 %v3909_v4, %v2450_v6  ;;  %v2488_v39 = vsel %vm4041_vm5, %v2477_v34, 0.0  ;;  %v2489_v31 = vsel %vm2481_vm0, %v2479_v37, 0.0  ;;  %v2486_v4 = vsel %vm4041_vm5, %v2476_v21, 0.0  ;;  %v2619_v34 = vld [vmem:[%s4429_s18] sm:$0xff] }
 0xd44   : > { %v2465_v57 = vadd.f32 %v2461_v27, %v2428_v50  ;;  %v2500_v40 = vmul.f32 %v3907_v45, %v2488_v39  ;;  %v2501_v25 = vmul.f32 %v3907_v45, %v2489_v31  ;;  %vm4430_vm9 = vcmask 64512   ;;  %v2675_v21 = vld [vmem:[%s3639_s12] sm:$0xff] }
 0xd45   : > { %v2466_v29 = vadd.f32 %v2462_v52, %v2429_v53  ;;  %2869 = vrot.lane.b32.xlu0 %v2675_v21, %s4423_s5  ;;  %vm4433_vm15 = vmmov %vm4430_vm9  ;;  %v2997_v53 = vld [vmem:[%s3644_s20] sm:$0xff]  ;;  %vm4445_vm0 = vcmask 48128  }
 0xd46   : > { %v2504_v60 = vadd.f32 %v2500_v40, %v2465_v57  ;;  %3203 = vmatmul.msk.f32.vlgmr.msra.gmra.mxu2 %vm4433_vm15, %v2675_v21  ;;  %vm4434_vm3 = vmmov %vm4430_vm9 }
 0xd47   : > { %v2505_v7 = vadd.f32 %v2501_v25, %v2466_v29  ;;  %vm4435_vm4 = vmmov %vm4434_vm3 }
 0xd48   : > { %v2492_v1 = vpop.permute.xlu1 %2491  ;;  %vm4436_vm5 = vmmov %vm4434_vm3 }
 0xd49   : > { %v2498_v30 = vmul.f32 %v2492_v1, %v2486_v4  ;;  %v2499_v58 = vmul.f32 %v2492_v1, %v2487_v20  ;;  %v2516_v32 = vpop.permute.xlu0 %2515  ;;  %vm4437_vm6 = vmmov %vm4434_vm3 }
 0xd4a   : > { %v2520_v22 = vmul.f32 %v2516_v32, %v2504_v60  ;;  %v2521_v13 = vmul.f32 %v2516_v32, %v2505_v7  ;;  %vm4438_vm7 = vmmov %vm4434_vm3 }
 0xd4b   : > { %v2502_v3 = vadd.f32 %v2498_v30, %v4157_v59  ;;  %v2503_v36 = vadd.f32 %v2499_v58, %v4159_v0 }
 0xd4d   : > { %v2518_v9 = vmul.f32 %v2511_v38, %v2502_v3  ;;  %v2519_v46 = vmul.f32 %v2511_v38, %v2503_v36 }
 0xd4f   : > { %v2534_v11 = vadd.f32 %v2527_v10, %v2518_v9  ;;  %v2535_v43 = vadd.f32 %v2527_v10, %v2519_v46 }
 0xd51   : > { %v2532_v2 = vpop.permute.xlu1 %2531  ;;  %v2538_v61 = vmul.f32 %v2534_v11, %v3911_v44  ;;  %v2546_v5 = vmul.f32 %v2534_v11, %v3915_v48  ;;  %v2539_v45 = vmul.f32 %v2535_v43, %v3911_v44  ;;  %v2547_v59 = vmul.f32 %v2535_v43, %v3915_v48  ;;  %v2615_v52 = vpop.permute.xlu0 %2614 }
 0xd52   : > { %v2536_v0 = vadd.f32 %v2532_v2, %v2520_v22  ;;  %v2537_v33 = vadd.f32 %v2532_v2, %v2521_v13 }
 0xd53   : > { %v2542_v18 = vadd.f32 %v2538_v61, %v3921_v51  ;;  %v2550_v19 = vadd.f32 %v2546_v5, %v3931_v54  ;;  %v2543_v44 = vadd.f32 %v2539_v45, %v3921_v51  ;;  %v2551_v48 = vadd.f32 %v2547_v59, %v3931_v54  ;;  %v2622_v54 = vld [vmem:[%s4429_s18 + $0x18] sm:$0xff] }
 0xd54   : > { %v2540_v62 = vmul.f32 %v2536_v0, %v3913_v47  ;;  %v2541_v15 = vmul.f32 %v2537_v33, %v3913_v47  ;;  %v2548_v16 = vmul.f32 %v2536_v0, %v3955_v42  ;;  %v2549_v17 = vmul.f32 %v2537_v33, %v3955_v42 }
 0xd55   : > { %v2554_v28 = vmax.f32 %v2542_v18, %v2550_v19  ;;  %v2555_v51 = vmax.f32 %v2543_v44, %v2551_v48 }
 0xd56   : > { %v2544_v35 = vadd.f32 %v2540_v62, %v3917_v49  ;;  %v2545_v24 = vadd.f32 %v2541_v15, %v3917_v49  ;;  %v2552_v47 = vadd.f32 %v2548_v16, %v3957_v63  ;;  %v2553_v14 = vadd.f32 %v2549_v17, %v3957_v63  ;;  %v2621_v49 = vld [vmem:[%s4429_s18 + $0x10] sm:$0xff]  ;;  %v2620_v63 = vld [vmem:[%s4429_s18 + $0x8] sm:$0xff] }
 0xd58   : > { %v2556_v42 = vmax.f32 %v2544_v35, %v2552_v47  ;;  %v2557_v56 = vmax.f32 %v2545_v24, %v2553_v14 }
 0xd59   : > { %v2607_v8 = vpop.permute.xlu1 %2606 }
 0xd5a   : > { %2577 = vmatpush.msrb.mxu1 %v2556_v42  ;;  %2597 = vmatpush.msra.mxu0 %v2557_v56 }
 0xd5c   : > { %2578 = vmatpush.msrb.mxu1 %v2554_v28  ;;  %2598 = vmatpush.msra.mxu0 %v2555_v51 }
 0xd5d   : > { %3196 = vmatmul.msk.f32.vlgmr.msrb.gmra.mxu1 %vm2559_vm1, %v2558_v23  ;;  %3197 = vmatmul.msk.f32.vlgmr.msra.gmra.mxu0 %vm2559_vm1, %v2558_v23  ;;  %vm4446_vm1 = vmmov %vm4444_vm2 }
 0xd5e   : > { %2639 = vmatpush.msra.mxu1 %v2622_v54  ;;  %vm4449_vm15 = vmmov %vm4446_vm1 }
 0xd60   : > { %2640 = vmatpush.msra.mxu1 %v2621_v49 }
 0xd61   : > { %v2872_v6 = vpop.permute.xlu1 %2871 }
 0xd62   : > { %2641 = vmatpush.msra.mxu1 %v2620_v63  ;;  %3206 = vmatpush.xpose.msk.msrb.mxu2 %vm4430_vm9, %v2872_v6  ;;  %vm4447_vm9 = vmmov %vm4446_vm1 }
 0xd64   : > { %2642 = vmatpush.msra.mxu1 %v2619_v34 }
 0xd65   : > { %3198 = vmatmul.msk.f32.vlgmr.msra.gmra.mxu1 %vm4432_vm14, %v3796_v12  ;;  %v3317_v12 = vld [vmem:[%s4431_s2] ss:$0 sm:$0xff]  ;;  %vm4448_vm14 = vmmov %vm4446_vm1 }
 0xdb7   : > { %v2870_v4 = vpop.permute.xlu0 %2869 }
 0xdb8   : > { %3207 = vmatmul.msk.f32.vlgmr.msrb.gmra.mxu2 %vm4438_vm7, %v2870_v4  ;;  %vm4454_vm7 = vmmov %vm4445_vm0 }
 0xdc9   : > { %v2782_v63 = vpop.f32.mrf.mxu2 }
 0xdda   : > { %v2580_v26 = vpop.f32.mrf.mxu1  ;;  %v2600_v38 = vpop.f32.mrf.mxu0 }
 0xddb   : > { %v2609_v55 = vmul.f32 %v2607_v8, %v2580_v26  ;;  %v2610_v27 = vmul.f32 %v2607_v8, %v2600_v38 }
 0xddd   : > { %v4285_v37 = vadd.f32 %v2615_v52, %v2609_v55  ;;  %v4287_v41 = vadd.f32 %v2615_v52, %v2610_v27 }
 0xddf   : > { %2694 = vmatpush.msrb.mxu0 %v4285_v37  ;;  %2714 = vmatpush.msrb.mxu1 %v4287_v41 }
 0xde1   : > { %2804 = vmatpush.msra.mxu0 %v4285_v37  ;;  %2824 = vmatpush.msra.mxu1 %v4287_v41 }
 0xde2   : > { %v2644_v39 = vpop.f32.mrf.mxu1 }
 0xde3   : > { %v2645_v50 = vadd.f32 %v3317_v12, %v2644_v39 }
 0xde5   : > { %2785 = vrot.lane.b32.xlu2 %v2645_v50, %s4423_s5  ;;  %3200 = vmatmul.msk.f32.vlgmr.msrb.gmra.mxu0 %vm4434_vm3, %v2645_v50  ;;  %vm4450_vm3 = vmmov %vm4446_vm1 }
 0xde6   : > { %3201 = vmatmul.msk.f32.vlgmr.msrb.gmra.mxu1 %vm4435_vm4, %v2645_v50  ;;  %vm4451_vm4 = vmmov %vm4445_vm0 }
 0xded   : > { %3000 = vperm.xlu2 %3302, %v2997_v53  }
 0xe3f   : > { %v2786_v31 = vpop.permute.xlu2 %2785 }
 0xe40   : > { %3204 = vmatmul.msk.f32.vlgmr.msra.gmra.mxu0 %vm4436_vm5, %v2786_v31  ;;  %3205 = vmatmul.msk.f32.vlgmr.msra.gmra.mxu1 %vm4437_vm6, %v2786_v31  ;;  %vm4452_vm5 = vmmov %vm4446_vm1 }
 0xe41   : > { %vm4453_vm6 = vmmov %vm4445_vm0 }
 0xe62   : > { %v2696_v57 = vpop.f32.mrf.mxu0 }
 0xe63   : > { %v2719_v40 = vmul.f32 0.35355338, %v2696_v57  ;;  %v2716_v61 = vpop.f32.mrf.mxu1 }
 0xe64   : > { %v2720_v5 = vmul.f32 0.35355338, %v2716_v61  ;;  %v2894_v61 = vpop.f32.mrf.mxu2 }
 0xe65   : > { %v2721_v1 = vsel %vm4439_vm8, %v2719_v40, -inf }
 0xe66   : > { %v2722_v20 = vrot.slane %v2721_v1, 4  ;;  %v2728_v45 = vsel %vm4442_vm12, %v2720_v5, -inf }
 0xe67   : > { %v2729_v59 = vrot.slane %v2728_v45, 4 }
 0xe68   : > { %v2723_v29 = vmax.f32 %v2721_v1, %v2722_v20 }
 0xe69   : > { %v2730_v0 = vmax.f32 %v2728_v45, %v2729_v59 }
 0xe6a   : > { %v2724_v30 = vrot.slane %v2723_v29, 2 }
 0xe6b   : > { %v2731_v33 = vrot.slane %v2730_v0, 2 }
 0xe6c   : > { %v2725_v58 = vmax.f32 %v2723_v29, %v2724_v30 }
 0xe6d   : > { %v2732_v62 = vmax.f32 %v2730_v0, %v2731_v33 }
 0xe6e   : > { %v2726_v25 = vrot.slane %v2725_v58, 1 }
 0xe6f   : > { %v2733_v15 = vrot.slane %v2732_v62, 1 }
 0xe70   : > { %v2727_v3 = vmax.f32 %v2725_v58, %v2726_v25 }
 0xe71   : > { %v2734_v16 = vmax.f32 %v2732_v62, %v2733_v15  ;;  %v3001_v15 = vpop.permute.xlu2 %3000 }
 0xe72   : > { %v2735_v36 = vsub.f32 %v2719_v40, %v2727_v3 }
 0xe73   : > { %v2736_v17 = vsub.f32 %v2720_v5, %v2734_v16 }
 0xe74   : > { %v2737_v60 = vmul.f32 1.442695, %v2735_v36 }
 0xe75   : > { %v2739_v18 = vmul.f32 1.442695, %v2736_v17 }
 0xe76   : > { %3378 = vpow2.f32 %v2737_v60 }
 0xe7c   : > { %v3379_v7 = vpop.eup %3378 }
 0xe7d   : > { %v2741_v9 = vsel %vm4440_vm10, %v3379_v7, 0.0 }
 0xe7e   : > { %v2742_v46 = vrot.slane %v2741_v9, 4 }
 0xe80   : > { %v2743_v32 = vadd.f32 %v2742_v46, %v2741_v9 }
 0xe82   : > { %v2744_v10 = vrot.slane %v2743_v32, 2 }
 0xe84   : > { %v2745_v11 = vadd.f32 %v2744_v10, %v2743_v32 }
 0xe86   : > { %v2746_v43 = vrot.slane %v2745_v11, 1 }
 0xe88   : > { %v2747_v22 = vadd.f32 %v2746_v43, %v2745_v11 }
 0xe8a   : > { %3380 = vrcp.f32 %v2747_v22 }
 0xe8b   : > { %3382 = vpow2.f32 %v2739_v18 }
 0xe90   : > { %v3381_v13 = vpop.eup %3380 }
 0xe91   : > { %v2757_v2 = vmul.f32 %v3381_v13, %v3379_v7  ;;  %v3383_v23 = vpop.eup %3382 }
 0xe92   : > { %v2748_v6 = vsel %vm4446_vm1, %v3383_v23, 0.0 }
 0xe93   : > { %3212 = vmatpush.msk.msra.mxu2 %vm4441_vm11, %v2757_v2  ;;  %v2749_v55 = vrot.slane %v2748_v6, 4 }
 0xe94   : > { %3213 = vmatmul.msk.f32.vlgmr.msra.gmra.mxu2 %vm4445_vm0, %v2782_v63 }
 0xe95   : > { %v2750_v50 = vadd.f32 %v2749_v55, %v2748_v6 }
 0xe97   : > { %v2751_v53 = vrot.slane %v2750_v50, 2 }
 0xe99   : > { %v2752_v57 = vadd.f32 %v2751_v53, %v2750_v50 }
 0xe9b   : > { %v2753_v58 = vrot.slane %v2752_v57, 1 }
 0xe9d   : > { %v2754_v7 = vadd.f32 %v2753_v58, %v2752_v57 }
 0xebd   : > { %v2806_v19 = vpop.f32.mrf.mxu0  ;;  %v2826_v44 = vpop.f32.mrf.mxu1 }
 0xebe   : > { %v2829_v48 = vmul.f32 0.35355338, %v2806_v19  ;;  %v2830_v35 = vmul.f32 0.35355338, %v2826_v44 }
 0xec0   : > { %v2831_v24 = vsel %vm4443_vm13, %v2829_v48, -inf  ;;  %v2838_v47 = vsel %vm4444_vm2, %v2830_v35, -inf }
 0xec1   : > { %v2832_v14 = vrot.slane %v2831_v24, 4  ;;  %v2839_v42 = vrot.slane %v2838_v47, 4 }
 0xec3   : > { %v2833_v56 = vmax.f32 %v2831_v24, %v2832_v14  ;;  %v2840_v8 = vmax.f32 %v2838_v47, %v2839_v42 }
 0xec5   : > { %v2834_v28 = vrot.slane %v2833_v56, 2  ;;  %v2841_v51 = vrot.slane %v2840_v8, 2 }
 0xec7   : > { %v2835_v54 = vmax.f32 %v2833_v56, %v2834_v28  ;;  %v2842_v49 = vmax.f32 %v2840_v8, %v2841_v51 }
 0xec9   : > { %v2836_v34 = vrot.slane %v2835_v54, 1  ;;  %v2843_v21 = vrot.slane %v2842_v49, 1 }
 0xecb   : > { %v2837_v26 = vmax.f32 %v2835_v54, %v2836_v34  ;;  %v2844_v38 = vmax.f32 %v2842_v49, %v2843_v21 }
 0xecd   : > { %v2845_v27 = vsub.f32 %v2829_v48, %v2837_v26  ;;  %v2846_v52 = vsub.f32 %v2830_v35, %v2844_v38 }
 0xecf   : > { %v2847_v12 = vmul.f32 1.442695, %v2845_v27  ;;  %v2849_v39 = vmul.f32 1.442695, %v2846_v52 }
 0xed1   : > { %3384 = vpow2.f32 %v2847_v12 }
 0xed2   : > { %3386 = vpow2.f32 %v2849_v39 }
 0xed3   : > { %3388 = vrcp.f32 %v2754_v7 }
 0xed7   : > { %v3385_v31 = vpop.eup %3384 }
 0xed8   : > { %v3387_v4 = vpop.eup %3386  ;;  %v2851_v40 = vsel %vm4447_vm9, %v3385_v31, 0.0 }
 0xed9   : > { %v2852_v1 = vrot.slane %v2851_v40, 4  ;;  %v2858_v20 = vsel %vm4448_vm14, %v3387_v4, 0.0  ;;  %v3389_v43 = vpop.eup %3388 }
 0xeda   : > { %v2859_v29 = vrot.slane %v2858_v20, 4  ;;  %v2758_v45 = vmul.f32 %v3389_v43, %v3383_v23 }
 0xedb   : > { %v2853_v30 = vadd.f32 %v2852_v1, %v2851_v40 }
 0xedc   : > { %v2860_v25 = vadd.f32 %v2859_v29, %v2858_v20 }
 0xedd   : > { %v2854_v3 = vrot.slane %v2853_v30, 2 }
 0xede   : > { %v2861_v36 = vrot.slane %v2860_v25, 2 }
 0xedf   : > { %v2855_v60 = vadd.f32 %v2854_v3, %v2853_v30 }
 0xee0   : > { %v2862_v9 = vadd.f32 %v2861_v36, %v2860_v25 }
 0xee1   : > { %v2856_v46 = vrot.slane %v2855_v60, 1 }
 0xee2   : > { %v2863_v32 = vrot.slane %v2862_v9, 1 }
 0xee3   : > { %v2857_v10 = vadd.f32 %v2856_v46, %v2855_v60 }
 0xee4   : > { %v2864_v11 = vadd.f32 %v2863_v32, %v2862_v9 }
 0xee5   : > { %3390 = vrcp.f32 %v2857_v10 }
 0xee6   : > { %3392 = vrcp.f32 %v2864_v11 }
 0xeeb   : > { %v3391_v22 = vpop.eup %3390 }
 0xeec   : > { %v3393_v13 = vpop.eup %3392  ;;  %v2867_v2 = vmul.f32 %v3391_v22, %v3385_v31 }
 0xeed   : > { %v2868_v5 = vmul.f32 %v3393_v13, %v3387_v4 }
 0xeee   : > { %3208 = vmatpush.msk.msrb.mxu0 %vm4449_vm15, %v2867_v2 }
 0xeef   : > { %3210 = vmatpush.msk.msrb.mxu1 %vm4450_vm3, %v2868_v5  ;;  %3209 = vmatmul.msk.f32.vlgmr.msrb.gmra.mxu0 %vm4451_vm4, %v2894_v61 }
 0xef0   : > { %3214 = vmatpush.msk.msra.mxu0 %vm4452_vm5, %v2758_v45  ;;  %3211 = vmatmul.msk.f32.vlgmr.msrb.gmra.mxu1 %vm4453_vm6, %v2894_v61 }
 0xef7   : > { %3215 = vmatmul.msk.f32.vlgmr.msra.gmra.mxu0 %vm4454_vm7, %v2782_v63 }
 0xf17   : > { %v2972_v0 = vpop.f32.mrf.mxu2 }
 0xf6c   : > { %v2923_v59 = vpop.f32.mrf.mxu0 }
 0xf6d   : > { %v2973_v33 = vadd.f32 %v2972_v0, %v2923_v59  ;;  %v2943_v17 = vpop.f32.mrf.mxu1 }
 0xf6f   : > { %v2995_v62 = vadd.f32 %v2973_v33, %v4285_v37 }
 0xf71   : > { %v3003_v16 = vadd.f32 %v3001_v15, %v2995_v62 }
 0xf73   : > { %3005 = vst [vmem:[%s1150_s0] sm:$0xff] %v3003_v16 }
 0xf74   : > { %v2992_v18 = vpop.f32.mrf.mxu0 }
 0xf75   : > { %v2993_v19 = vadd.f32 %v2992_v18, %v2943_v17 }
 0xf77   : > { %v2996_v44 = vadd.f32 %v2993_v19, %v4287_v41 }
 0xf79   : > { %v3004_v48 = vadd.f32 %v3001_v15, %v2996_v44 }
 0xf7b   : > { %3006 = vst [vmem:[%s1150_s0 + $0x8] sm:$0xff] %v3004_v48 }
 0xf7c PF: > { %s86_s7 = sadd.s32 1, %s3400_s7  }
 0xf7d   : > { %p83_p4 = scmp.ge.s32.totalorder %s86_s7, 4  }
 0xf7f   :  { %85 = sbr.rel (!%p83_p4) target bundleno = 78 (0x4e), region = 246 }

</bundles_post_ra>
